<compile_context>
chip_gen: v6e
topology: v6e:2x2x1
jax: 0.10.0
libtpu: 0.0.40
codegen_flags: <defaults>
</compile_context>

<pallas_src>
import functools
import numpy as np
import jax
import jax.numpy as jnp
from jax import lax
from jax.experimental import pallas as pl
from jax.experimental.pallas import tpu as pltpu

# ----------------------------- config (args) --------------------------------
B = 2           # batch
STEPS = 4       # args.seq_len
N_NODES = 8     # graph nodes (307 in the original; shrunk for the demo)
D = 1           # args.D
H = 32          # args.H
HID = 32        # args.lstm_hidden_size
N_HEADS = 4     # args.n_heads
N_BLOCKS = 2    # args.recurrent_blocks
ATT_SCALE = float(H) / float(N_HEADS)    # softmax(att / (dmodel / n_heads))


# ------------------------- math helpers (jnp only) ---------------------------
def _gelu(x):
    c = 0.7978845608028654  # sqrt(2/pi); tanh-approx GELU (EUP tanh)
    return 0.5 * x * (1.0 + jnp.tanh(c * (x + 0.044715 * (x * x * x))))


def _sigmoid(x):
    return 0.5 * (1.0 + jnp.tanh(0.5 * x))   # exact, overflow-safe (EUP tanh)


# ------------------------------- fused kernel --------------------------------
def _radflow_step_kernel(
    x_ref,        # [N*B, D]  per-step input slice (node-major rows: n*B + b)
    adj_ref,      # [N, N]    plain adjacency (bf16, 0/1-valued -> exact)
    wd_ref, bd_ref,                      # WD : [D, H] bf16, [1, H] f32
    wih_ref, whh_ref, bl_ref,            # LSTM stacks: [L,H,4HID],[L,HID,4HID] bf16, [L,1,4HID] f32
    w1_ref, b1_ref, w2_ref, b2_ref,      # fused FC_p/q/u: [L,HID,3H],[L,3H,3H] bf16 + f32 biases
    wqe_ref, bqe_ref, wkv_ref, bkv_ref,  # fused (WQ|WE), (WK|WV): [H,2H] bf16, [1,2H] f32
    wo_ref, bo_ref,                      # WO : [H, H] bf16, [1, H] f32
    wnwa_ref,                            # WN @ WA pre-multiplied : [H, D] bf16
    wra_ref, bf_ref,                     # fused [WR; WA] : [2H, D] bf16, combined bias [1, D] f32
    out_ref,      # [N, B]
    cur_ref, qacc_ref, uacc_ref,         # [N*B, H] f32 scratch
    gates_ref,    # [N, B, 4*HID] f32 scratch (hoisted LSTM input projection)
    hseq_ref,     # [N, B, HID]   f32 scratch (LSTM hidden sequence)
    flow_ref,     # [N*B, 2H+1]   f32 scratch (node_t | Q | f_base)
    vscr_ref,     # [B, N, H]     f32 scratch (per-batch V)
    *, scale, n_blocks, n_nodes, batch, unroll):
    nb = n_nodes * batch
    h = wd_ref.shape[1]
    hid = whh_ref.shape[1]
    d = x_ref.shape[1]
    bf16 = jnp.bfloat16
    f32 = jnp.float32

    # ---- WD : [N*B, D] -> [N*B, H]
    x2d = x_ref[...]
    if d == 1:   # rank-1 projection: broadcast multiply, skip a K=1 MXU push
        cur = x2d * wd_ref[...] + bd_ref[...]
    else:
        cur = jnp.dot(x2d.astype(bf16), wd_ref[...],
                      preferred_element_type=f32) + bd_ref[...]
    cur_ref[...] = cur
    qacc_ref[...] = jnp.zeros_like(qacc_ref)
    uacc_ref[...] = jnp.zeros_like(uacc_ref)

    # ---- recurrent blocks (dropout == identity in eval mode)
    for l in range(n_blocks):
        cur = cur_ref[...]
        whh_l = whh_ref[l]                                   # [HID, 4HID] bf16
        # input projection for ALL nodes at once (one wide MXU call); only
        # h @ Whh stays inside the serial recurrence.
        gx = (jnp.dot(cur.astype(bf16), wih_ref[l],
                      preferred_element_type=f32) + bl_ref[l])
        gates_ref[...] = gx.reshape(n_nodes, batch, 4 * hid)

        def lstm_body(t, carry, whh_l=whh_l):
            h_prev, c_prev = carry
            g = gates_ref[t] + jnp.dot(h_prev.astype(bf16), whh_l,
                                       preferred_element_type=f32)
            i_g = _sigmoid(g[:, 0 * hid:1 * hid])
            f_g = _sigmoid(g[:, 1 * hid:2 * hid])
            g_g = jnp.tanh(g[:, 2 * hid:3 * hid])
            o_g = _sigmoid(g[:, 3 * hid:4 * hid])
            c_t = f_g * c_prev + i_g * g_g
            h_t = o_g * jnp.tanh(c_t)
            hseq_ref[t] = h_t
            return (h_t, c_t)

        z0 = jnp.zeros((batch, hid), f32)
        # TODO(synk): hold Whh in MXU weight regs (matmul_push_rhs) to shorten
        # the serial dependence chain; kept as a plain dot for portability.
        lax.fori_loop(0, n_nodes, lstm_body, (z0, z0), unroll=unroll)

        h_seq = hseq_ref[...].reshape(nb, hid)               # [N*B, HID]
        # fused FC_p / FC_q / FC_u : one 96-lane matmul + GELU + block-diag matmul
        z = _gelu(jnp.dot(h_seq.astype(bf16), w1_ref[l],
                          preferred_element_type=f32) + b1_ref[l])
        pqu = jnp.dot(z.astype(bf16), w2_ref[l],
                      preferred_element_type=f32) + b2_ref[l]
        cur_ref[...] = cur - pqu[:, 0 * h:1 * h]
        qacc_ref[...] = qacc_ref[...] + pqu[:, 1 * h:2 * h]
        uacc_ref[...] = uacc_ref[...] + pqu[:, 2 * h:3 * h]

    uacc_ref[...] = uacc_ref[...] * (1.0 / n_blocks)         # now holds node_t

    # ---- node-major Flow projections + attention-independent head base
    node_t = uacc_ref[...]
    qe = jnp.dot(node_t.astype(bf16), wqe_ref[...],
                 preferred_element_type=f32) + bqe_ref[...]   # [N*B, 2H] = Q|E
    rae = jnp.concatenate([qacc_ref[...], qe[:, h:]], axis=1)  # [N*B, 2H]
    # f_base = q_acc@WR + E@WA + (bR + bA + bN@WA)  (fused WR/WA heads)
    f_base = jnp.dot(rae.astype(bf16), wra_ref[...],
                     preferred_element_type=f32) + bf_ref[...]
    flow_ref[...] = jnp.concatenate([node_t, qe[:, :h], f_base], axis=1)

    # ---- per-batch neighbour sum + diagonal attention (pass A)
    # Batch-b rows of the node-major slab are picked with an exact 0/1
    # selection matmul built from iota (no (N*B)^2 operator, no reshapes).
    adj_m = adj_ref[...]
    wkv_m = wkv_ref[...]
    bkv_m = bkv_ref[...]
    col_id = lax.broadcasted_iota(jnp.int32, (1, nb), 1)
    row_b = lax.broadcasted_iota(jnp.int32, (n_nodes, 1), 0) * batch
    inv_scale = 1.0 / scale
    dl_cols, fb_cols = [], []
    for bb in range(batch):
        sel = (col_id == row_b + bb).astype(f32)             # [N, N*B] exact 0/1
        ext = jnp.dot(sel, flow_ref[...], preferred_element_type=f32)  # [N, 2H+1]
        nt_bb = ext[:, 0 * h:1 * h]
        q_bb = ext[:, 1 * h:2 * h]
        fb_cols.append(ext[:, 2 * h:2 * h + 1])
        # construct_neigh_embedding: plain [N,N] adjacency per batch element
        nn_bb = jnp.dot(adj_m, nt_bb.astype(bf16), preferred_element_type=f32)
        kv_bb = jnp.dot(nn_bb.astype(bf16), wkv_m,
                        preferred_element_type=f32) + bkv_m   # [N, 2H] = K|V
        vscr_ref[bb] = kv_bb[:, h:]
        dl_cols.append(jnp.sum(q_bb * kv_bb[:, :h], axis=1, keepdims=True)
                       * inv_scale)

    # torch einsum('bnn,bnd->bnd') only reads att[b,n,n] and nn.Softmax()
    # (implicit dim=0 on 3-D logits) normalises over the batch axis -> only the
    # diagonal logits are softmaxed, over the B lanes.
    dl = jnp.concatenate(dl_cols, axis=1)                    # [N, B]
    m = jnp.max(dl, axis=1, keepdims=True)
    e = jnp.exp(dl - m)
    att = e * pl.reciprocal(jnp.sum(e, axis=1, keepdims=True), approx=True)

    # ---- per-batch attention output + forecast (pass B)
    wo_m = wo_ref[...]
    bo_m = bo_ref[...]
    wnwa_m = wnwa_ref[...]
    f_cols = []
    for bb in range(batch):
        v_bb = vscr_ref[bb]                                  # [N, H]
        act = _gelu(jnp.dot((att[:, bb:bb + 1] * v_bb).astype(bf16), wo_m,
                            preferred_element_type=f32) + bo_m)
        f_att = jnp.dot(act.astype(bf16), wnwa_m, preferred_element_type=f32)
        f_cols.append(fb_cols[bb] + f_att)                   # [N, 1]

    out_ref[...] = jnp.concatenate(f_cols, axis=1)           # [N, B]


# ------------------------------ pallas wrapper --------------------------------
def _const_spec(a):
    zeros = (0,) * a.ndim
    return pl.BlockSpec(a.shape, lambda s, _z=zeros: _z)   # resident across steps


_WEIGHT_ORDER = ('wd', 'bd', 'wih', 'whh', 'bl', 'w1', 'b1', 'w2', 'b2',
                 'wqe', 'bqe', 'wkv', 'bkv', 'wo', 'bo', 'wnwa', 'wra', 'bf')


@jax.jit
def radflow_forward(x, adj, pk):
    bsz, steps, n, d = x.shape
    h = pk['wd'].shape[1]
    hid = pk['whh'].shape[1]
    n_blocks = pk['wih'].shape[0]
    nb = n * bsz

    # [B, S, N, D] -> [S, N*B, D]   (node-major rows n*B + b inside each step)
    # (x tile is lane-sparse but ~KBs per step and fully hidden by the 2-deep
    #  input pipeline, so the proven column layout is kept.)
    x_seq = jnp.transpose(x, (1, 2, 0, 3)).reshape(steps, nb, d)
    adj_b = adj.astype(jnp.bfloat16)
    weights = [pk[k] for k in _WEIGHT_ORDER]

    unroll = next((u for u in (8, 4, 2) if n % u == 0), 1)
    kern = functools.partial(_radflow_step_kernel, scale=ATT_SCALE,
                             n_blocks=n_blocks, n_nodes=n, batch=bsz,
                             unroll=unroll)

    in_specs = ([pl.BlockSpec((None, nb, d), lambda s: (s, 0, 0)),
                 _const_spec(adj_b)] + [_const_spec(w) for w in weights])

    scratch_shapes = [
        pltpu.VMEM((nb, h), jnp.float32),             # cur
        pltpu.VMEM((nb, h), jnp.float32),             # q accumulator
        pltpu.VMEM((nb, h), jnp.float32),             # u accumulator -> node_t
        pltpu.VMEM((n, bsz, 4 * hid), jnp.float32),   # hoisted LSTM gates
        pltpu.VMEM((n, bsz, hid), jnp.float32),       # LSTM hidden sequence
        pltpu.VMEM((nb, 2 * h + 1), jnp.float32),     # node_t | Q | f_base
        pltpu.VMEM((bsz, n, h), jnp.float32),         # per-batch V
    ]

    # size the scoped-VMEM limit from the actual resident set (keep <=48 MiB
    # so the same config also fits v7x's 64 MiB per-core VMEM)
    def _nbytes(a):
        return int(np.prod(a.shape)) * jnp.dtype(a.dtype).itemsize
    pad_b = max(8, bsz)
    resident = (2 * (sum(_nbytes(w) for w in weights) + _nbytes(adj_b))
                + 2 * (nb * 128 * 4 + n * 128 * 4)                 # step x/out
                + 4 * (3 * nb * 128 + n * pad_b * 4 * hid
                       + n * pad_b * hid + nb * 128 + bsz * n * 128))
    vmem_limit = int(min(48 * 2 ** 20, max(32 * 2 ** 20, 2 * resident)))

    out = pl.pallas_call(
        kern,
        out_shape=jax.ShapeDtypeStruct((steps, n, bsz), jnp.float32),
        grid=(steps,),
        in_specs=in_specs,
        out_specs=pl.BlockSpec((None, n, bsz), lambda s: (s, 0, 0)),
        scratch_shapes=scratch_shapes,
        compiler_params=pltpu.CompilerParams(
            dimension_semantics=("parallel",),        # steps independent
            vmem_limit_bytes=vmem_limit),
    )(x_seq, adj_b, *weights)

    return jnp.transpose(out, (2, 0, 1))              # [S, N, B] -> [B, S, N]


# --------------------------- parameter init / packing -------------------------
def init_params(key):
    keys = iter(jax.random.split(key, 128))

    def lin(din, dout, scale=0.1):
        w = jax.random.normal(next(keys), (din, dout), jnp.float32) * scale
        b = jax.random.normal(next(keys), (1, dout), jnp.float32) * scale
        return (w, b)

    def lstm():
        wih = jax.random.normal(next(keys), (H, 4 * HID), jnp.float32) * 0.1
        whh = jax.random.normal(next(keys), (HID, 4 * HID), jnp.float32) * 0.1
        b = jax.random.normal(next(keys), (1, 4 * HID), jnp.float32) * 0.1  # b_ih + b_hh
        return (wih, whh, b)

    def ff():
        w1, b1 = lin(HID, H)
        w2, b2 = lin(H, H)
        return (w1, b1, w2, b2)

    blocks = [{'lstm': lstm(), 'fcp': ff(), 'fcq': ff(), 'fcu': ff()}
              for _ in range(N_BLOCKS)]
    flow = {'wq': lin(H, H), 'wk': lin(H, H), 'wv': lin(H, H), 'wo': lin(H, H),
            'we': lin(H, H), 'wn': lin(H, H), 'wa': lin(H, D)}
    return {'WD': lin(D, H), 'WR': lin(H, D), 'blocks': blocks, 'flow': flow}


def pack_params(params):
    """Stack/fuse weights for the kernel: FC_p/q/u fused, (WQ|WE), (WK|WV),
    [WR;WA] head, WN@WA pre-multiplied, matmul weights cast to bf16."""
    bf16 = jnp.bfloat16
    wd, bd = params['WD']
    wr, br = params['WR']
    fl = params['flow']
    wn, bn = fl['wn']
    wa, ba = fl['wa']

    def fuse_ffn(blk):
        w1p, b1p, w2p, b2p = blk['fcp']
        w1q, b1q, w2q, b2q = blk['fcq']
        w1u, b1u, w2u, b2u = blk['fcu']
        hh = w2p.shape[0]
        w1 = jnp.concatenate([w1p, w1q, w1u], axis=1)            # [HID, 3H]
        b1 = jnp.concatenate([b1p, b1q, b1u], axis=1)
        w2 = jnp.zeros((3 * hh, 3 * hh), jnp.float32)            # block-diagonal
        w2 = w2.at[:hh, :hh].set(w2p)
        w2 = w2.at[hh:2 * hh, hh:2 * hh].set(w2q)
        w2 = w2.at[2 * hh:, 2 * hh:].set(w2u)
        b2 = jnp.concatenate([b2p, b2q, b2u], axis=1)
        return w1, b1, w2, b2

    fused = [fuse_ffn(b) for b in params['blocks']]
    return {
        'wd': wd.astype(bf16), 'bd': bd,
        'wih': jnp.stack([b['lstm'][0] for b in params['blocks']]).astype(bf16),
        'whh': jnp.stack([b['lstm'][1] for b in params['blocks']]).astype(bf16),
        'bl':  jnp.stack([b['lstm'][2] for b in params['blocks']]),
        'w1': jnp.stack([f[0] for f in fused]).astype(bf16),
        'b1': jnp.stack([f[1] for f in fused]),
        'w2': jnp.stack([f[2] for f in fused]).astype(bf16),
        'b2': jnp.stack([f[3] for f in fused]),
        'wqe': jnp.concatenate([fl['wq'][0], fl['we'][0]], axis=1).astype(bf16),
        'bqe': jnp.concatenate([fl['wq'][1], fl['we'][1]], axis=1),
        'wkv': jnp.concatenate([fl['wk'][0], fl['wv'][0]], axis=1).astype(bf16),
        'bkv': jnp.concatenate([fl['wk'][1], fl['wv'][1]], axis=1),
        'wo': fl['wo'][0].astype(bf16), 'bo': fl['wo'][1],
        'wnwa': (wn @ wa).astype(bf16),                          # [H, D]
        'wra': jnp.concatenate([wr, wa], axis=0).astype(bf16),   # [2H, D]
        'bf': br + ba + bn @ wa,                                 # [1, D]
    }


# ------------------------- pure-JAX reference (torch-faithful) -----------------
def radflow_reference(x, adj, params):
    """Mirrors the PyTorch module op-for-op (full [B,N,N] attention, nn.Softmax
    implicit dim=0, einsum-diagonal), with HIGHEST-precision matmuls."""
    hi = jax.lax.Precision.HIGHEST
    _mm = lambda a, b: jnp.dot(a, b, precision=hi)

    bsz, steps, n, d = x.shape
    wd, bd = params['WD']
    wr, br = params['WR']
    h = wd.shape[1]
    hid = params['blocks'][0]['lstm'][1].shape[0]
    fl = params['flow']

    inp = (_mm(x.reshape(-1, d), wd) + bd).reshape(bsz, steps, n, h)
    outs = []
    for step in range(steps):
        cur = inp[:, step]                                   # [B, N, H]
        q_acc = jnp.zeros((bsz, n, h), jnp.float32)
        u_acc = jnp.zeros((bsz, n, h), jnp.float32)
        for blk in params['blocks']:
            wih, whh, bl = blk['lstm']
            h_t = jnp.zeros((bsz, hid), jnp.float32)
            c_t = jnp.zeros((bsz, hid), jnp.float32)
            hs = []
            for t in range(n):                               # LSTM over nodes
                g = _mm(cur[:, t, :], wih) + _mm(h_t, whh) + bl
                i_g = _sigmoid(g[:, :hid])
                f_g = _sigmoid(g[:, hid:2 * hid])
                g_g = jnp.tanh(g[:, 2 * hid:3 * hid])
                o_g = _sigmoid(g[:, 3 * hid:])
                c_t = f_g * c_t + i_g * g_g
                h_t = o_g * jnp.tanh(c_t)
                hs.append(h_t)
            hseq = jnp.stack(hs, axis=1).reshape(bsz * n, hid)

            def ffn(hh, p):
                w1, b1, w2, b2 = p
                return _mm(_gelu(_mm(hh, w1) + b1), w2) + b2
            p_ = ffn(hseq, blk['fcp']).reshape(bsz, n, h)
            q_ = ffn(hseq, blk['fcq']).reshape(bsz, n, h)
            u_ = ffn(hseq, blk['fcu']).reshape(bsz, n, h)
            cur = cur - p_
            q_acc = q_acc + q_
            u_acc = u_acc + u_
        r_t = (_mm(q_acc.reshape(-1, h), wr) + br).reshape(bsz, n, -1)[..., 0]
        node_t = u_acc / len(params['blocks'])
        node_next = jnp.einsum('nm,bmh->bnh', adj, node_t, precision=hi)

        q = (_mm(node_t.reshape(-1, h), fl['wq'][0]) + fl['wq'][1]).reshape(bsz, n, h)
        k = (_mm(node_next.reshape(-1, h), fl['wk'][0]) + fl['wk'][1]).reshape(bsz, n, h)
        v = (_mm(node_next.reshape(-1, h), fl['wv'][0]) + fl['wv'][1]).reshape(bsz, n, h)
        att = jnp.einsum('bih,bkh->bik', q, k, precision=hi) / ATT_SCALE
        att = jax.nn.softmax(att, axis=0)                    # nn.Softmax() dim=0
        diag = jnp.diagonal(att, axis1=1, axis2=2)           # einsum('bnn,bnd') diag
        att_act = _gelu(_mm((diag[..., None] * v).reshape(-1, h), fl['wo'][0]) + fl['wo'][1])
        a = (_mm(node_t.reshape(-1, h), fl['we'][0]) + fl['we'][1]
             + _mm(att_act, fl['wn'][0]) + fl['wn'][1])
        a_t = (_mm(a, fl['wa'][0]) + fl['wa'][1]).reshape(bsz, n, -1)[..., 0]
        outs.append((r_t + a_t)[:, None, :])
    return jnp.concatenate(outs, axis=1)


# --------------------------------- main -----------------------------------------
if __name__ == "__main__":
    key = jax.random.PRNGKey(0)
    pkey, xkey = jax.random.split(key)
    params = init_params(pkey)
    packed = pack_params(params)
    x = jax.random.normal(xkey, (B, STEPS, N_NODES, D), jnp.float32)

    # Synthetic node_neigh (the original hard-codes 307 nodes): node 0 has no
    # neighbours (-> construct_neigh_embedding falls back to the node itself),
    # others use ring neighbours.  Encoded as a plain [N, N] adjacency.
    node_neigh = [[] if i == 0 else [(i - 1) % N_NODES, (i + 1) % N_NODES]
                  for i in range(N_NODES)]
    adj_np = np.zeros((N_NODES, N_NODES), np.float32)
    for i, nbs in enumerate(node_neigh):
        if len(nbs) == 0:
            adj_np[i, i] = 1.0
        else:
            for j in nbs:
                adj_np[i, j] += 1.0
    adj = jnp.asarray(adj_np)

    out = radflow_forward(x, adj, packed)
    out = jax.block_until_ready(out)
    assert out.shape == (B, STEPS, N_NODES), out.shape
    assert bool(jnp.all(jnp.isfinite(out)))

    ref = jax.block_until_ready(radflow_reference(x, adj, params))
    err = float(jnp.max(jnp.abs(out - ref)))
    assert err < 2e-2, f"max |pallas - reference| = {err}"
    print("KERNEL_OK")
</pallas_src>

<mosaic_0001>
module attributes {stable_mosaic.version = 11 : i64} {
  func.func @_radflow_step_kernel(%arg0: i32, %arg1: memref<1x16x1xf32, #tpu.memory_space<vmem>>, %arg2: memref<8x8xbf16, #tpu.memory_space<vmem>>, %arg3: memref<1x32xbf16, #tpu.memory_space<vmem>>, %arg4: memref<1x32xf32, #tpu.memory_space<vmem>>, %arg5: memref<2x32x128xbf16, #tpu.memory_space<vmem>>, %arg6: memref<2x32x128xbf16, #tpu.memory_space<vmem>>, %arg7: memref<2x1x128xf32, #tpu.memory_space<vmem>>, %arg8: memref<2x32x96xbf16, #tpu.memory_space<vmem>>, %arg9: memref<2x1x96xf32, #tpu.memory_space<vmem>>, %arg10: memref<2x96x96xbf16, #tpu.memory_space<vmem>>, %arg11: memref<2x1x96xf32, #tpu.memory_space<vmem>>, %arg12: memref<32x64xbf16, #tpu.memory_space<vmem>>, %arg13: memref<1x64xf32, #tpu.memory_space<vmem>>, %arg14: memref<32x64xbf16, #tpu.memory_space<vmem>>, %arg15: memref<1x64xf32, #tpu.memory_space<vmem>>, %arg16: memref<32x32xbf16, #tpu.memory_space<vmem>>, %arg17: memref<1x32xf32, #tpu.memory_space<vmem>>, %arg18: memref<32x1xbf16, #tpu.memory_space<vmem>>, %arg19: memref<64x1xbf16, #tpu.memory_space<vmem>>, %arg20: memref<1x1xf32, #tpu.memory_space<vmem>>, %arg21: memref<1x8x2xf32, #tpu.memory_space<vmem>>, %arg22: memref<16x32xf32, #tpu.memory_space<vmem>>, %arg23: memref<16x32xf32, #tpu.memory_space<vmem>>, %arg24: memref<16x32xf32, #tpu.memory_space<vmem>>, %arg25: memref<8x2x128xf32, #tpu.memory_space<vmem>>, %arg26: memref<8x2x32xf32, #tpu.memory_space<vmem>>, %arg27: memref<16x65xf32, #tpu.memory_space<vmem>>, %arg28: memref<2x8x32xf32, #tpu.memory_space<vmem>>) attributes {dimension_semantics = [#tpu.dimension_semantics<parallel>], iteration_bounds = array<i64: 4>, scalar_prefetch = 0 : i64, scratch_operands = 7 : i64, tpu.core_type = #tpu.core_type<tc>, window_params = [{transform_indices = @transform_0, window_bounds = array<i64: 1, 16, 1>}, {pipeline_mode = #tpu.pipeline_mode<synchronous>, transform_indices = @transform_1, window_bounds = array<i64: 8, 8>}, {pipeline_mode = #tpu.pipeline_mode<synchronous>, transform_indices = @transform_2, window_bounds = array<i64: 1, 32>}, {pipeline_mode = #tpu.pipeline_mode<synchronous>, transform_indices = @transform_3, window_bounds = array<i64: 1, 32>}, {pipeline_mode = #tpu.pipeline_mode<synchronous>, transform_indices = @transform_4, window_bounds = array<i64: 2, 32, 128>}, {pipeline_mode = #tpu.pipeline_mode<synchronous>, transform_indices = @transform_5, window_bounds = array<i64: 2, 32, 128>}, {pipeline_mode = #tpu.pipeline_mode<synchronous>, transform_indices = @transform_6, window_bounds = array<i64: 2, 1, 128>}, {pipeline_mode = #tpu.pipeline_mode<synchronous>, transform_indices = @transform_7, window_bounds = array<i64: 2, 32, 96>}, {pipeline_mode = #tpu.pipeline_mode<synchronous>, transform_indices = @transform_8, window_bounds = array<i64: 2, 1, 96>}, {pipeline_mode = #tpu.pipeline_mode<synchronous>, transform_indices = @transform_9, window_bounds = array<i64: 2, 96, 96>}, {pipeline_mode = #tpu.pipeline_mode<synchronous>, transform_indices = @transform_10, window_bounds = array<i64: 2, 1, 96>}, {pipeline_mode = #tpu.pipeline_mode<synchronous>, transform_indices = @transform_11, window_bounds = array<i64: 32, 64>}, {pipeline_mode = #tpu.pipeline_mode<synchronous>, transform_indices = @transform_12, window_bounds = array<i64: 1, 64>}, {pipeline_mode = #tpu.pipeline_mode<synchronous>, transform_indices = @transform_13, window_bounds = array<i64: 32, 64>}, {pipeline_mode = #tpu.pipeline_mode<synchronous>, transform_indices = @transform_14, window_bounds = array<i64: 1, 64>}, {pipeline_mode = #tpu.pipeline_mode<synchronous>, transform_indices = @transform_15, window_bounds = array<i64: 32, 32>}, {pipeline_mode = #tpu.pipeline_mode<synchronous>, transform_indices = @transform_16, window_bounds = array<i64: 1, 32>}, {pipeline_mode = #tpu.pipeline_mode<synchronous>, transform_indices = @transform_17, window_bounds = array<i64: 32, 1>}, {pipeline_mode = #tpu.pipeline_mode<synchronous>, transform_indices = @transform_18, window_bounds = array<i64: 64, 1>}, {pipeline_mode = #tpu.pipeline_mode<synchronous>, transform_indices = @transform_19, window_bounds = array<i64: 1, 1>}, {transform_indices = @transform_20, window_bounds = array<i64: 1, 8, 2>}]} {
    %c0 = arith.constant 0 : index
    %c0_0 = arith.constant 0 : index
    %c0_1 = arith.constant 0 : index
    %0 = vector.load %arg1[%c0, %c0_0, %c0_1] : memref<1x16x1xf32, #tpu.memory_space<vmem>>, vector<1x16x1xf32>
    %1 = vector.shape_cast %0 : vector<1x16x1xf32> to vector<16x1xf32>
    %c0_2 = arith.constant 0 : index
    %c0_3 = arith.constant 0 : index
    %2 = vector.load %arg3[%c0_2, %c0_3] : memref<1x32xbf16, #tpu.memory_space<vmem>>, vector<1x32xbf16>
    %3 = arith.extf %2 : vector<1x32xbf16> to vector<1x32xf32>
    %4 = vector.broadcast %1 : vector<16x1xf32> to vector<16x32xf32>
    %5 = vector.broadcast %3 : vector<1x32xf32> to vector<16x32xf32>
    %6 = arith.mulf %4, %5 : vector<16x32xf32>
    %c0_4 = arith.constant 0 : index
    %c0_5 = arith.constant 0 : index
    %7 = vector.load %arg4[%c0_4, %c0_5] : memref<1x32xf32, #tpu.memory_space<vmem>>, vector<1x32xf32>
    %8 = vector.broadcast %7 : vector<1x32xf32> to vector<16x32xf32>
    %9 = arith.addf %6, %8 : vector<16x32xf32>
    %c0_6 = arith.constant 0 : index
    %c0_7 = arith.constant 0 : index
    %10 = vector.load %arg22[%c0_6, %c0_7] : memref<16x32xf32, #tpu.memory_space<vmem>>, vector<16x32xf32>
    tpu.vector_store %arg22[%c0_6, %c0_7], %9 {strides = array<i32>} : memref<16x32xf32, #tpu.memory_space<vmem>>, vector<16x32xf32>,
    %cst = arith.constant 0.000000e+00 : f32
    %11 = vector.broadcast %cst : f32 to vector<16x32xf32>
    %c0_8 = arith.constant 0 : index
    %c0_9 = arith.constant 0 : index
    %12 = vector.load %arg23[%c0_8, %c0_9] : memref<16x32xf32, #tpu.memory_space<vmem>>, vector<16x32xf32>
    tpu.vector_store %arg23[%c0_8, %c0_9], %11 {strides = array<i32>} : memref<16x32xf32, #tpu.memory_space<vmem>>, vector<16x32xf32>,
    %cst_10 = arith.constant 0.000000e+00 : f32
    %13 = vector.broadcast %cst_10 : f32 to vector<16x32xf32>
    %c0_11 = arith.constant 0 : index
    %c0_12 = arith.constant 0 : index
    %14 = vector.load %arg24[%c0_11, %c0_12] : memref<16x32xf32, #tpu.memory_space<vmem>>, vector<16x32xf32>
    tpu.vector_store %arg24[%c0_11, %c0_12], %13 {strides = array<i32>} : memref<16x32xf32, #tpu.memory_space<vmem>>, vector<16x32xf32>,
    %c0_13 = arith.constant 0 : index
    %c0_14 = arith.constant 0 : index
    %15 = vector.load %arg22[%c0_13, %c0_14] : memref<16x32xf32, #tpu.memory_space<vmem>>, vector<16x32xf32>
    %c0_15 = arith.constant 0 : index
    %c0_16 = arith.constant 0 : index
    %c0_17 = arith.constant 0 : index
    %16 = vector.load %arg6[%c0_15, %c0_16, %c0_17] : memref<2x32x128xbf16, #tpu.memory_space<vmem>>, vector<1x32x128xbf16>
    %17 = vector.shape_cast %16 : vector<1x32x128xbf16> to vector<32x128xbf16>
    %18 = arith.truncf %15 : vector<16x32xf32> to vector<16x32xbf16>
    %c0_18 = arith.constant 0 : index
    %c0_19 = arith.constant 0 : index
    %c0_20 = arith.constant 0 : index
    %19 = vector.load %arg5[%c0_18, %c0_19, %c0_20] : memref<2x32x128xbf16, #tpu.memory_space<vmem>>, vector<1x32x128xbf16>
    %20 = vector.shape_cast %19 : vector<1x32x128xbf16> to vector<32x128xbf16>
    %cst_21 = arith.constant dense<0.000000e+00> : vector<16x128xf32>
    %21 = tpu.matmul %18, %20, %cst_21 {dimension_numbers = #tpu.dot_dimension_numbers<[1], [0], [0], [1], [0, 0, 1, 1], [], []>} : vector<16x32xbf16>, vector<32x128xbf16>, vector<16x128xf32> -> vector<16x128xf32>
    %c0_22 = arith.constant 0 : index
    %c0_23 = arith.constant 0 : index
    %c0_24 = arith.constant 0 : index
    %22 = vector.load %arg7[%c0_22, %c0_23, %c0_24] : memref<2x1x128xf32, #tpu.memory_space<vmem>>, vector<1x1x128xf32>
    %23 = vector.shape_cast %22 : vector<1x1x128xf32> to vector<1x128xf32>
    %24 = vector.broadcast %23 : vector<1x128xf32> to vector<16x128xf32>
    %25 = arith.addf %21, %24 : vector<16x128xf32>
    %26 = vector.shape_cast %25 : vector<16x128xf32> to vector<8x2x128xf32>
    %c0_25 = arith.constant 0 : index
    %c0_26 = arith.constant 0 : index
    %c0_27 = arith.constant 0 : index
    %27 = vector.load %arg25[%c0_25, %c0_26, %c0_27] : memref<8x2x128xf32, #tpu.memory_space<vmem>>, vector<8x2x128xf32>
    tpu.vector_store %arg25[%c0_25, %c0_26, %c0_27], %26 {strides = array<i32>} : memref<8x2x128xf32, #tpu.memory_space<vmem>>, vector<8x2x128xf32>,
    %cst_28 = arith.constant 0.000000e+00 : f32
    %28 = vector.broadcast %cst_28 : f32 to vector<2x32xf32>
    %c0_i32 = arith.constant 0 : i32
    %29 = arith.index_cast %c0_i32 : i32 to index
    %c0_29 = arith.constant 0 : index
    %c0_30 = arith.constant 0 : index
    %30 = vector.load %arg25[%29, %c0_29, %c0_30] : memref<8x2x128xf32, #tpu.memory_space<vmem>>, vector<1x2x128xf32>
    %31 = vector.shape_cast %30 : vector<1x2x128xf32> to vector<2x128xf32>
    %32 = arith.truncf %28 : vector<2x32xf32> to vector<2x32xbf16>
    %cst_31 = arith.constant dense<0.000000e+00> : vector<2x128xf32>
    %33 = tpu.matmul %32, %17, %cst_31 {dimension_numbers = #tpu.dot_dimension_numbers<[1], [0], [0], [1], [0, 0, 1, 1], [], []>} : vector<2x32xbf16>, vector<32x128xbf16>, vector<2x128xf32> -> vector<2x128xf32>
    %34 = arith.addf %31, %33 : vector<2x128xf32>
    %35 = vector.extract_strided_slice %34 {offsets = [0, 0], sizes = [2, 32], strides = [1, 1]} : vector<2x128xf32> to vector<2x32xf32>
    %cst_32 = arith.constant 5.000000e-01 : f32
    %36 = vector.broadcast %cst_32 : f32 to vector<2x32xf32>
    %37 = arith.mulf %36, %35 : vector<2x32xf32>
    %38 = math.tanh %37 : vector<2x32xf32>
    %cst_33 = arith.constant 1.000000e+00 : f32
    %39 = vector.broadcast %cst_33 : f32 to vector<2x32xf32>
    %40 = arith.addf %39, %38 : vector<2x32xf32>
    %cst_34 = arith.constant 5.000000e-01 : f32
    %41 = vector.broadcast %cst_34 : f32 to vector<2x32xf32>
    %42 = arith.mulf %41, %40 : vector<2x32xf32>
    %43 = vector.extract_strided_slice %34 {offsets = [0, 32], sizes = [2, 32], strides = [1, 1]} : vector<2x128xf32> to vector<2x32xf32>
    %cst_35 = arith.constant 5.000000e-01 : f32
    %44 = vector.broadcast %cst_35 : f32 to vector<2x32xf32>
    %45 = arith.mulf %44, %43 : vector<2x32xf32>
    %46 = math.tanh %45 : vector<2x32xf32>
    %cst_36 = arith.constant 1.000000e+00 : f32
    %47 = vector.broadcast %cst_36 : f32 to vector<2x32xf32>
    %48 = arith.addf %47, %46 : vector<2x32xf32>
    %cst_37 = arith.constant 5.000000e-01 : f32
    %49 = vector.broadcast %cst_37 : f32 to vector<2x32xf32>
    %50 = arith.mulf %49, %48 : vector<2x32xf32>
    %51 = vector.extract_strided_slice %34 {offsets = [0, 64], sizes = [2, 32], strides = [1, 1]} : vector<2x128xf32> to vector<2x32xf32>
    %52 = math.tanh %51 : vector<2x32xf32>
    %53 = vector.extract_strided_slice %34 {offsets = [0, 96], sizes = [2, 32], strides = [1, 1]} : vector<2x128xf32> to vector<2x32xf32>
    %cst_38 = arith.constant 5.000000e-01 : f32
    %54 = vector.broadcast %cst_38 : f32 to vector<2x32xf32>
    %55 = arith.mulf %54, %53 : vector<2x32xf32>
    %56 = math.tanh %55 : vector<2x32xf32>
    %cst_39 = arith.constant 1.000000e+00 : f32
    %57 = vector.broadcast %cst_39 : f32 to vector<2x32xf32>
    %58 = arith.addf %57, %56 : vector<2x32xf32>
    %cst_40 = arith.constant 5.000000e-01 : f32
    %59 = vector.broadcast %cst_40 : f32 to vector<2x32xf32>
    %60 = arith.mulf %59, %58 : vector<2x32xf32>
    %61 = arith.mulf %50, %28 : vector<2x32xf32>
    %62 = arith.mulf %42, %52 : vector<2x32xf32>
    %63 = arith.addf %61, %62 : vector<2x32xf32>
    %64 = math.tanh %63 : vector<2x32xf32>
    %65 = arith.mulf %60, %64 : vector<2x32xf32>
    %66 = arith.index_cast %c0_i32 : i32 to index
    %c0_41 = arith.constant 0 : index
    %c0_42 = arith.constant 0 : index
    %67 = vector.load %arg26[%66, %c0_41, %c0_42] : memref<8x2x32xf32, #tpu.memory_space<vmem>>, vector<1x2x32xf32>
    %68 = vector.shape_cast %67 : vector<1x2x32xf32> to vector<2x32xf32>
    %69 = vector.shape_cast %65 : vector<2x32xf32> to vector<1x2x32xf32>
    tpu.vector_store %arg26[%66, %c0_41, %c0_42], %69 {strides = array<i32>} : memref<8x2x32xf32, #tpu.memory_space<vmem>>, vector<1x2x32xf32>,
    %c1_i32 = arith.constant 1 : i32
    %70 = arith.index_cast %c1_i32 : i32 to index
    %c0_43 = arith.constant 0 : index
    %c0_44 = arith.constant 0 : index
    %71 = vector.load %arg25[%70, %c0_43, %c0_44] : memref<8x2x128xf32, #tpu.memory_space<vmem>>, vector<1x2x128xf32>
    %72 = vector.shape_cast %71 : vector<1x2x128xf32> to vector<2x128xf32>
    %73 = arith.truncf %65 : vector<2x32xf32> to vector<2x32xbf16>
    %cst_45 = arith.constant dense<0.000000e+00> : vector<2x128xf32>
    %74 = tpu.matmul %73, %17, %cst_45 {dimension_numbers = #tpu.dot_dimension_numbers<[1], [0], [0], [1], [0, 0, 1, 1], [], []>} : vector<2x32xbf16>, vector<32x128xbf16>, vector<2x128xf32> -> vector<2x128xf32>
    %75 = arith.addf %72, %74 : vector<2x128xf32>
    %76 = vector.extract_strided_slice %75 {offsets = [0, 0], sizes = [2, 32], strides = [1, 1]} : vector<2x128xf32> to vector<2x32xf32>
    %cst_46 = arith.constant 5.000000e-01 : f32
    %77 = vector.broadcast %cst_46 : f32 to vector<2x32xf32>
    %78 = arith.mulf %77, %76 : vector<2x32xf32>
    %79 = math.tanh %78 : vector<2x32xf32>
    %cst_47 = arith.constant 1.000000e+00 : f32
    %80 = vector.broadcast %cst_47 : f32 to vector<2x32xf32>
    %81 = arith.addf %80, %79 : vector<2x32xf32>
    %cst_48 = arith.constant 5.000000e-01 : f32
    %82 = vector.broadcast %cst_48 : f32 to vector<2x32xf32>
    %83 = arith.mulf %82, %81 : vector<2x32xf32>
    %84 = vector.extract_strided_slice %75 {offsets = [0, 32], sizes = [2, 32], strides = [1, 1]} : vector<2x128xf32> to vector<2x32xf32>
    %cst_49 = arith.constant 5.000000e-01 : f32
    %85 = vector.broadcast %cst_49 : f32 to vector<2x32xf32>
    %86 = arith.mulf %85, %84 : vector<2x32xf32>
    %87 = math.tanh %86 : vector<2x32xf32>
    %cst_50 = arith.constant 1.000000e+00 : f32
    %88 = vector.broadcast %cst_50 : f32 to vector<2x32xf32>
    %89 = arith.addf %88, %87 : vector<2x32xf32>
    %cst_51 = arith.constant 5.000000e-01 : f32
    %90 = vector.broadcast %cst_51 : f32 to vector<2x32xf32>
    %91 = arith.mulf %90, %89 : vector<2x32xf32>
    %92 = vector.extract_strided_slice %75 {offsets = [0, 64], sizes = [2, 32], strides = [1, 1]} : vector<2x128xf32> to vector<2x32xf32>
    %93 = math.tanh %92 : vector<2x32xf32>
    %94 = vector.extract_strided_slice %75 {offsets = [0, 96], sizes = [2, 32], strides = [1, 1]} : vector<2x128xf32> to vector<2x32xf32>
    %cst_52 = arith.constant 5.000000e-01 : f32
    %95 = vector.broadcast %cst_52 : f32 to vector<2x32xf32>
    %96 = arith.mulf %95, %94 : vector<2x32xf32>
    %97 = math.tanh %96 : vector<2x32xf32>
    %cst_53 = arith.constant 1.000000e+00 : f32
    %98 = vector.broadcast %cst_53 : f32 to vector<2x32xf32>
    %99 = arith.addf %98, %97 : vector<2x32xf32>
    %cst_54 = arith.constant 5.000000e-01 : f32
    %100 = vector.broadcast %cst_54 : f32 to vector<2x32xf32>
    %101 = arith.mulf %100, %99 : vector<2x32xf32>
    %102 = arith.mulf %91, %63 : vector<2x32xf32>
    %103 = arith.mulf %83, %93 : vector<2x32xf32>
    %104 = arith.addf %102, %103 : vector<2x32xf32>
    %105 = math.tanh %104 : vector<2x32xf32>
    %106 = arith.mulf %101, %105 : vector<2x32xf32>
    %107 = arith.index_cast %c1_i32 : i32 to index
    %c0_55 = arith.constant 0 : index
    %c0_56 = arith.constant 0 : index
    %108 = vector.load %arg26[%107, %c0_55, %c0_56] : memref<8x2x32xf32, #tpu.memory_space<vmem>>, vector<1x2x32xf32>
    %109 = vector.shape_cast %108 : vector<1x2x32xf32> to vector<2x32xf32>
    %110 = vector.shape_cast %106 : vector<2x32xf32> to vector<1x2x32xf32>
    tpu.vector_store %arg26[%107, %c0_55, %c0_56], %110 {strides = array<i32>} : memref<8x2x32xf32, #tpu.memory_space<vmem>>, vector<1x2x32xf32>,
    %c2_i32 = arith.constant 2 : i32
    %111 = arith.index_cast %c2_i32 : i32 to index
    %c0_57 = arith.constant 0 : index
    %c0_58 = arith.constant 0 : index
    %112 = vector.load %arg25[%111, %c0_57, %c0_58] : memref<8x2x128xf32, #tpu.memory_space<vmem>>, vector<1x2x128xf32>
    %113 = vector.shape_cast %112 : vector<1x2x128xf32> to vector<2x128xf32>
    %114 = arith.truncf %106 : vector<2x32xf32> to vector<2x32xbf16>
    %cst_59 = arith.constant dense<0.000000e+00> : vector<2x128xf32>
    %115 = tpu.matmul %114, %17, %cst_59 {dimension_numbers = #tpu.dot_dimension_numbers<[1], [0], [0], [1], [0, 0, 1, 1], [], []>} : vector<2x32xbf16>, vector<32x128xbf16>, vector<2x128xf32> -> vector<2x128xf32>
    %116 = arith.addf %113, %115 : vector<2x128xf32>
    %117 = vector.extract_strided_slice %116 {offsets = [0, 0], sizes = [2, 32], strides = [1, 1]} : vector<2x128xf32> to vector<2x32xf32>
    %cst_60 = arith.constant 5.000000e-01 : f32
    %118 = vector.broadcast %cst_60 : f32 to vector<2x32xf32>
    %119 = arith.mulf %118, %117 : vector<2x32xf32>
    %120 = math.tanh %119 : vector<2x32xf32>
    %cst_61 = arith.constant 1.000000e+00 : f32
    %121 = vector.broadcast %cst_61 : f32 to vector<2x32xf32>
    %122 = arith.addf %121, %120 : vector<2x32xf32>
    %cst_62 = arith.constant 5.000000e-01 : f32
    %123 = vector.broadcast %cst_62 : f32 to vector<2x32xf32>
    %124 = arith.mulf %123, %122 : vector<2x32xf32>
    %125 = vector.extract_strided_slice %116 {offsets = [0, 32], sizes = [2, 32], strides = [1, 1]} : vector<2x128xf32> to vector<2x32xf32>
    %cst_63 = arith.constant 5.000000e-01 : f32
    %126 = vector.broadcast %cst_63 : f32 to vector<2x32xf32>
    %127 = arith.mulf %126, %125 : vector<2x32xf32>
    %128 = math.tanh %127 : vector<2x32xf32>
    %cst_64 = arith.constant 1.000000e+00 : f32
    %129 = vector.broadcast %cst_64 : f32 to vector<2x32xf32>
    %130 = arith.addf %129, %128 : vector<2x32xf32>
    %cst_65 = arith.constant 5.000000e-01 : f32
    %131 = vector.broadcast %cst_65 : f32 to vector<2x32xf32>
    %132 = arith.mulf %131, %130 : vector<2x32xf32>
    %133 = vector.extract_strided_slice %116 {offsets = [0, 64], sizes = [2, 32], strides = [1, 1]} : vector<2x128xf32> to vector<2x32xf32>
    %134 = math.tanh %133 : vector<2x32xf32>
    %135 = vector.extract_strided_slice %116 {offsets = [0, 96], sizes = [2, 32], strides = [1, 1]} : vector<2x128xf32> to vector<2x32xf32>
    %cst_66 = arith.constant 5.000000e-01 : f32
    %136 = vector.broadcast %cst_66 : f32 to vector<2x32xf32>
    %137 = arith.mulf %136, %135 : vector<2x32xf32>
    %138 = math.tanh %137 : vector<2x32xf32>
    %cst_67 = arith.constant 1.000000e+00 : f32
    %139 = vector.broadcast %cst_67 : f32 to vector<2x32xf32>
    %140 = arith.addf %139, %138 : vector<2x32xf32>
    %cst_68 = arith.constant 5.000000e-01 : f32
    %141 = vector.broadcast %cst_68 : f32 to vector<2x32xf32>
    %142 = arith.mulf %141, %140 : vector<2x32xf32>
    %143 = arith.mulf %132, %104 : vector<2x32xf32>
    %144 = arith.mulf %124, %134 : vector<2x32xf32>
    %145 = arith.addf %143, %144 : vector<2x32xf32>
    %146 = math.tanh %145 : vector<2x32xf32>
    %147 = arith.mulf %142, %146 : vector<2x32xf32>
    %148 = arith.index_cast %c2_i32 : i32 to index
    %c0_69 = arith.constant 0 : index
    %c0_70 = arith.constant 0 : index
    %149 = vector.load %arg26[%148, %c0_69, %c0_70] : memref<8x2x32xf32, #tpu.memory_space<vmem>>, vector<1x2x32xf32>
    %150 = vector.shape_cast %149 : vector<1x2x32xf32> to vector<2x32xf32>
    %151 = vector.shape_cast %147 : vector<2x32xf32> to vector<1x2x32xf32>
    tpu.vector_store %arg26[%148, %c0_69, %c0_70], %151 {strides = array<i32>} : memref<8x2x32xf32, #tpu.memory_space<vmem>>, vector<1x2x32xf32>,
    %c3_i32 = arith.constant 3 : i32
    %152 = arith.index_cast %c3_i32 : i32 to index
    %c0_71 = arith.constant 0 : index
    %c0_72 = arith.constant 0 : index
    %153 = vector.load %arg25[%152, %c0_71, %c0_72] : memref<8x2x128xf32, #tpu.memory_space<vmem>>, vector<1x2x128xf32>
    %154 = vector.shape_cast %153 : vector<1x2x128xf32> to vector<2x128xf32>
    %155 = arith.truncf %147 : vector<2x32xf32> to vector<2x32xbf16>
    %cst_73 = arith.constant dense<0.000000e+00> : vector<2x128xf32>
    %156 = tpu.matmul %155, %17, %cst_73 {dimension_numbers = #tpu.dot_dimension_numbers<[1], [0], [0], [1], [0, 0, 1, 1], [], []>} : vector<2x32xbf16>, vector<32x128xbf16>, vector<2x128xf32> -> vector<2x128xf32>
    %157 = arith.addf %154, %156 : vector<2x128xf32>
    %158 = vector.extract_strided_slice %157 {offsets = [0, 0], sizes = [2, 32], strides = [1, 1]} : vector<2x128xf32> to vector<2x32xf32>
    %cst_74 = arith.constant 5.000000e-01 : f32
    %159 = vector.broadcast %cst_74 : f32 to vector<2x32xf32>
    %160 = arith.mulf %159, %158 : vector<2x32xf32>
    %161 = math.tanh %160 : vector<2x32xf32>
    %cst_75 = arith.constant 1.000000e+00 : f32
    %162 = vector.broadcast %cst_75 : f32 to vector<2x32xf32>
    %163 = arith.addf %162, %161 : vector<2x32xf32>
    %cst_76 = arith.constant 5.000000e-01 : f32
    %164 = vector.broadcast %cst_76 : f32 to vector<2x32xf32>
    %165 = arith.mulf %164, %163 : vector<2x32xf32>
    %166 = vector.extract_strided_slice %157 {offsets = [0, 32], sizes = [2, 32], strides = [1, 1]} : vector<2x128xf32> to vector<2x32xf32>
    %cst_77 = arith.constant 5.000000e-01 : f32
    %167 = vector.broadcast %cst_77 : f32 to vector<2x32xf32>
    %168 = arith.mulf %167, %166 : vector<2x32xf32>
    %169 = math.tanh %168 : vector<2x32xf32>
    %cst_78 = arith.constant 1.000000e+00 : f32
    %170 = vector.broadcast %cst_78 : f32 to vector<2x32xf32>
    %171 = arith.addf %170, %169 : vector<2x32xf32>
    %cst_79 = arith.constant 5.000000e-01 : f32
    %172 = vector.broadcast %cst_79 : f32 to vector<2x32xf32>
    %173 = arith.mulf %172, %171 : vector<2x32xf32>
    %174 = vector.extract_strided_slice %157 {offsets = [0, 64], sizes = [2, 32], strides = [1, 1]} : vector<2x128xf32> to vector<2x32xf32>
    %175 = math.tanh %174 : vector<2x32xf32>
    %176 = vector.extract_strided_slice %157 {offsets = [0, 96], sizes = [2, 32], strides = [1, 1]} : vector<2x128xf32> to vector<2x32xf32>
    %cst_80 = arith.constant 5.000000e-01 : f32
    %177 = vector.broadcast %cst_80 : f32 to vector<2x32xf32>
    %178 = arith.mulf %177, %176 : vector<2x32xf32>
    %179 = math.tanh %178 : vector<2x32xf32>
    %cst_81 = arith.constant 1.000000e+00 : f32
    %180 = vector.broadcast %cst_81 : f32 to vector<2x32xf32>
    %181 = arith.addf %180, %179 : vector<2x32xf32>
    %cst_82 = arith.constant 5.000000e-01 : f32
    %182 = vector.broadcast %cst_82 : f32 to vector<2x32xf32>
    %183 = arith.mulf %182, %181 : vector<2x32xf32>
    %184 = arith.mulf %173, %145 : vector<2x32xf32>
    %185 = arith.mulf %165, %175 : vector<2x32xf32>
    %186 = arith.addf %184, %185 : vector<2x32xf32>
    %187 = math.tanh %186 : vector<2x32xf32>
    %188 = arith.mulf %183, %187 : vector<2x32xf32>
    %189 = arith.index_cast %c3_i32 : i32 to index
    %c0_83 = arith.constant 0 : index
    %c0_84 = arith.constant 0 : index
    %190 = vector.load %arg26[%189, %c0_83, %c0_84] : memref<8x2x32xf32, #tpu.memory_space<vmem>>, vector<1x2x32xf32>
    %191 = vector.shape_cast %190 : vector<1x2x32xf32> to vector<2x32xf32>
    %192 = vector.shape_cast %188 : vector<2x32xf32> to vector<1x2x32xf32>
    tpu.vector_store %arg26[%189, %c0_83, %c0_84], %192 {strides = array<i32>} : memref<8x2x32xf32, #tpu.memory_space<vmem>>, vector<1x2x32xf32>,
    %c4_i32 = arith.constant 4 : i32
    %193 = arith.index_cast %c4_i32 : i32 to index
    %c0_85 = arith.constant 0 : index
    %c0_86 = arith.constant 0 : index
    %194 = vector.load %arg25[%193, %c0_85, %c0_86] : memref<8x2x128xf32, #tpu.memory_space<vmem>>, vector<1x2x128xf32>
    %195 = vector.shape_cast %194 : vector<1x2x128xf32> to vector<2x128xf32>
    %196 = arith.truncf %188 : vector<2x32xf32> to vector<2x32xbf16>
    %cst_87 = arith.constant dense<0.000000e+00> : vector<2x128xf32>
    %197 = tpu.matmul %196, %17, %cst_87 {dimension_numbers = #tpu.dot_dimension_numbers<[1], [0], [0], [1], [0, 0, 1, 1], [], []>} : vector<2x32xbf16>, vector<32x128xbf16>, vector<2x128xf32> -> vector<2x128xf32>
    %198 = arith.addf %195, %197 : vector<2x128xf32>
    %199 = vector.extract_strided_slice %198 {offsets = [0, 0], sizes = [2, 32], strides = [1, 1]} : vector<2x128xf32> to vector<2x32xf32>
    %cst_88 = arith.constant 5.000000e-01 : f32
    %200 = vector.broadcast %cst_88 : f32 to vector<2x32xf32>
    %201 = arith.mulf %200, %199 : vector<2x32xf32>
    %202 = math.tanh %201 : vector<2x32xf32>
    %cst_89 = arith.constant 1.000000e+00 : f32
    %203 = vector.broadcast %cst_89 : f32 to vector<2x32xf32>
    %204 = arith.addf %203, %202 : vector<2x32xf32>
    %cst_90 = arith.constant 5.000000e-01 : f32
    %205 = vector.broadcast %cst_90 : f32 to vector<2x32xf32>
    %206 = arith.mulf %205, %204 : vector<2x32xf32>
    %207 = vector.extract_strided_slice %198 {offsets = [0, 32], sizes = [2, 32], strides = [1, 1]} : vector<2x128xf32> to vector<2x32xf32>
    %cst_91 = arith.constant 5.000000e-01 : f32
    %208 = vector.broadcast %cst_91 : f32 to vector<2x32xf32>
    %209 = arith.mulf %208, %207 : vector<2x32xf32>
    %210 = math.tanh %209 : vector<2x32xf32>
    %cst_92 = arith.constant 1.000000e+00 : f32
    %211 = vector.broadcast %cst_92 : f32 to vector<2x32xf32>
    %212 = arith.addf %211, %210 : vector<2x32xf32>
    %cst_93 = arith.constant 5.000000e-01 : f32
    %213 = vector.broadcast %cst_93 : f32 to vector<2x32xf32>
    %214 = arith.mulf %213, %212 : vector<2x32xf32>
    %215 = vector.extract_strided_slice %198 {offsets = [0, 64], sizes = [2, 32], strides = [1, 1]} : vector<2x128xf32> to vector<2x32xf32>
    %216 = math.tanh %215 : vector<2x32xf32>
    %217 = vector.extract_strided_slice %198 {offsets = [0, 96], sizes = [2, 32], strides = [1, 1]} : vector<2x128xf32> to vector<2x32xf32>
    %cst_94 = arith.constant 5.000000e-01 : f32
    %218 = vector.broadcast %cst_94 : f32 to vector<2x32xf32>
    %219 = arith.mulf %218, %217 : vector<2x32xf32>
    %220 = math.tanh %219 : vector<2x32xf32>
    %cst_95 = arith.constant 1.000000e+00 : f32
    %221 = vector.broadcast %cst_95 : f32 to vector<2x32xf32>
    %222 = arith.addf %221, %220 : vector<2x32xf32>
    %cst_96 = arith.constant 5.000000e-01 : f32
    %223 = vector.broadcast %cst_96 : f32 to vector<2x32xf32>
    %224 = arith.mulf %223, %222 : vector<2x32xf32>
    %225 = arith.mulf %214, %186 : vector<2x32xf32>
    %226 = arith.mulf %206, %216 : vector<2x32xf32>
    %227 = arith.addf %225, %226 : vector<2x32xf32>
    %228 = math.tanh %227 : vector<2x32xf32>
    %229 = arith.mulf %224, %228 : vector<2x32xf32>
    %230 = arith.index_cast %c4_i32 : i32 to index
    %c0_97 = arith.constant 0 : index
    %c0_98 = arith.constant 0 : index
    %231 = vector.load %arg26[%230, %c0_97, %c0_98] : memref<8x2x32xf32, #tpu.memory_space<vmem>>, vector<1x2x32xf32>
    %232 = vector.shape_cast %231 : vector<1x2x32xf32> to vector<2x32xf32>
    %233 = vector.shape_cast %229 : vector<2x32xf32> to vector<1x2x32xf32>
    tpu.vector_store %arg26[%230, %c0_97, %c0_98], %233 {strides = array<i32>} : memref<8x2x32xf32, #tpu.memory_space<vmem>>, vector<1x2x32xf32>,
    %c5_i32 = arith.constant 5 : i32
    %234 = arith.index_cast %c5_i32 : i32 to index
    %c0_99 = arith.constant 0 : index
    %c0_100 = arith.constant 0 : index
    %235 = vector.load %arg25[%234, %c0_99, %c0_100] : memref<8x2x128xf32, #tpu.memory_space<vmem>>, vector<1x2x128xf32>
    %236 = vector.shape_cast %235 : vector<1x2x128xf32> to vector<2x128xf32>
    %237 = arith.truncf %229 : vector<2x32xf32> to vector<2x32xbf16>
    %cst_101 = arith.constant dense<0.000000e+00> : vector<2x128xf32>
    %238 = tpu.matmul %237, %17, %cst_101 {dimension_numbers = #tpu.dot_dimension_numbers<[1], [0], [0], [1], [0, 0, 1, 1], [], []>} : vector<2x32xbf16>, vector<32x128xbf16>, vector<2x128xf32> -> vector<2x128xf32>
    %239 = arith.addf %236, %238 : vector<2x128xf32>
    %240 = vector.extract_strided_slice %239 {offsets = [0, 0], sizes = [2, 32], strides = [1, 1]} : vector<2x128xf32> to vector<2x32xf32>
    %cst_102 = arith.constant 5.000000e-01 : f32
    %241 = vector.broadcast %cst_102 : f32 to vector<2x32xf32>
    %242 = arith.mulf %241, %240 : vector<2x32xf32>
    %243 = math.tanh %242 : vector<2x32xf32>
    %cst_103 = arith.constant 1.000000e+00 : f32
    %244 = vector.broadcast %cst_103 : f32 to vector<2x32xf32>
    %245 = arith.addf %244, %243 : vector<2x32xf32>
    %cst_104 = arith.constant 5.000000e-01 : f32
    %246 = vector.broadcast %cst_104 : f32 to vector<2x32xf32>
    %247 = arith.mulf %246, %245 : vector<2x32xf32>
    %248 = vector.extract_strided_slice %239 {offsets = [0, 32], sizes = [2, 32], strides = [1, 1]} : vector<2x128xf32> to vector<2x32xf32>
    %cst_105 = arith.constant 5.000000e-01 : f32
    %249 = vector.broadcast %cst_105 : f32 to vector<2x32xf32>
    %250 = arith.mulf %249, %248 : vector<2x32xf32>
    %251 = math.tanh %250 : vector<2x32xf32>
    %cst_106 = arith.constant 1.000000e+00 : f32
    %252 = vector.broadcast %cst_106 : f32 to vector<2x32xf32>
    %253 = arith.addf %252, %251 : vector<2x32xf32>
    %cst_107 = arith.constant 5.000000e-01 : f32
    %254 = vector.broadcast %cst_107 : f32 to vector<2x32xf32>
    %255 = arith.mulf %254, %253 : vector<2x32xf32>
    %256 = vector.extract_strided_slice %239 {offsets = [0, 64], sizes = [2, 32], strides = [1, 1]} : vector<2x128xf32> to vector<2x32xf32>
    %257 = math.tanh %256 : vector<2x32xf32>
    %258 = vector.extract_strided_slice %239 {offsets = [0, 96], sizes = [2, 32], strides = [1, 1]} : vector<2x128xf32> to vector<2x32xf32>
    %cst_108 = arith.constant 5.000000e-01 : f32
    %259 = vector.broadcast %cst_108 : f32 to vector<2x32xf32>
    %260 = arith.mulf %259, %258 : vector<2x32xf32>
    %261 = math.tanh %260 : vector<2x32xf32>
    %cst_109 = arith.constant 1.000000e+00 : f32
    %262 = vector.broadcast %cst_109 : f32 to vector<2x32xf32>
    %263 = arith.addf %262, %261 : vector<2x32xf32>
    %cst_110 = arith.constant 5.000000e-01 : f32
    %264 = vector.broadcast %cst_110 : f32 to vector<2x32xf32>
    %265 = arith.mulf %264, %263 : vector<2x32xf32>
    %266 = arith.mulf %255, %227 : vector<2x32xf32>
    %267 = arith.mulf %247, %257 : vector<2x32xf32>
    %268 = arith.addf %266, %267 : vector<2x32xf32>
    %269 = math.tanh %268 : vector<2x32xf32>
    %270 = arith.mulf %265, %269 : vector<2x32xf32>
    %271 = arith.index_cast %c5_i32 : i32 to index
    %c0_111 = arith.constant 0 : index
    %c0_112 = arith.constant 0 : index
    %272 = vector.load %arg26[%271, %c0_111, %c0_112] : memref<8x2x32xf32, #tpu.memory_space<vmem>>, vector<1x2x32xf32>
    %273 = vector.shape_cast %272 : vector<1x2x32xf32> to vector<2x32xf32>
    %274 = vector.shape_cast %270 : vector<2x32xf32> to vector<1x2x32xf32>
    tpu.vector_store %arg26[%271, %c0_111, %c0_112], %274 {strides = array<i32>} : memref<8x2x32xf32, #tpu.memory_space<vmem>>, vector<1x2x32xf32>,
    %c6_i32 = arith.constant 6 : i32
    %275 = arith.index_cast %c6_i32 : i32 to index
    %c0_113 = arith.constant 0 : index
    %c0_114 = arith.constant 0 : index
    %276 = vector.load %arg25[%275, %c0_113, %c0_114] : memref<8x2x128xf32, #tpu.memory_space<vmem>>, vector<1x2x128xf32>
    %277 = vector.shape_cast %276 : vector<1x2x128xf32> to vector<2x128xf32>
    %278 = arith.truncf %270 : vector<2x32xf32> to vector<2x32xbf16>
    %cst_115 = arith.constant dense<0.000000e+00> : vector<2x128xf32>
    %279 = tpu.matmul %278, %17, %cst_115 {dimension_numbers = #tpu.dot_dimension_numbers<[1], [0], [0], [1], [0, 0, 1, 1], [], []>} : vector<2x32xbf16>, vector<32x128xbf16>, vector<2x128xf32> -> vector<2x128xf32>
    %280 = arith.addf %277, %279 : vector<2x128xf32>
    %281 = vector.extract_strided_slice %280 {offsets = [0, 0], sizes = [2, 32], strides = [1, 1]} : vector<2x128xf32> to vector<2x32xf32>
    %cst_116 = arith.constant 5.000000e-01 : f32
    %282 = vector.broadcast %cst_116 : f32 to vector<2x32xf32>
    %283 = arith.mulf %282, %281 : vector<2x32xf32>
    %284 = math.tanh %283 : vector<2x32xf32>
    %cst_117 = arith.constant 1.000000e+00 : f32
    %285 = vector.broadcast %cst_117 : f32 to vector<2x32xf32>
    %286 = arith.addf %285, %284 : vector<2x32xf32>
    %cst_118 = arith.constant 5.000000e-01 : f32
    %287 = vector.broadcast %cst_118 : f32 to vector<2x32xf32>
    %288 = arith.mulf %287, %286 : vector<2x32xf32>
    %289 = vector.extract_strided_slice %280 {offsets = [0, 32], sizes = [2, 32], strides = [1, 1]} : vector<2x128xf32> to vector<2x32xf32>
    %cst_119 = arith.constant 5.000000e-01 : f32
    %290 = vector.broadcast %cst_119 : f32 to vector<2x32xf32>
    %291 = arith.mulf %290, %289 : vector<2x32xf32>
    %292 = math.tanh %291 : vector<2x32xf32>
    %cst_120 = arith.constant 1.000000e+00 : f32
    %293 = vector.broadcast %cst_120 : f32 to vector<2x32xf32>
    %294 = arith.addf %293, %292 : vector<2x32xf32>
    %cst_121 = arith.constant 5.000000e-01 : f32
    %295 = vector.broadcast %cst_121 : f32 to vector<2x32xf32>
    %296 = arith.mulf %295, %294 : vector<2x32xf32>
    %297 = vector.extract_strided_slice %280 {offsets = [0, 64], sizes = [2, 32], strides = [1, 1]} : vector<2x128xf32> to vector<2x32xf32>
    %298 = math.tanh %297 : vector<2x32xf32>
    %299 = vector.extract_strided_slice %280 {offsets = [0, 96], sizes = [2, 32], strides = [1, 1]} : vector<2x128xf32> to vector<2x32xf32>
    %cst_122 = arith.constant 5.000000e-01 : f32
    %300 = vector.broadcast %cst_122 : f32 to vector<2x32xf32>
    %301 = arith.mulf %300, %299 : vector<2x32xf32>
    %302 = math.tanh %301 : vector<2x32xf32>
    %cst_123 = arith.constant 1.000000e+00 : f32
    %303 = vector.broadcast %cst_123 : f32 to vector<2x32xf32>
    %304 = arith.addf %303, %302 : vector<2x32xf32>
    %cst_124 = arith.constant 5.000000e-01 : f32
    %305 = vector.broadcast %cst_124 : f32 to vector<2x32xf32>
    %306 = arith.mulf %305, %304 : vector<2x32xf32>
    %307 = arith.mulf %296, %268 : vector<2x32xf32>
    %308 = arith.mulf %288, %298 : vector<2x32xf32>
    %309 = arith.addf %307, %308 : vector<2x32xf32>
    %310 = math.tanh %309 : vector<2x32xf32>
    %311 = arith.mulf %306, %310 : vector<2x32xf32>
    %312 = arith.index_cast %c6_i32 : i32 to index
    %c0_125 = arith.constant 0 : index
    %c0_126 = arith.constant 0 : index
    %313 = vector.load %arg26[%312, %c0_125, %c0_126] : memref<8x2x32xf32, #tpu.memory_space<vmem>>, vector<1x2x32xf32>
    %314 = vector.shape_cast %313 : vector<1x2x32xf32> to vector<2x32xf32>
    %315 = vector.shape_cast %311 : vector<2x32xf32> to vector<1x2x32xf32>
    tpu.vector_store %arg26[%312, %c0_125, %c0_126], %315 {strides = array<i32>} : memref<8x2x32xf32, #tpu.memory_space<vmem>>, vector<1x2x32xf32>,
    %c7_i32 = arith.constant 7 : i32
    %316 = arith.index_cast %c7_i32 : i32 to index
    %c0_127 = arith.constant 0 : index
    %c0_128 = arith.constant 0 : index
    %317 = vector.load %arg25[%316, %c0_127, %c0_128] : memref<8x2x128xf32, #tpu.memory_space<vmem>>, vector<1x2x128xf32>
    %318 = vector.shape_cast %317 : vector<1x2x128xf32> to vector<2x128xf32>
    %319 = arith.truncf %311 : vector<2x32xf32> to vector<2x32xbf16>
    %cst_129 = arith.constant dense<0.000000e+00> : vector<2x128xf32>
    %320 = tpu.matmul %319, %17, %cst_129 {dimension_numbers = #tpu.dot_dimension_numbers<[1], [0], [0], [1], [0, 0, 1, 1], [], []>} : vector<2x32xbf16>, vector<32x128xbf16>, vector<2x128xf32> -> vector<2x128xf32>
    %321 = arith.addf %318, %320 : vector<2x128xf32>
    %322 = vector.extract_strided_slice %321 {offsets = [0, 0], sizes = [2, 32], strides = [1, 1]} : vector<2x128xf32> to vector<2x32xf32>
    %cst_130 = arith.constant 5.000000e-01 : f32
    %323 = vector.broadcast %cst_130 : f32 to vector<2x32xf32>
    %324 = arith.mulf %323, %322 : vector<2x32xf32>
    %325 = math.tanh %324 : vector<2x32xf32>
    %cst_131 = arith.constant 1.000000e+00 : f32
    %326 = vector.broadcast %cst_131 : f32 to vector<2x32xf32>
    %327 = arith.addf %326, %325 : vector<2x32xf32>
    %cst_132 = arith.constant 5.000000e-01 : f32
    %328 = vector.broadcast %cst_132 : f32 to vector<2x32xf32>
    %329 = arith.mulf %328, %327 : vector<2x32xf32>
    %330 = vector.extract_strided_slice %321 {offsets = [0, 32], sizes = [2, 32], strides = [1, 1]} : vector<2x128xf32> to vector<2x32xf32>
    %cst_133 = arith.constant 5.000000e-01 : f32
    %331 = vector.broadcast %cst_133 : f32 to vector<2x32xf32>
    %332 = arith.mulf %331, %330 : vector<2x32xf32>
    %333 = math.tanh %332 : vector<2x32xf32>
    %cst_134 = arith.constant 1.000000e+00 : f32
    %334 = vector.broadcast %cst_134 : f32 to vector<2x32xf32>
    %335 = arith.addf %334, %333 : vector<2x32xf32>
    %cst_135 = arith.constant 5.000000e-01 : f32
    %336 = vector.broadcast %cst_135 : f32 to vector<2x32xf32>
    %337 = arith.mulf %336, %335 : vector<2x32xf32>
    %338 = vector.extract_strided_slice %321 {offsets = [0, 64], sizes = [2, 32], strides = [1, 1]} : vector<2x128xf32> to vector<2x32xf32>
    %339 = math.tanh %338 : vector<2x32xf32>
    %340 = vector.extract_strided_slice %321 {offsets = [0, 96], sizes = [2, 32], strides = [1, 1]} : vector<2x128xf32> to vector<2x32xf32>
    %cst_136 = arith.constant 5.000000e-01 : f32
    %341 = vector.broadcast %cst_136 : f32 to vector<2x32xf32>
    %342 = arith.mulf %341, %340 : vector<2x32xf32>
    %343 = math.tanh %342 : vector<2x32xf32>
    %cst_137 = arith.constant 1.000000e+00 : f32
    %344 = vector.broadcast %cst_137 : f32 to vector<2x32xf32>
    %345 = arith.addf %344, %343 : vector<2x32xf32>
    %cst_138 = arith.constant 5.000000e-01 : f32
    %346 = vector.broadcast %cst_138 : f32 to vector<2x32xf32>
    %347 = arith.mulf %346, %345 : vector<2x32xf32>
    %348 = arith.mulf %337, %309 : vector<2x32xf32>
    %349 = arith.mulf %329, %339 : vector<2x32xf32>
    %350 = arith.addf %348, %349 : vector<2x32xf32>
    %351 = math.tanh %350 : vector<2x32xf32>
    %352 = arith.mulf %347, %351 : vector<2x32xf32>
    %353 = arith.index_cast %c7_i32 : i32 to index
    %c0_139 = arith.constant 0 : index
    %c0_140 = arith.constant 0 : index
    %354 = vector.load %arg26[%353, %c0_139, %c0_140] : memref<8x2x32xf32, #tpu.memory_space<vmem>>, vector<1x2x32xf32>
    %355 = vector.shape_cast %354 : vector<1x2x32xf32> to vector<2x32xf32>
    %356 = vector.shape_cast %352 : vector<2x32xf32> to vector<1x2x32xf32>
    tpu.vector_store %arg26[%353, %c0_139, %c0_140], %356 {strides = array<i32>} : memref<8x2x32xf32, #tpu.memory_space<vmem>>, vector<1x2x32xf32>,
    %c8_i32 = arith.constant 8 : i32
    %c0_141 = arith.constant 0 : index
    %c0_142 = arith.constant 0 : index
    %c0_143 = arith.constant 0 : index
    %357 = vector.load %arg26[%c0_141, %c0_142, %c0_143] : memref<8x2x32xf32, #tpu.memory_space<vmem>>, vector<8x2x32xf32>
    %358 = vector.shape_cast %357 : vector<8x2x32xf32> to vector<16x32xf32>
    %359 = arith.truncf %358 : vector<16x32xf32> to vector<16x32xbf16>
    %c0_144 = arith.constant 0 : index
    %c0_145 = arith.constant 0 : index
    %c0_146 = arith.constant 0 : index
    %360 = vector.load %arg8[%c0_144, %c0_145, %c0_146] : memref<2x32x96xbf16, #tpu.memory_space<vmem>>, vector<1x32x96xbf16>
    %361 = vector.shape_cast %360 : vector<1x32x96xbf16> to vector<32x96xbf16>
    %cst_147 = arith.constant dense<0.000000e+00> : vector<16x96xf32>
    %362 = tpu.matmul %359, %361, %cst_147 {dimension_numbers = #tpu.dot_dimension_numbers<[1], [0], [0], [1], [0, 0, 1, 1], [], []>} : vector<16x32xbf16>, vector<32x96xbf16>, vector<16x96xf32> -> vector<16x96xf32>
    %c0_148 = arith.constant 0 : index
    %c0_149 = arith.constant 0 : index
    %c0_150 = arith.constant 0 : index
    %363 = vector.load %arg9[%c0_148, %c0_149, %c0_150] : memref<2x1x96xf32, #tpu.memory_space<vmem>>, vector<1x1x96xf32>
    %364 = vector.shape_cast %363 : vector<1x1x96xf32> to vector<1x96xf32>
    %365 = vector.broadcast %364 : vector<1x96xf32> to vector<16x96xf32>
    %366 = arith.addf %362, %365 : vector<16x96xf32>
    %cst_151 = arith.constant 5.000000e-01 : f32
    %367 = vector.broadcast %cst_151 : f32 to vector<16x96xf32>
    %368 = arith.mulf %367, %366 : vector<16x96xf32>
    %369 = arith.mulf %366, %366 : vector<16x96xf32>
    %370 = arith.mulf %369, %366 : vector<16x96xf32>
    %cst_152 = arith.constant 4.471500e-02 : f32
    %371 = vector.broadcast %cst_152 : f32 to vector<16x96xf32>
    %372 = arith.mulf %371, %370 : vector<16x96xf32>
    %373 = arith.addf %366, %372 : vector<16x96xf32>
    %cst_153 = arith.constant 0.797884583 : f32
    %374 = vector.broadcast %cst_153 : f32 to vector<16x96xf32>
    %375 = arith.mulf %374, %373 : vector<16x96xf32>
    %376 = math.tanh %375 : vector<16x96xf32>
    %cst_154 = arith.constant 1.000000e+00 : f32
    %377 = vector.broadcast %cst_154 : f32 to vector<16x96xf32>
    %378 = arith.addf %377, %376 : vector<16x96xf32>
    %379 = arith.mulf %368, %378 : vector<16x96xf32>
    %380 = arith.truncf %379 : vector<16x96xf32> to vector<16x96xbf16>
    %c0_155 = arith.constant 0 : index
    %c0_156 = arith.constant 0 : index
    %c0_157 = arith.constant 0 : index
    %381 = vector.load %arg10[%c0_155, %c0_156, %c0_157] : memref<2x96x96xbf16, #tpu.memory_space<vmem>>, vector<1x96x96xbf16>
    %382 = vector.shape_cast %381 : vector<1x96x96xbf16> to vector<96x96xbf16>
    %cst_158 = arith.constant dense<0.000000e+00> : vector<16x96xf32>
    %383 = tpu.matmul %380, %382, %cst_158 {dimension_numbers = #tpu.dot_dimension_numbers<[1], [0], [0], [1], [0, 0, 1, 1], [], []>} : vector<16x96xbf16>, vector<96x96xbf16>, vector<16x96xf32> -> vector<16x96xf32>
    %c0_159 = arith.constant 0 : index
    %c0_160 = arith.constant 0 : index
    %c0_161 = arith.constant 0 : index
    %384 = vector.load %arg11[%c0_159, %c0_160, %c0_161] : memref<2x1x96xf32, #tpu.memory_space<vmem>>, vector<1x1x96xf32>
    %385 = vector.shape_cast %384 : vector<1x1x96xf32> to vector<1x96xf32>
    %386 = vector.broadcast %385 : vector<1x96xf32> to vector<16x96xf32>
    %387 = arith.addf %383, %386 : vector<16x96xf32>
    %388 = vector.extract_strided_slice %387 {offsets = [0, 0], sizes = [16, 32], strides = [1, 1]} : vector<16x96xf32> to vector<16x32xf32>
    %389 = arith.subf %15, %388 : vector<16x32xf32>
    %c0_162 = arith.constant 0 : index
    %c0_163 = arith.constant 0 : index
    %390 = vector.load %arg22[%c0_162, %c0_163] : memref<16x32xf32, #tpu.memory_space<vmem>>, vector<16x32xf32>
    tpu.vector_store %arg22[%c0_162, %c0_163], %389 {strides = array<i32>} : memref<16x32xf32, #tpu.memory_space<vmem>>, vector<16x32xf32>,
    %c0_164 = arith.constant 0 : index
    %c0_165 = arith.constant 0 : index
    %391 = vector.load %arg23[%c0_164, %c0_165] : memref<16x32xf32, #tpu.memory_space<vmem>>, vector<16x32xf32>
    %392 = vector.extract_strided_slice %387 {offsets = [0, 32], sizes = [16, 32], strides = [1, 1]} : vector<16x96xf32> to vector<16x32xf32>
    %393 = arith.addf %391, %392 : vector<16x32xf32>
    %c0_166 = arith.constant 0 : index
    %c0_167 = arith.constant 0 : index
    %394 = vector.load %arg23[%c0_166, %c0_167] : memref<16x32xf32, #tpu.memory_space<vmem>>, vector<16x32xf32>
    tpu.vector_store %arg23[%c0_166, %c0_167], %393 {strides = array<i32>} : memref<16x32xf32, #tpu.memory_space<vmem>>, vector<16x32xf32>,
    %c0_168 = arith.constant 0 : index
    %c0_169 = arith.constant 0 : index
    %395 = vector.load %arg24[%c0_168, %c0_169] : memref<16x32xf32, #tpu.memory_space<vmem>>, vector<16x32xf32>
    %396 = vector.extract_strided_slice %387 {offsets = [0, 64], sizes = [16, 32], strides = [1, 1]} : vector<16x96xf32> to vector<16x32xf32>
    %397 = arith.addf %395, %396 : vector<16x32xf32>
    %c0_170 = arith.constant 0 : index
    %c0_171 = arith.constant 0 : index
    %398 = vector.load %arg24[%c0_170, %c0_171] : memref<16x32xf32, #tpu.memory_space<vmem>>, vector<16x32xf32>
    tpu.vector_store %arg24[%c0_170, %c0_171], %397 {strides = array<i32>} : memref<16x32xf32, #tpu.memory_space<vmem>>, vector<16x32xf32>,
    %c0_172 = arith.constant 0 : index
    %c0_173 = arith.constant 0 : index
    %399 = vector.load %arg22[%c0_172, %c0_173] : memref<16x32xf32, #tpu.memory_space<vmem>>, vector<16x32xf32>
    %c1 = arith.constant 1 : index
    %c0_174 = arith.constant 0 : index
    %c0_175 = arith.constant 0 : index
    %400 = vector.load %arg6[%c1, %c0_174, %c0_175] : memref<2x32x128xbf16, #tpu.memory_space<vmem>>, vector<1x32x128xbf16>
    %401 = vector.shape_cast %400 : vector<1x32x128xbf16> to vector<32x128xbf16>
    %402 = arith.truncf %399 : vector<16x32xf32> to vector<16x32xbf16>
    %c1_176 = arith.constant 1 : index
    %c0_177 = arith.constant 0 : index
    %c0_178 = arith.constant 0 : index
    %403 = vector.load %arg5[%c1_176, %c0_177, %c0_178] : memref<2x32x128xbf16, #tpu.memory_space<vmem>>, vector<1x32x128xbf16>
    %404 = vector.shape_cast %403 : vector<1x32x128xbf16> to vector<32x128xbf16>
    %cst_179 = arith.constant dense<0.000000e+00> : vector<16x128xf32>
    %405 = tpu.matmul %402, %404, %cst_179 {dimension_numbers = #tpu.dot_dimension_numbers<[1], [0], [0], [1], [0, 0, 1, 1], [], []>} : vector<16x32xbf16>, vector<32x128xbf16>, vector<16x128xf32> -> vector<16x128xf32>
    %c1_180 = arith.constant 1 : index
    %c0_181 = arith.constant 0 : index
    %c0_182 = arith.constant 0 : index
    %406 = vector.load %arg7[%c1_180, %c0_181, %c0_182] : memref<2x1x128xf32, #tpu.memory_space<vmem>>, vector<1x1x128xf32>
    %407 = vector.shape_cast %406 : vector<1x1x128xf32> to vector<1x128xf32>
    %408 = vector.broadcast %407 : vector<1x128xf32> to vector<16x128xf32>
    %409 = arith.addf %405, %408 : vector<16x128xf32>
    %410 = vector.shape_cast %409 : vector<16x128xf32> to vector<8x2x128xf32>
    %c0_183 = arith.constant 0 : index
    %c0_184 = arith.constant 0 : index
    %c0_185 = arith.constant 0 : index
    %411 = vector.load %arg25[%c0_183, %c0_184, %c0_185] : memref<8x2x128xf32, #tpu.memory_space<vmem>>, vector<8x2x128xf32>
    tpu.vector_store %arg25[%c0_183, %c0_184, %c0_185], %410 {strides = array<i32>} : memref<8x2x128xf32, #tpu.memory_space<vmem>>, vector<8x2x128xf32>,
    %cst_186 = arith.constant 0.000000e+00 : f32
    %412 = vector.broadcast %cst_186 : f32 to vector<2x32xf32>
    %c0_i32_187 = arith.constant 0 : i32
    %413 = arith.index_cast %c0_i32_187 : i32 to index
    %c0_188 = arith.constant 0 : index
    %c0_189 = arith.constant 0 : index
    %414 = vector.load %arg25[%413, %c0_188, %c0_189] : memref<8x2x128xf32, #tpu.memory_space<vmem>>, vector<1x2x128xf32>
    %415 = vector.shape_cast %414 : vector<1x2x128xf32> to vector<2x128xf32>
    %416 = arith.truncf %412 : vector<2x32xf32> to vector<2x32xbf16>
    %cst_190 = arith.constant dense<0.000000e+00> : vector<2x128xf32>
    %417 = tpu.matmul %416, %401, %cst_190 {dimension_numbers = #tpu.dot_dimension_numbers<[1], [0], [0], [1], [0, 0, 1, 1], [], []>} : vector<2x32xbf16>, vector<32x128xbf16>, vector<2x128xf32> -> vector<2x128xf32>
    %418 = arith.addf %415, %417 : vector<2x128xf32>
    %419 = vector.extract_strided_slice %418 {offsets = [0, 0], sizes = [2, 32], strides = [1, 1]} : vector<2x128xf32> to vector<2x32xf32>
    %cst_191 = arith.constant 5.000000e-01 : f32
    %420 = vector.broadcast %cst_191 : f32 to vector<2x32xf32>
    %421 = arith.mulf %420, %419 : vector<2x32xf32>
    %422 = math.tanh %421 : vector<2x32xf32>
    %cst_192 = arith.constant 1.000000e+00 : f32
    %423 = vector.broadcast %cst_192 : f32 to vector<2x32xf32>
    %424 = arith.addf %423, %422 : vector<2x32xf32>
    %cst_193 = arith.constant 5.000000e-01 : f32
    %425 = vector.broadcast %cst_193 : f32 to vector<2x32xf32>
    %426 = arith.mulf %425, %424 : vector<2x32xf32>
    %427 = vector.extract_strided_slice %418 {offsets = [0, 32], sizes = [2, 32], strides = [1, 1]} : vector<2x128xf32> to vector<2x32xf32>
    %cst_194 = arith.constant 5.000000e-01 : f32
    %428 = vector.broadcast %cst_194 : f32 to vector<2x32xf32>
    %429 = arith.mulf %428, %427 : vector<2x32xf32>
    %430 = math.tanh %429 : vector<2x32xf32>
    %cst_195 = arith.constant 1.000000e+00 : f32
    %431 = vector.broadcast %cst_195 : f32 to vector<2x32xf32>
    %432 = arith.addf %431, %430 : vector<2x32xf32>
    %cst_196 = arith.constant 5.000000e-01 : f32
    %433 = vector.broadcast %cst_196 : f32 to vector<2x32xf32>
    %434 = arith.mulf %433, %432 : vector<2x32xf32>
    %435 = vector.extract_strided_slice %418 {offsets = [0, 64], sizes = [2, 32], strides = [1, 1]} : vector<2x128xf32> to vector<2x32xf32>
    %436 = math.tanh %435 : vector<2x32xf32>
    %437 = vector.extract_strided_slice %418 {offsets = [0, 96], sizes = [2, 32], strides = [1, 1]} : vector<2x128xf32> to vector<2x32xf32>
    %cst_197 = arith.constant 5.000000e-01 : f32
    %438 = vector.broadcast %cst_197 : f32 to vector<2x32xf32>
    %439 = arith.mulf %438, %437 : vector<2x32xf32>
    %440 = math.tanh %439 : vector<2x32xf32>
    %cst_198 = arith.constant 1.000000e+00 : f32
    %441 = vector.broadcast %cst_198 : f32 to vector<2x32xf32>
    %442 = arith.addf %441, %440 : vector<2x32xf32>
    %cst_199 = arith.constant 5.000000e-01 : f32
    %443 = vector.broadcast %cst_199 : f32 to vector<2x32xf32>
    %444 = arith.mulf %443, %442 : vector<2x32xf32>
    %445 = arith.mulf %434, %412 : vector<2x32xf32>
    %446 = arith.mulf %426, %436 : vector<2x32xf32>
    %447 = arith.addf %445, %446 : vector<2x32xf32>
    %448 = math.tanh %447 : vector<2x32xf32>
    %449 = arith.mulf %444, %448 : vector<2x32xf32>
    %450 = arith.index_cast %c0_i32_187 : i32 to index
    %c0_200 = arith.constant 0 : index
    %c0_201 = arith.constant 0 : index
    %451 = vector.load %arg26[%450, %c0_200, %c0_201] : memref<8x2x32xf32, #tpu.memory_space<vmem>>, vector<1x2x32xf32>
    %452 = vector.shape_cast %451 : vector<1x2x32xf32> to vector<2x32xf32>
    %453 = vector.shape_cast %449 : vector<2x32xf32> to vector<1x2x32xf32>
    tpu.vector_store %arg26[%450, %c0_200, %c0_201], %453 {strides = array<i32>} : memref<8x2x32xf32, #tpu.memory_space<vmem>>, vector<1x2x32xf32>,
    %c1_i32_202 = arith.constant 1 : i32
    %454 = arith.index_cast %c1_i32_202 : i32 to index
    %c0_203 = arith.constant 0 : index
    %c0_204 = arith.constant 0 : index
    %455 = vector.load %arg25[%454, %c0_203, %c0_204] : memref<8x2x128xf32, #tpu.memory_space<vmem>>, vector<1x2x128xf32>
    %456 = vector.shape_cast %455 : vector<1x2x128xf32> to vector<2x128xf32>
    %457 = arith.truncf %449 : vector<2x32xf32> to vector<2x32xbf16>
    %cst_205 = arith.constant dense<0.000000e+00> : vector<2x128xf32>
    %458 = tpu.matmul %457, %401, %cst_205 {dimension_numbers = #tpu.dot_dimension_numbers<[1], [0], [0], [1], [0, 0, 1, 1], [], []>} : vector<2x32xbf16>, vector<32x128xbf16>, vector<2x128xf32> -> vector<2x128xf32>
    %459 = arith.addf %456, %458 : vector<2x128xf32>
    %460 = vector.extract_strided_slice %459 {offsets = [0, 0], sizes = [2, 32], strides = [1, 1]} : vector<2x128xf32> to vector<2x32xf32>
    %cst_206 = arith.constant 5.000000e-01 : f32
    %461 = vector.broadcast %cst_206 : f32 to vector<2x32xf32>
    %462 = arith.mulf %461, %460 : vector<2x32xf32>
    %463 = math.tanh %462 : vector<2x32xf32>
    %cst_207 = arith.constant 1.000000e+00 : f32
    %464 = vector.broadcast %cst_207 : f32 to vector<2x32xf32>
    %465 = arith.addf %464, %463 : vector<2x32xf32>
    %cst_208 = arith.constant 5.000000e-01 : f32
    %466 = vector.broadcast %cst_208 : f32 to vector<2x32xf32>
    %467 = arith.mulf %466, %465 : vector<2x32xf32>
    %468 = vector.extract_strided_slice %459 {offsets = [0, 32], sizes = [2, 32], strides = [1, 1]} : vector<2x128xf32> to vector<2x32xf32>
    %cst_209 = arith.constant 5.000000e-01 : f32
    %469 = vector.broadcast %cst_209 : f32 to vector<2x32xf32>
    %470 = arith.mulf %469, %468 : vector<2x32xf32>
    %471 = math.tanh %470 : vector<2x32xf32>
    %cst_210 = arith.constant 1.000000e+00 : f32
    %472 = vector.broadcast %cst_210 : f32 to vector<2x32xf32>
    %473 = arith.addf %472, %471 : vector<2x32xf32>
    %cst_211 = arith.constant 5.000000e-01 : f32
    %474 = vector.broadcast %cst_211 : f32 to vector<2x32xf32>
    %475 = arith.mulf %474, %473 : vector<2x32xf32>
    %476 = vector.extract_strided_slice %459 {offsets = [0, 64], sizes = [2, 32], strides = [1, 1]} : vector<2x128xf32> to vector<2x32xf32>
    %477 = math.tanh %476 : vector<2x32xf32>
    %478 = vector.extract_strided_slice %459 {offsets = [0, 96], sizes = [2, 32], strides = [1, 1]} : vector<2x128xf32> to vector<2x32xf32>
    %cst_212 = arith.constant 5.000000e-01 : f32
    %479 = vector.broadcast %cst_212 : f32 to vector<2x32xf32>
    %480 = arith.mulf %479, %478 : vector<2x32xf32>
    %481 = math.tanh %480 : vector<2x32xf32>
    %cst_213 = arith.constant 1.000000e+00 : f32
    %482 = vector.broadcast %cst_213 : f32 to vector<2x32xf32>
    %483 = arith.addf %482, %481 : vector<2x32xf32>
    %cst_214 = arith.constant 5.000000e-01 : f32
    %484 = vector.broadcast %cst_214 : f32 to vector<2x32xf32>
    %485 = arith.mulf %484, %483 : vector<2x32xf32>
    %486 = arith.mulf %475, %447 : vector<2x32xf32>
    %487 = arith.mulf %467, %477 : vector<2x32xf32>
    %488 = arith.addf %486, %487 : vector<2x32xf32>
    %489 = math.tanh %488 : vector<2x32xf32>
    %490 = arith.mulf %485, %489 : vector<2x32xf32>
    %491 = arith.index_cast %c1_i32_202 : i32 to index
    %c0_215 = arith.constant 0 : index
    %c0_216 = arith.constant 0 : index
    %492 = vector.load %arg26[%491, %c0_215, %c0_216] : memref<8x2x32xf32, #tpu.memory_space<vmem>>, vector<1x2x32xf32>
    %493 = vector.shape_cast %492 : vector<1x2x32xf32> to vector<2x32xf32>
    %494 = vector.shape_cast %490 : vector<2x32xf32> to vector<1x2x32xf32>
    tpu.vector_store %arg26[%491, %c0_215, %c0_216], %494 {strides = array<i32>} : memref<8x2x32xf32, #tpu.memory_space<vmem>>, vector<1x2x32xf32>,
    %c2_i32_217 = arith.constant 2 : i32
    %495 = arith.index_cast %c2_i32_217 : i32 to index
    %c0_218 = arith.constant 0 : index
    %c0_219 = arith.constant 0 : index
    %496 = vector.load %arg25[%495, %c0_218, %c0_219] : memref<8x2x128xf32, #tpu.memory_space<vmem>>, vector<1x2x128xf32>
    %497 = vector.shape_cast %496 : vector<1x2x128xf32> to vector<2x128xf32>
    %498 = arith.truncf %490 : vector<2x32xf32> to vector<2x32xbf16>
    %cst_220 = arith.constant dense<0.000000e+00> : vector<2x128xf32>
    %499 = tpu.matmul %498, %401, %cst_220 {dimension_numbers = #tpu.dot_dimension_numbers<[1], [0], [0], [1], [0, 0, 1, 1], [], []>} : vector<2x32xbf16>, vector<32x128xbf16>, vector<2x128xf32> -> vector<2x128xf32>
    %500 = arith.addf %497, %499 : vector<2x128xf32>
    %501 = vector.extract_strided_slice %500 {offsets = [0, 0], sizes = [2, 32], strides = [1, 1]} : vector<2x128xf32> to vector<2x32xf32>
    %cst_221 = arith.constant 5.000000e-01 : f32
    %502 = vector.broadcast %cst_221 : f32 to vector<2x32xf32>
    %503 = arith.mulf %502, %501 : vector<2x32xf32>
    %504 = math.tanh %503 : vector<2x32xf32>
    %cst_222 = arith.constant 1.000000e+00 : f32
    %505 = vector.broadcast %cst_222 : f32 to vector<2x32xf32>
    %506 = arith.addf %505, %504 : vector<2x32xf32>
    %cst_223 = arith.constant 5.000000e-01 : f32
    %507 = vector.broadcast %cst_223 : f32 to vector<2x32xf32>
    %508 = arith.mulf %507, %506 : vector<2x32xf32>
    %509 = vector.extract_strided_slice %500 {offsets = [0, 32], sizes = [2, 32], strides = [1, 1]} : vector<2x128xf32> to vector<2x32xf32>
    %cst_224 = arith.constant 5.000000e-01 : f32
    %510 = vector.broadcast %cst_224 : f32 to vector<2x32xf32>
    %511 = arith.mulf %510, %509 : vector<2x32xf32>
    %512 = math.tanh %511 : vector<2x32xf32>
    %cst_225 = arith.constant 1.000000e+00 : f32
    %513 = vector.broadcast %cst_225 : f32 to vector<2x32xf32>
    %514 = arith.addf %513, %512 : vector<2x32xf32>
    %cst_226 = arith.constant 5.000000e-01 : f32
    %515 = vector.broadcast %cst_226 : f32 to vector<2x32xf32>
    %516 = arith.mulf %515, %514 : vector<2x32xf32>
    %517 = vector.extract_strided_slice %500 {offsets = [0, 64], sizes = [2, 32], strides = [1, 1]} : vector<2x128xf32> to vector<2x32xf32>
    %518 = math.tanh %517 : vector<2x32xf32>
    %519 = vector.extract_strided_slice %500 {offsets = [0, 96], sizes = [2, 32], strides = [1, 1]} : vector<2x128xf32> to vector<2x32xf32>
    %cst_227 = arith.constant 5.000000e-01 : f32
    %520 = vector.broadcast %cst_227 : f32 to vector<2x32xf32>
    %521 = arith.mulf %520, %519 : vector<2x32xf32>
    %522 = math.tanh %521 : vector<2x32xf32>
    %cst_228 = arith.constant 1.000000e+00 : f32
    %523 = vector.broadcast %cst_228 : f32 to vector<2x32xf32>
    %524 = arith.addf %523, %522 : vector<2x32xf32>
    %cst_229 = arith.constant 5.000000e-01 : f32
    %525 = vector.broadcast %cst_229 : f32 to vector<2x32xf32>
    %526 = arith.mulf %525, %524 : vector<2x32xf32>
    %527 = arith.mulf %516, %488 : vector<2x32xf32>
    %528 = arith.mulf %508, %518 : vector<2x32xf32>
    %529 = arith.addf %527, %528 : vector<2x32xf32>
    %530 = math.tanh %529 : vector<2x32xf32>
    %531 = arith.mulf %526, %530 : vector<2x32xf32>
    %532 = arith.index_cast %c2_i32_217 : i32 to index
    %c0_230 = arith.constant 0 : index
    %c0_231 = arith.constant 0 : index
    %533 = vector.load %arg26[%532, %c0_230, %c0_231] : memref<8x2x32xf32, #tpu.memory_space<vmem>>, vector<1x2x32xf32>
    %534 = vector.shape_cast %533 : vector<1x2x32xf32> to vector<2x32xf32>
    %535 = vector.shape_cast %531 : vector<2x32xf32> to vector<1x2x32xf32>
    tpu.vector_store %arg26[%532, %c0_230, %c0_231], %535 {strides = array<i32>} : memref<8x2x32xf32, #tpu.memory_space<vmem>>, vector<1x2x32xf32>,
    %c3_i32_232 = arith.constant 3 : i32
    %536 = arith.index_cast %c3_i32_232 : i32 to index
    %c0_233 = arith.constant 0 : index
    %c0_234 = arith.constant 0 : index
    %537 = vector.load %arg25[%536, %c0_233, %c0_234] : memref<8x2x128xf32, #tpu.memory_space<vmem>>, vector<1x2x128xf32>
    %538 = vector.shape_cast %537 : vector<1x2x128xf32> to vector<2x128xf32>
    %539 = arith.truncf %531 : vector<2x32xf32> to vector<2x32xbf16>
    %cst_235 = arith.constant dense<0.000000e+00> : vector<2x128xf32>
    %540 = tpu.matmul %539, %401, %cst_235 {dimension_numbers = #tpu.dot_dimension_numbers<[1], [0], [0], [1], [0, 0, 1, 1], [], []>} : vector<2x32xbf16>, vector<32x128xbf16>, vector<2x128xf32> -> vector<2x128xf32>
    %541 = arith.addf %538, %540 : vector<2x128xf32>
    %542 = vector.extract_strided_slice %541 {offsets = [0, 0], sizes = [2, 32], strides = [1, 1]} : vector<2x128xf32> to vector<2x32xf32>
    %cst_236 = arith.constant 5.000000e-01 : f32
    %543 = vector.broadcast %cst_236 : f32 to vector<2x32xf32>
    %544 = arith.mulf %543, %542 : vector<2x32xf32>
    %545 = math.tanh %544 : vector<2x32xf32>
    %cst_237 = arith.constant 1.000000e+00 : f32
    %546 = vector.broadcast %cst_237 : f32 to vector<2x32xf32>
    %547 = arith.addf %546, %545 : vector<2x32xf32>
    %cst_238 = arith.constant 5.000000e-01 : f32
    %548 = vector.broadcast %cst_238 : f32 to vector<2x32xf32>
    %549 = arith.mulf %548, %547 : vector<2x32xf32>
    %550 = vector.extract_strided_slice %541 {offsets = [0, 32], sizes = [2, 32], strides = [1, 1]} : vector<2x128xf32> to vector<2x32xf32>
    %cst_239 = arith.constant 5.000000e-01 : f32
    %551 = vector.broadcast %cst_239 : f32 to vector<2x32xf32>
    %552 = arith.mulf %551, %550 : vector<2x32xf32>
    %553 = math.tanh %552 : vector<2x32xf32>
    %cst_240 = arith.constant 1.000000e+00 : f32
    %554 = vector.broadcast %cst_240 : f32 to vector<2x32xf32>
    %555 = arith.addf %554, %553 : vector<2x32xf32>
    %cst_241 = arith.constant 5.000000e-01 : f32
    %556 = vector.broadcast %cst_241 : f32 to vector<2x32xf32>
    %557 = arith.mulf %556, %555 : vector<2x32xf32>
    %558 = vector.extract_strided_slice %541 {offsets = [0, 64], sizes = [2, 32], strides = [1, 1]} : vector<2x128xf32> to vector<2x32xf32>
    %559 = math.tanh %558 : vector<2x32xf32>
    %560 = vector.extract_strided_slice %541 {offsets = [0, 96], sizes = [2, 32], strides = [1, 1]} : vector<2x128xf32> to vector<2x32xf32>
    %cst_242 = arith.constant 5.000000e-01 : f32
    %561 = vector.broadcast %cst_242 : f32 to vector<2x32xf32>
    %562 = arith.mulf %561, %560 : vector<2x32xf32>
    %563 = math.tanh %562 : vector<2x32xf32>
    %cst_243 = arith.constant 1.000000e+00 : f32
    %564 = vector.broadcast %cst_243 : f32 to vector<2x32xf32>
    %565 = arith.addf %564, %563 : vector<2x32xf32>
    %cst_244 = arith.constant 5.000000e-01 : f32
    %566 = vector.broadcast %cst_244 : f32 to vector<2x32xf32>
    %567 = arith.mulf %566, %565 : vector<2x32xf32>
    %568 = arith.mulf %557, %529 : vector<2x32xf32>
    %569 = arith.mulf %549, %559 : vector<2x32xf32>
    %570 = arith.addf %568, %569 : vector<2x32xf32>
    %571 = math.tanh %570 : vector<2x32xf32>
    %572 = arith.mulf %567, %571 : vector<2x32xf32>
    %573 = arith.index_cast %c3_i32_232 : i32 to index
    %c0_245 = arith.constant 0 : index
    %c0_246 = arith.constant 0 : index
    %574 = vector.load %arg26[%573, %c0_245, %c0_246] : memref<8x2x32xf32, #tpu.memory_space<vmem>>, vector<1x2x32xf32>
    %575 = vector.shape_cast %574 : vector<1x2x32xf32> to vector<2x32xf32>
    %576 = vector.shape_cast %572 : vector<2x32xf32> to vector<1x2x32xf32>
    tpu.vector_store %arg26[%573, %c0_245, %c0_246], %576 {strides = array<i32>} : memref<8x2x32xf32, #tpu.memory_space<vmem>>, vector<1x2x32xf32>,
    %c4_i32_247 = arith.constant 4 : i32
    %577 = arith.index_cast %c4_i32_247 : i32 to index
    %c0_248 = arith.constant 0 : index
    %c0_249 = arith.constant 0 : index
    %578 = vector.load %arg25[%577, %c0_248, %c0_249] : memref<8x2x128xf32, #tpu.memory_space<vmem>>, vector<1x2x128xf32>
    %579 = vector.shape_cast %578 : vector<1x2x128xf32> to vector<2x128xf32>
    %580 = arith.truncf %572 : vector<2x32xf32> to vector<2x32xbf16>
    %cst_250 = arith.constant dense<0.000000e+00> : vector<2x128xf32>
    %581 = tpu.matmul %580, %401, %cst_250 {dimension_numbers = #tpu.dot_dimension_numbers<[1], [0], [0], [1], [0, 0, 1, 1], [], []>} : vector<2x32xbf16>, vector<32x128xbf16>, vector<2x128xf32> -> vector<2x128xf32>
    %582 = arith.addf %579, %581 : vector<2x128xf32>
    %583 = vector.extract_strided_slice %582 {offsets = [0, 0], sizes = [2, 32], strides = [1, 1]} : vector<2x128xf32> to vector<2x32xf32>
    %cst_251 = arith.constant 5.000000e-01 : f32
    %584 = vector.broadcast %cst_251 : f32 to vector<2x32xf32>
    %585 = arith.mulf %584, %583 : vector<2x32xf32>
    %586 = math.tanh %585 : vector<2x32xf32>
    %cst_252 = arith.constant 1.000000e+00 : f32
    %587 = vector.broadcast %cst_252 : f32 to vector<2x32xf32>
    %588 = arith.addf %587, %586 : vector<2x32xf32>
    %cst_253 = arith.constant 5.000000e-01 : f32
    %589 = vector.broadcast %cst_253 : f32 to vector<2x32xf32>
    %590 = arith.mulf %589, %588 : vector<2x32xf32>
    %591 = vector.extract_strided_slice %582 {offsets = [0, 32], sizes = [2, 32], strides = [1, 1]} : vector<2x128xf32> to vector<2x32xf32>
    %cst_254 = arith.constant 5.000000e-01 : f32
    %592 = vector.broadcast %cst_254 : f32 to vector<2x32xf32>
    %593 = arith.mulf %592, %591 : vector<2x32xf32>
    %594 = math.tanh %593 : vector<2x32xf32>
    %cst_255 = arith.constant 1.000000e+00 : f32
    %595 = vector.broadcast %cst_255 : f32 to vector<2x32xf32>
    %596 = arith.addf %595, %594 : vector<2x32xf32>
    %cst_256 = arith.constant 5.000000e-01 : f32
    %597 = vector.broadcast %cst_256 : f32 to vector<2x32xf32>
    %598 = arith.mulf %597, %596 : vector<2x32xf32>
    %599 = vector.extract_strided_slice %582 {offsets = [0, 64], sizes = [2, 32], strides = [1, 1]} : vector<2x128xf32> to vector<2x32xf32>
    %600 = math.tanh %599 : vector<2x32xf32>
    %601 = vector.extract_strided_slice %582 {offsets = [0, 96], sizes = [2, 32], strides = [1, 1]} : vector<2x128xf32> to vector<2x32xf32>
    %cst_257 = arith.constant 5.000000e-01 : f32
    %602 = vector.broadcast %cst_257 : f32 to vector<2x32xf32>
    %603 = arith.mulf %602, %601 : vector<2x32xf32>
    %604 = math.tanh %603 : vector<2x32xf32>
    %cst_258 = arith.constant 1.000000e+00 : f32
    %605 = vector.broadcast %cst_258 : f32 to vector<2x32xf32>
    %606 = arith.addf %605, %604 : vector<2x32xf32>
    %cst_259 = arith.constant 5.000000e-01 : f32
    %607 = vector.broadcast %cst_259 : f32 to vector<2x32xf32>
    %608 = arith.mulf %607, %606 : vector<2x32xf32>
    %609 = arith.mulf %598, %570 : vector<2x32xf32>
    %610 = arith.mulf %590, %600 : vector<2x32xf32>
    %611 = arith.addf %609, %610 : vector<2x32xf32>
    %612 = math.tanh %611 : vector<2x32xf32>
    %613 = arith.mulf %608, %612 : vector<2x32xf32>
    %614 = arith.index_cast %c4_i32_247 : i32 to index
    %c0_260 = arith.constant 0 : index
    %c0_261 = arith.constant 0 : index
    %615 = vector.load %arg26[%614, %c0_260, %c0_261] : memref<8x2x32xf32, #tpu.memory_space<vmem>>, vector<1x2x32xf32>
    %616 = vector.shape_cast %615 : vector<1x2x32xf32> to vector<2x32xf32>
    %617 = vector.shape_cast %613 : vector<2x32xf32> to vector<1x2x32xf32>
    tpu.vector_store %arg26[%614, %c0_260, %c0_261], %617 {strides = array<i32>} : memref<8x2x32xf32, #tpu.memory_space<vmem>>, vector<1x2x32xf32>,
    %c5_i32_262 = arith.constant 5 : i32
    %618 = arith.index_cast %c5_i32_262 : i32 to index
    %c0_263 = arith.constant 0 : index
    %c0_264 = arith.constant 0 : index
    %619 = vector.load %arg25[%618, %c0_263, %c0_264] : memref<8x2x128xf32, #tpu.memory_space<vmem>>, vector<1x2x128xf32>
    %620 = vector.shape_cast %619 : vector<1x2x128xf32> to vector<2x128xf32>
    %621 = arith.truncf %613 : vector<2x32xf32> to vector<2x32xbf16>
    %cst_265 = arith.constant dense<0.000000e+00> : vector<2x128xf32>
    %622 = tpu.matmul %621, %401, %cst_265 {dimension_numbers = #tpu.dot_dimension_numbers<[1], [0], [0], [1], [0, 0, 1, 1], [], []>} : vector<2x32xbf16>, vector<32x128xbf16>, vector<2x128xf32> -> vector<2x128xf32>
    %623 = arith.addf %620, %622 : vector<2x128xf32>
    %624 = vector.extract_strided_slice %623 {offsets = [0, 0], sizes = [2, 32], strides = [1, 1]} : vector<2x128xf32> to vector<2x32xf32>
    %cst_266 = arith.constant 5.000000e-01 : f32
    %625 = vector.broadcast %cst_266 : f32 to vector<2x32xf32>
    %626 = arith.mulf %625, %624 : vector<2x32xf32>
    %627 = math.tanh %626 : vector<2x32xf32>
    %cst_267 = arith.constant 1.000000e+00 : f32
    %628 = vector.broadcast %cst_267 : f32 to vector<2x32xf32>
    %629 = arith.addf %628, %627 : vector<2x32xf32>
    %cst_268 = arith.constant 5.000000e-01 : f32
    %630 = vector.broadcast %cst_268 : f32 to vector<2x32xf32>
    %631 = arith.mulf %630, %629 : vector<2x32xf32>
    %632 = vector.extract_strided_slice %623 {offsets = [0, 32], sizes = [2, 32], strides = [1, 1]} : vector<2x128xf32> to vector<2x32xf32>
    %cst_269 = arith.constant 5.000000e-01 : f32
    %633 = vector.broadcast %cst_269 : f32 to vector<2x32xf32>
    %634 = arith.mulf %633, %632 : vector<2x32xf32>
    %635 = math.tanh %634 : vector<2x32xf32>
    %cst_270 = arith.constant 1.000000e+00 : f32
    %636 = vector.broadcast %cst_270 : f32 to vector<2x32xf32>
    %637 = arith.addf %636, %635 : vector<2x32xf32>
    %cst_271 = arith.constant 5.000000e-01 : f32
    %638 = vector.broadcast %cst_271 : f32 to vector<2x32xf32>
    %639 = arith.mulf %638, %637 : vector<2x32xf32>
    %640 = vector.extract_strided_slice %623 {offsets = [0, 64], sizes = [2, 32], strides = [1, 1]} : vector<2x128xf32> to vector<2x32xf32>
    %641 = math.tanh %640 : vector<2x32xf32>
    %642 = vector.extract_strided_slice %623 {offsets = [0, 96], sizes = [2, 32], strides = [1, 1]} : vector<2x128xf32> to vector<2x32xf32>
    %cst_272 = arith.constant 5.000000e-01 : f32
    %643 = vector.broadcast %cst_272 : f32 to vector<2x32xf32>
    %644 = arith.mulf %643, %642 : vector<2x32xf32>
    %645 = math.tanh %644 : vector<2x32xf32>
    %cst_273 = arith.constant 1.000000e+00 : f32
    %646 = vector.broadcast %cst_273 : f32 to vector<2x32xf32>
    %647 = arith.addf %646, %645 : vector<2x32xf32>
    %cst_274 = arith.constant 5.000000e-01 : f32
    %648 = vector.broadcast %cst_274 : f32 to vector<2x32xf32>
    %649 = arith.mulf %648, %647 : vector<2x32xf32>
    %650 = arith.mulf %639, %611 : vector<2x32xf32>
    %651 = arith.mulf %631, %641 : vector<2x32xf32>
    %652 = arith.addf %650, %651 : vector<2x32xf32>
    %653 = math.tanh %652 : vector<2x32xf32>
    %654 = arith.mulf %649, %653 : vector<2x32xf32>
    %655 = arith.index_cast %c5_i32_262 : i32 to index
    %c0_275 = arith.constant 0 : index
    %c0_276 = arith.constant 0 : index
    %656 = vector.load %arg26[%655, %c0_275, %c0_276] : memref<8x2x32xf32, #tpu.memory_space<vmem>>, vector<1x2x32xf32>
    %657 = vector.shape_cast %656 : vector<1x2x32xf32> to vector<2x32xf32>
    %658 = vector.shape_cast %654 : vector<2x32xf32> to vector<1x2x32xf32>
    tpu.vector_store %arg26[%655, %c0_275, %c0_276], %658 {strides = array<i32>} : memref<8x2x32xf32, #tpu.memory_space<vmem>>, vector<1x2x32xf32>,
    %c6_i32_277 = arith.constant 6 : i32
    %659 = arith.index_cast %c6_i32_277 : i32 to index
    %c0_278 = arith.constant 0 : index
    %c0_279 = arith.constant 0 : index
    %660 = vector.load %arg25[%659, %c0_278, %c0_279] : memref<8x2x128xf32, #tpu.memory_space<vmem>>, vector<1x2x128xf32>
    %661 = vector.shape_cast %660 : vector<1x2x128xf32> to vector<2x128xf32>
    %662 = arith.truncf %654 : vector<2x32xf32> to vector<2x32xbf16>
    %cst_280 = arith.constant dense<0.000000e+00> : vector<2x128xf32>
    %663 = tpu.matmul %662, %401, %cst_280 {dimension_numbers = #tpu.dot_dimension_numbers<[1], [0], [0], [1], [0, 0, 1, 1], [], []>} : vector<2x32xbf16>, vector<32x128xbf16>, vector<2x128xf32> -> vector<2x128xf32>
    %664 = arith.addf %661, %663 : vector<2x128xf32>
    %665 = vector.extract_strided_slice %664 {offsets = [0, 0], sizes = [2, 32], strides = [1, 1]} : vector<2x128xf32> to vector<2x32xf32>
    %cst_281 = arith.constant 5.000000e-01 : f32
    %666 = vector.broadcast %cst_281 : f32 to vector<2x32xf32>
    %667 = arith.mulf %666, %665 : vector<2x32xf32>
    %668 = math.tanh %667 : vector<2x32xf32>
    %cst_282 = arith.constant 1.000000e+00 : f32
    %669 = vector.broadcast %cst_282 : f32 to vector<2x32xf32>
    %670 = arith.addf %669, %668 : vector<2x32xf32>
    %cst_283 = arith.constant 5.000000e-01 : f32
    %671 = vector.broadcast %cst_283 : f32 to vector<2x32xf32>
    %672 = arith.mulf %671, %670 : vector<2x32xf32>
    %673 = vector.extract_strided_slice %664 {offsets = [0, 32], sizes = [2, 32], strides = [1, 1]} : vector<2x128xf32> to vector<2x32xf32>
    %cst_284 = arith.constant 5.000000e-01 : f32
    %674 = vector.broadcast %cst_284 : f32 to vector<2x32xf32>
    %675 = arith.mulf %674, %673 : vector<2x32xf32>
    %676 = math.tanh %675 : vector<2x32xf32>
    %cst_285 = arith.constant 1.000000e+00 : f32
    %677 = vector.broadcast %cst_285 : f32 to vector<2x32xf32>
    %678 = arith.addf %677, %676 : vector<2x32xf32>
    %cst_286 = arith.constant 5.000000e-01 : f32
    %679 = vector.broadcast %cst_286 : f32 to vector<2x32xf32>
    %680 = arith.mulf %679, %678 : vector<2x32xf32>
    %681 = vector.extract_strided_slice %664 {offsets = [0, 64], sizes = [2, 32], strides = [1, 1]} : vector<2x128xf32> to vector<2x32xf32>
    %682 = math.tanh %681 : vector<2x32xf32>
    %683 = vector.extract_strided_slice %664 {offsets = [0, 96], sizes = [2, 32], strides = [1, 1]} : vector<2x128xf32> to vector<2x32xf32>
    %cst_287 = arith.constant 5.000000e-01 : f32
    %684 = vector.broadcast %cst_287 : f32 to vector<2x32xf32>
    %685 = arith.mulf %684, %683 : vector<2x32xf32>
    %686 = math.tanh %685 : vector<2x32xf32>
    %cst_288 = arith.constant 1.000000e+00 : f32
    %687 = vector.broadcast %cst_288 : f32 to vector<2x32xf32>
    %688 = arith.addf %687, %686 : vector<2x32xf32>
    %cst_289 = arith.constant 5.000000e-01 : f32
    %689 = vector.broadcast %cst_289 : f32 to vector<2x32xf32>
    %690 = arith.mulf %689, %688 : vector<2x32xf32>
    %691 = arith.mulf %680, %652 : vector<2x32xf32>
    %692 = arith.mulf %672, %682 : vector<2x32xf32>
    %693 = arith.addf %691, %692 : vector<2x32xf32>
    %694 = math.tanh %693 : vector<2x32xf32>
    %695 = arith.mulf %690, %694 : vector<2x32xf32>
    %696 = arith.index_cast %c6_i32_277 : i32 to index
    %c0_290 = arith.constant 0 : index
    %c0_291 = arith.constant 0 : index
    %697 = vector.load %arg26[%696, %c0_290, %c0_291] : memref<8x2x32xf32, #tpu.memory_space<vmem>>, vector<1x2x32xf32>
    %698 = vector.shape_cast %697 : vector<1x2x32xf32> to vector<2x32xf32>
    %699 = vector.shape_cast %695 : vector<2x32xf32> to vector<1x2x32xf32>
    tpu.vector_store %arg26[%696, %c0_290, %c0_291], %699 {strides = array<i32>} : memref<8x2x32xf32, #tpu.memory_space<vmem>>, vector<1x2x32xf32>,
    %c7_i32_292 = arith.constant 7 : i32
    %700 = arith.index_cast %c7_i32_292 : i32 to index
    %c0_293 = arith.constant 0 : index
    %c0_294 = arith.constant 0 : index
    %701 = vector.load %arg25[%700, %c0_293, %c0_294] : memref<8x2x128xf32, #tpu.memory_space<vmem>>, vector<1x2x128xf32>
    %702 = vector.shape_cast %701 : vector<1x2x128xf32> to vector<2x128xf32>
    %703 = arith.truncf %695 : vector<2x32xf32> to vector<2x32xbf16>
    %cst_295 = arith.constant dense<0.000000e+00> : vector<2x128xf32>
    %704 = tpu.matmul %703, %401, %cst_295 {dimension_numbers = #tpu.dot_dimension_numbers<[1], [0], [0], [1], [0, 0, 1, 1], [], []>} : vector<2x32xbf16>, vector<32x128xbf16>, vector<2x128xf32> -> vector<2x128xf32>
    %705 = arith.addf %702, %704 : vector<2x128xf32>
    %706 = vector.extract_strided_slice %705 {offsets = [0, 0], sizes = [2, 32], strides = [1, 1]} : vector<2x128xf32> to vector<2x32xf32>
    %cst_296 = arith.constant 5.000000e-01 : f32
    %707 = vector.broadcast %cst_296 : f32 to vector<2x32xf32>
    %708 = arith.mulf %707, %706 : vector<2x32xf32>
    %709 = math.tanh %708 : vector<2x32xf32>
    %cst_297 = arith.constant 1.000000e+00 : f32
    %710 = vector.broadcast %cst_297 : f32 to vector<2x32xf32>
    %711 = arith.addf %710, %709 : vector<2x32xf32>
    %cst_298 = arith.constant 5.000000e-01 : f32
    %712 = vector.broadcast %cst_298 : f32 to vector<2x32xf32>
    %713 = arith.mulf %712, %711 : vector<2x32xf32>
    %714 = vector.extract_strided_slice %705 {offsets = [0, 32], sizes = [2, 32], strides = [1, 1]} : vector<2x128xf32> to vector<2x32xf32>
    %cst_299 = arith.constant 5.000000e-01 : f32
    %715 = vector.broadcast %cst_299 : f32 to vector<2x32xf32>
    %716 = arith.mulf %715, %714 : vector<2x32xf32>
    %717 = math.tanh %716 : vector<2x32xf32>
    %cst_300 = arith.constant 1.000000e+00 : f32
    %718 = vector.broadcast %cst_300 : f32 to vector<2x32xf32>
    %719 = arith.addf %718, %717 : vector<2x32xf32>
    %cst_301 = arith.constant 5.000000e-01 : f32
    %720 = vector.broadcast %cst_301 : f32 to vector<2x32xf32>
    %721 = arith.mulf %720, %719 : vector<2x32xf32>
    %722 = vector.extract_strided_slice %705 {offsets = [0, 64], sizes = [2, 32], strides = [1, 1]} : vector<2x128xf32> to vector<2x32xf32>
    %723 = math.tanh %722 : vector<2x32xf32>
    %724 = vector.extract_strided_slice %705 {offsets = [0, 96], sizes = [2, 32], strides = [1, 1]} : vector<2x128xf32> to vector<2x32xf32>
    %cst_302 = arith.constant 5.000000e-01 : f32
    %725 = vector.broadcast %cst_302 : f32 to vector<2x32xf32>
    %726 = arith.mulf %725, %724 : vector<2x32xf32>
    %727 = math.tanh %726 : vector<2x32xf32>
    %cst_303 = arith.constant 1.000000e+00 : f32
    %728 = vector.broadcast %cst_303 : f32 to vector<2x32xf32>
    %729 = arith.addf %728, %727 : vector<2x32xf32>
    %cst_304 = arith.constant 5.000000e-01 : f32
    %730 = vector.broadcast %cst_304 : f32 to vector<2x32xf32>
    %731 = arith.mulf %730, %729 : vector<2x32xf32>
    %732 = arith.mulf %721, %693 : vector<2x32xf32>
    %733 = arith.mulf %713, %723 : vector<2x32xf32>
    %734 = arith.addf %732, %733 : vector<2x32xf32>
    %735 = math.tanh %734 : vector<2x32xf32>
    %736 = arith.mulf %731, %735 : vector<2x32xf32>
    %737 = arith.index_cast %c7_i32_292 : i32 to index
    %c0_305 = arith.constant 0 : index
    %c0_306 = arith.constant 0 : index
    %738 = vector.load %arg26[%737, %c0_305, %c0_306] : memref<8x2x32xf32, #tpu.memory_space<vmem>>, vector<1x2x32xf32>
    %739 = vector.shape_cast %738 : vector<1x2x32xf32> to vector<2x32xf32>
    %740 = vector.shape_cast %736 : vector<2x32xf32> to vector<1x2x32xf32>
    tpu.vector_store %arg26[%737, %c0_305, %c0_306], %740 {strides = array<i32>} : memref<8x2x32xf32, #tpu.memory_space<vmem>>, vector<1x2x32xf32>,
    %c8_i32_307 = arith.constant 8 : i32
    %c0_308 = arith.constant 0 : index
    %c0_309 = arith.constant 0 : index
    %c0_310 = arith.constant 0 : index
    %741 = vector.load %arg26[%c0_308, %c0_309, %c0_310] : memref<8x2x32xf32, #tpu.memory_space<vmem>>, vector<8x2x32xf32>
    %742 = vector.shape_cast %741 : vector<8x2x32xf32> to vector<16x32xf32>
    %743 = arith.truncf %742 : vector<16x32xf32> to vector<16x32xbf16>
    %c1_311 = arith.constant 1 : index
    %c0_312 = arith.constant 0 : index
    %c0_313 = arith.constant 0 : index
    %744 = vector.load %arg8[%c1_311, %c0_312, %c0_313] : memref<2x32x96xbf16, #tpu.memory_space<vmem>>, vector<1x32x96xbf16>
    %745 = vector.shape_cast %744 : vector<1x32x96xbf16> to vector<32x96xbf16>
    %cst_314 = arith.constant dense<0.000000e+00> : vector<16x96xf32>
    %746 = tpu.matmul %743, %745, %cst_314 {dimension_numbers = #tpu.dot_dimension_numbers<[1], [0], [0], [1], [0, 0, 1, 1], [], []>} : vector<16x32xbf16>, vector<32x96xbf16>, vector<16x96xf32> -> vector<16x96xf32>
    %c1_315 = arith.constant 1 : index
    %c0_316 = arith.constant 0 : index
    %c0_317 = arith.constant 0 : index
    %747 = vector.load %arg9[%c1_315, %c0_316, %c0_317] : memref<2x1x96xf32, #tpu.memory_space<vmem>>, vector<1x1x96xf32>
    %748 = vector.shape_cast %747 : vector<1x1x96xf32> to vector<1x96xf32>
    %749 = vector.broadcast %748 : vector<1x96xf32> to vector<16x96xf32>
    %750 = arith.addf %746, %749 : vector<16x96xf32>
    %cst_318 = arith.constant 5.000000e-01 : f32
    %751 = vector.broadcast %cst_318 : f32 to vector<16x96xf32>
    %752 = arith.mulf %751, %750 : vector<16x96xf32>
    %753 = arith.mulf %750, %750 : vector<16x96xf32>
    %754 = arith.mulf %753, %750 : vector<16x96xf32>
    %cst_319 = arith.constant 4.471500e-02 : f32
    %755 = vector.broadcast %cst_319 : f32 to vector<16x96xf32>
    %756 = arith.mulf %755, %754 : vector<16x96xf32>
    %757 = arith.addf %750, %756 : vector<16x96xf32>
    %cst_320 = arith.constant 0.797884583 : f32
    %758 = vector.broadcast %cst_320 : f32 to vector<16x96xf32>
    %759 = arith.mulf %758, %757 : vector<16x96xf32>
    %760 = math.tanh %759 : vector<16x96xf32>
    %cst_321 = arith.constant 1.000000e+00 : f32
    %761 = vector.broadcast %cst_321 : f32 to vector<16x96xf32>
    %762 = arith.addf %761, %760 : vector<16x96xf32>
    %763 = arith.mulf %752, %762 : vector<16x96xf32>
    %764 = arith.truncf %763 : vector<16x96xf32> to vector<16x96xbf16>
    %c1_322 = arith.constant 1 : index
    %c0_323 = arith.constant 0 : index
    %c0_324 = arith.constant 0 : index
    %765 = vector.load %arg10[%c1_322, %c0_323, %c0_324] : memref<2x96x96xbf16, #tpu.memory_space<vmem>>, vector<1x96x96xbf16>
    %766 = vector.shape_cast %765 : vector<1x96x96xbf16> to vector<96x96xbf16>
    %cst_325 = arith.constant dense<0.000000e+00> : vector<16x96xf32>
    %767 = tpu.matmul %764, %766, %cst_325 {dimension_numbers = #tpu.dot_dimension_numbers<[1], [0], [0], [1], [0, 0, 1, 1], [], []>} : vector<16x96xbf16>, vector<96x96xbf16>, vector<16x96xf32> -> vector<16x96xf32>
    %c1_326 = arith.constant 1 : index
    %c0_327 = arith.constant 0 : index
    %c0_328 = arith.constant 0 : index
    %768 = vector.load %arg11[%c1_326, %c0_327, %c0_328] : memref<2x1x96xf32, #tpu.memory_space<vmem>>, vector<1x1x96xf32>
    %769 = vector.shape_cast %768 : vector<1x1x96xf32> to vector<1x96xf32>
    %770 = vector.broadcast %769 : vector<1x96xf32> to vector<16x96xf32>
    %771 = arith.addf %767, %770 : vector<16x96xf32>
    %772 = vector.extract_strided_slice %771 {offsets = [0, 0], sizes = [16, 32], strides = [1, 1]} : vector<16x96xf32> to vector<16x32xf32>
    %773 = arith.subf %399, %772 : vector<16x32xf32>
    %c0_329 = arith.constant 0 : index
    %c0_330 = arith.constant 0 : index
    %774 = vector.load %arg22[%c0_329, %c0_330] : memref<16x32xf32, #tpu.memory_space<vmem>>, vector<16x32xf32>
    tpu.vector_store %arg22[%c0_329, %c0_330], %773 {strides = array<i32>} : memref<16x32xf32, #tpu.memory_space<vmem>>, vector<16x32xf32>,
    %c0_331 = arith.constant 0 : index
    %c0_332 = arith.constant 0 : index
    %775 = vector.load %arg23[%c0_331, %c0_332] : memref<16x32xf32, #tpu.memory_space<vmem>>, vector<16x32xf32>
    %776 = vector.extract_strided_slice %771 {offsets = [0, 32], sizes = [16, 32], strides = [1, 1]} : vector<16x96xf32> to vector<16x32xf32>
    %777 = arith.addf %775, %776 : vector<16x32xf32>
    %c0_333 = arith.constant 0 : index
    %c0_334 = arith.constant 0 : index
    %778 = vector.load %arg23[%c0_333, %c0_334] : memref<16x32xf32, #tpu.memory_space<vmem>>, vector<16x32xf32>
    tpu.vector_store %arg23[%c0_333, %c0_334], %777 {strides = array<i32>} : memref<16x32xf32, #tpu.memory_space<vmem>>, vector<16x32xf32>,
    %c0_335 = arith.constant 0 : index
    %c0_336 = arith.constant 0 : index
    %779 = vector.load %arg24[%c0_335, %c0_336] : memref<16x32xf32, #tpu.memory_space<vmem>>, vector<16x32xf32>
    %780 = vector.extract_strided_slice %771 {offsets = [0, 64], sizes = [16, 32], strides = [1, 1]} : vector<16x96xf32> to vector<16x32xf32>
    %781 = arith.addf %779, %780 : vector<16x32xf32>
    %c0_337 = arith.constant 0 : index
    %c0_338 = arith.constant 0 : index
    %782 = vector.load %arg24[%c0_337, %c0_338] : memref<16x32xf32, #tpu.memory_space<vmem>>, vector<16x32xf32>
    tpu.vector_store %arg24[%c0_337, %c0_338], %781 {strides = array<i32>} : memref<16x32xf32, #tpu.memory_space<vmem>>, vector<16x32xf32>,
    %c0_339 = arith.constant 0 : index
    %c0_340 = arith.constant 0 : index
    %783 = vector.load %arg24[%c0_339, %c0_340] : memref<16x32xf32, #tpu.memory_space<vmem>>, vector<16x32xf32>
    %cst_341 = arith.constant 5.000000e-01 : f32
    %784 = vector.broadcast %cst_341 : f32 to vector<16x32xf32>
    %785 = arith.mulf %783, %784 : vector<16x32xf32>
    %c0_342 = arith.constant 0 : index
    %c0_343 = arith.constant 0 : index
    %786 = vector.load %arg24[%c0_342, %c0_343] : memref<16x32xf32, #tpu.memory_space<vmem>>, vector<16x32xf32>
    tpu.vector_store %arg24[%c0_342, %c0_343], %785 {strides = array<i32>} : memref<16x32xf32, #tpu.memory_space<vmem>>, vector<16x32xf32>,
    %c0_344 = arith.constant 0 : index
    %c0_345 = arith.constant 0 : index
    %787 = vector.load %arg24[%c0_344, %c0_345] : memref<16x32xf32, #tpu.memory_space<vmem>>, vector<16x32xf32>
    %788 = arith.truncf %787 : vector<16x32xf32> to vector<16x32xbf16>
    %c0_346 = arith.constant 0 : index
    %c0_347 = arith.constant 0 : index
    %789 = vector.load %arg12[%c0_346, %c0_347] : memref<32x64xbf16, #tpu.memory_space<vmem>>, vector<32x64xbf16>
    %cst_348 = arith.constant dense<0.000000e+00> : vector<16x64xf32>
    %790 = tpu.matmul %788, %789, %cst_348 {dimension_numbers = #tpu.dot_dimension_numbers<[1], [0], [0], [1], [0, 0, 1, 1], [], []>} : vector<16x32xbf16>, vector<32x64xbf16>, vector<16x64xf32> -> vector<16x64xf32>
    %c0_349 = arith.constant 0 : index
    %c0_350 = arith.constant 0 : index
    %791 = vector.load %arg13[%c0_349, %c0_350] : memref<1x64xf32, #tpu.memory_space<vmem>>, vector<1x64xf32>
    %792 = vector.broadcast %791 : vector<1x64xf32> to vector<16x64xf32>
    %793 = arith.addf %790, %792 : vector<16x64xf32>
    %c0_351 = arith.constant 0 : index
    %c0_352 = arith.constant 0 : index
    %794 = vector.load %arg23[%c0_351, %c0_352] : memref<16x32xf32, #tpu.memory_space<vmem>>, vector<16x32xf32>
    %795 = vector.extract_strided_slice %793 {offsets = [0, 32], sizes = [16, 32], strides = [1, 1]} : vector<16x64xf32> to vector<16x32xf32>
    %796 = tpu.concatenate %794, %795 in 1 : vector<16x32xf32>, vector<16x32xf32> -> vector<16x64xf32>
    %797 = arith.truncf %796 : vector<16x64xf32> to vector<16x64xbf16>
    %c0_353 = arith.constant 0 : index
    %c0_354 = arith.constant 0 : index
    %798 = vector.load %arg19[%c0_353, %c0_354] : memref<64x1xbf16, #tpu.memory_space<vmem>>, vector<64x1xbf16>
    %cst_355 = arith.constant dense<0.000000e+00> : vector<16x1xf32>
    %799 = tpu.matmul %797, %798, %cst_355 {dimension_numbers = #tpu.dot_dimension_numbers<[1], [0], [0], [1], [0, 0, 1, 1], [], []>} : vector<16x64xbf16>, vector<64x1xbf16>, vector<16x1xf32> -> vector<16x1xf32>
    %c0_356 = arith.constant 0 : index
    %c0_357 = arith.constant 0 : index
    %800 = vector.load %arg20[%c0_356, %c0_357] : memref<1x1xf32, #tpu.memory_space<vmem>>, vector<1x1xf32>
    %801 = vector.broadcast %800 : vector<1x1xf32> to vector<16x1xf32>
    %802 = arith.addf %799, %801 : vector<16x1xf32>
    %803 = vector.extract_strided_slice %793 {offsets = [0, 0], sizes = [16, 32], strides = [1, 1]} : vector<16x64xf32> to vector<16x32xf32>
    %804 = tpu.concatenate %787, %803, %802 in 1 : vector<16x32xf32>, vector<16x32xf32>, vector<16x1xf32> -> vector<16x65xf32>
    %c0_358 = arith.constant 0 : index
    %c0_359 = arith.constant 0 : index
    %805 = vector.load %arg27[%c0_358, %c0_359] : memref<16x65xf32, #tpu.memory_space<vmem>>, vector<16x65xf32>
    tpu.vector_store %arg27[%c0_358, %c0_359], %804 {strides = array<i32>} : memref<16x65xf32, #tpu.memory_space<vmem>>, vector<16x65xf32>,
    %c0_360 = arith.constant 0 : index
    %c0_361 = arith.constant 0 : index
    %806 = vector.load %arg2[%c0_360, %c0_361] : memref<8x8xbf16, #tpu.memory_space<vmem>>, vector<8x8xbf16>
    %c0_362 = arith.constant 0 : index
    %c0_363 = arith.constant 0 : index
    %807 = vector.load %arg14[%c0_362, %c0_363] : memref<32x64xbf16, #tpu.memory_space<vmem>>, vector<32x64xbf16>
    %c0_364 = arith.constant 0 : index
    %c0_365 = arith.constant 0 : index
    %808 = vector.load %arg15[%c0_364, %c0_365] : memref<1x64xf32, #tpu.memory_space<vmem>>, vector<1x64xf32>
    %809 = tpu.iota {dimensions = array<i32: 1>} : vector<1x16xi32>
    %810 = tpu.iota {dimensions = array<i32: 0>} : vector<8x1xi32>
    %c2_i32_366 = arith.constant 2 : i32
    %811 = vector.broadcast %c2_i32_366 : i32 to vector<8x1xi32>
    %812 = arith.muli %810, %811 : vector<8x1xi32>
    %c0_i32_367 = arith.constant 0 : i32
    %813 = vector.broadcast %c0_i32_367 : i32 to vector<8x1xi32>
    %814 = arith.addi %812, %813 : vector<8x1xi32>
    %815 = vector.broadcast %809 : vector<1x16xi32> to vector<8x16xi32>
    %816 = vector.broadcast %814 : vector<8x1xi32> to vector<8x16xi32>
    %817 = arith.cmpi eq, %815, %816 : vector<8x16xi32>
    %818 = arith.extui %817 : vector<8x16xi1> to vector<8x16xi32>
    %819 = arith.sitofp %818 : vector<8x16xi32> to vector<8x16xf32>
    %c0_368 = arith.constant 0 : index
    %c0_369 = arith.constant 0 : index
    %820 = vector.load %arg27[%c0_368, %c0_369] : memref<16x65xf32, #tpu.memory_space<vmem>>, vector<16x65xf32>
    %cst_370 = arith.constant dense<0.000000e+00> : vector<8x65xf32>
    %821 = tpu.matmul %819, %820, %cst_370 {dimension_numbers = #tpu.dot_dimension_numbers<[1], [0], [0], [1], [0, 0, 1, 1], [], []>} : vector<8x16xf32>, vector<16x65xf32>, vector<8x65xf32> -> vector<8x65xf32>
    %822 = vector.extract_strided_slice %821 {offsets = [0, 0], sizes = [8, 32], strides = [1, 1]} : vector<8x65xf32> to vector<8x32xf32>
    %823 = vector.extract_strided_slice %821 {offsets = [0, 32], sizes = [8, 32], strides = [1, 1]} : vector<8x65xf32> to vector<8x32xf32>
    %824 = vector.extract_strided_slice %821 {offsets = [0, 64], sizes = [8, 1], strides = [1, 1]} : vector<8x65xf32> to vector<8x1xf32>
    %825 = arith.truncf %822 : vector<8x32xf32> to vector<8x32xbf16>
    %cst_371 = arith.constant dense<0.000000e+00> : vector<8x32xf32>
    %826 = tpu.matmul %806, %825, %cst_371 {dimension_numbers = #tpu.dot_dimension_numbers<[1], [0], [0], [1], [0, 0, 1, 1], [], []>} : vector<8x8xbf16>, vector<8x32xbf16>, vector<8x32xf32> -> vector<8x32xf32>
    %827 = arith.truncf %826 : vector<8x32xf32> to vector<8x32xbf16>
    %cst_372 = arith.constant dense<0.000000e+00> : vector<8x64xf32>
    %828 = tpu.matmul %827, %807, %cst_372 {dimension_numbers = #tpu.dot_dimension_numbers<[1], [0], [0], [1], [0, 0, 1, 1], [], []>} : vector<8x32xbf16>, vector<32x64xbf16>, vector<8x64xf32> -> vector<8x64xf32>
    %829 = vector.broadcast %808 : vector<1x64xf32> to vector<8x64xf32>
    %830 = arith.addf %828, %829 : vector<8x64xf32>
    %831 = vector.extract_strided_slice %830 {offsets = [0, 32], sizes = [8, 32], strides = [1, 1]} : vector<8x64xf32> to vector<8x32xf32>
    %c0_373 = arith.constant 0 : index
    %c0_374 = arith.constant 0 : index
    %c0_375 = arith.constant 0 : index
    %832 = vector.load %arg28[%c0_373, %c0_374, %c0_375] : memref<2x8x32xf32, #tpu.memory_space<vmem>>, vector<1x8x32xf32>
    %833 = vector.shape_cast %832 : vector<1x8x32xf32> to vector<8x32xf32>
    %834 = vector.shape_cast %831 : vector<8x32xf32> to vector<1x8x32xf32>
    tpu.vector_store %arg28[%c0_373, %c0_374, %c0_375], %834 {strides = array<i32>} : memref<2x8x32xf32, #tpu.memory_space<vmem>>, vector<1x8x32xf32>,
    %835 = vector.extract_strided_slice %830 {offsets = [0, 0], sizes = [8, 32], strides = [1, 1]} : vector<8x64xf32> to vector<8x32xf32>
    %836 = arith.mulf %823, %835 : vector<8x32xf32>
    %cst_376 = arith.constant dense<0.000000e+00> : vector<8xf32>
    %837 = vector.multi_reduction <add>, %836, %cst_376 [1] : vector<8x32xf32> to vector<8xf32>
    %838 = vector.shape_cast %837 : vector<8xf32> to vector<8x1xf32>
    %cst_377 = arith.constant 1.250000e-01 : f32
    %839 = vector.broadcast %cst_377 : f32 to vector<8x1xf32>
    %840 = arith.mulf %838, %839 : vector<8x1xf32>
    %c1_i32_378 = arith.constant 1 : i32
    %841 = vector.broadcast %c1_i32_378 : i32 to vector<8x1xi32>
    %842 = arith.addi %812, %841 : vector<8x1xi32>
    %843 = vector.broadcast %809 : vector<1x16xi32> to vector<8x16xi32>
    %844 = vector.broadcast %842 : vector<8x1xi32> to vector<8x16xi32>
    %845 = arith.cmpi eq, %843, %844 : vector<8x16xi32>
    %846 = arith.extui %845 : vector<8x16xi1> to vector<8x16xi32>
    %847 = arith.sitofp %846 : vector<8x16xi32> to vector<8x16xf32>
    %c0_379 = arith.constant 0 : index
    %c0_380 = arith.constant 0 : index
    %848 = vector.load %arg27[%c0_379, %c0_380] : memref<16x65xf32, #tpu.memory_space<vmem>>, vector<16x65xf32>
    %cst_381 = arith.constant dense<0.000000e+00> : vector<8x65xf32>
    %849 = tpu.matmul %847, %848, %cst_381 {dimension_numbers = #tpu.dot_dimension_numbers<[1], [0], [0], [1], [0, 0, 1, 1], [], []>} : vector<8x16xf32>, vector<16x65xf32>, vector<8x65xf32> -> vector<8x65xf32>
    %850 = vector.extract_strided_slice %849 {offsets = [0, 0], sizes = [8, 32], strides = [1, 1]} : vector<8x65xf32> to vector<8x32xf32>
    %851 = vector.extract_strided_slice %849 {offsets = [0, 32], sizes = [8, 32], strides = [1, 1]} : vector<8x65xf32> to vector<8x32xf32>
    %852 = vector.extract_strided_slice %849 {offsets = [0, 64], sizes = [8, 1], strides = [1, 1]} : vector<8x65xf32> to vector<8x1xf32>
    %853 = arith.truncf %850 : vector<8x32xf32> to vector<8x32xbf16>
    %cst_382 = arith.constant dense<0.000000e+00> : vector<8x32xf32>
    %854 = tpu.matmul %806, %853, %cst_382 {dimension_numbers = #tpu.dot_dimension_numbers<[1], [0], [0], [1], [0, 0, 1, 1], [], []>} : vector<8x8xbf16>, vector<8x32xbf16>, vector<8x32xf32> -> vector<8x32xf32>
    %855 = arith.truncf %854 : vector<8x32xf32> to vector<8x32xbf16>
    %cst_383 = arith.constant dense<0.000000e+00> : vector<8x64xf32>
    %856 = tpu.matmul %855, %807, %cst_383 {dimension_numbers = #tpu.dot_dimension_numbers<[1], [0], [0], [1], [0, 0, 1, 1], [], []>} : vector<8x32xbf16>, vector<32x64xbf16>, vector<8x64xf32> -> vector<8x64xf32>
    %857 = vector.broadcast %808 : vector<1x64xf32> to vector<8x64xf32>
    %858 = arith.addf %856, %857 : vector<8x64xf32>
    %859 = vector.extract_strided_slice %858 {offsets = [0, 32], sizes = [8, 32], strides = [1, 1]} : vector<8x64xf32> to vector<8x32xf32>
    %c1_384 = arith.constant 1 : index
    %c0_385 = arith.constant 0 : index
    %c0_386 = arith.constant 0 : index
    %860 = vector.load %arg28[%c1_384, %c0_385, %c0_386] : memref<2x8x32xf32, #tpu.memory_space<vmem>>, vector<1x8x32xf32>
    %861 = vector.shape_cast %860 : vector<1x8x32xf32> to vector<8x32xf32>
    %862 = vector.shape_cast %859 : vector<8x32xf32> to vector<1x8x32xf32>
    tpu.vector_store %arg28[%c1_384, %c0_385, %c0_386], %862 {strides = array<i32>} : memref<2x8x32xf32, #tpu.memory_space<vmem>>, vector<1x8x32xf32>,
    %863 = vector.extract_strided_slice %858 {offsets = [0, 0], sizes = [8, 32], strides = [1, 1]} : vector<8x64xf32> to vector<8x32xf32>
    %864 = arith.mulf %851, %863 : vector<8x32xf32>
    %cst_387 = arith.constant dense<0.000000e+00> : vector<8xf32>
    %865 = vector.multi_reduction <add>, %864, %cst_387 [1] : vector<8x32xf32> to vector<8xf32>
    %866 = vector.shape_cast %865 : vector<8xf32> to vector<8x1xf32>
    %cst_388 = arith.constant 1.250000e-01 : f32
    %867 = vector.broadcast %cst_388 : f32 to vector<8x1xf32>
    %868 = arith.mulf %866, %867 : vector<8x1xf32>
    %869 = tpu.concatenate %840, %868 in 1 : vector<8x1xf32>, vector<8x1xf32> -> vector<8x2xf32>
    %cst_389 = arith.constant dense<0xFF800000> : vector<8xf32>
    %870 = vector.multi_reduction <maximumf>, %869, %cst_389 [1] : vector<8x2xf32> to vector<8xf32>
    %871 = vector.shape_cast %870 : vector<8xf32> to vector<8x1xf32>
    %872 = vector.broadcast %871 : vector<8x1xf32> to vector<8x2xf32>
    %873 = arith.subf %869, %872 : vector<8x2xf32>
    %874 = math.exp %873 : vector<8x2xf32>
    %cst_390 = arith.constant dense<0.000000e+00> : vector<8xf32>
    %875 = vector.multi_reduction <add>, %874, %cst_390 [1] : vector<8x2xf32> to vector<8xf32>
    %876 = vector.shape_cast %875 : vector<8xf32> to vector<8x1xf32>
    %877 = tpu.reciprocal %876 {approx = true} : vector<8x1xf32> -> vector<8x1xf32>
    %878 = vector.broadcast %877 : vector<8x1xf32> to vector<8x2xf32>
    %879 = arith.mulf %874, %878 : vector<8x2xf32>
    %c0_391 = arith.constant 0 : index
    %c0_392 = arith.constant 0 : index
    %880 = vector.load %arg16[%c0_391, %c0_392] : memref<32x32xbf16, #tpu.memory_space<vmem>>, vector<32x32xbf16>
    %c0_393 = arith.constant 0 : index
    %c0_394 = arith.constant 0 : index
    %881 = vector.load %arg17[%c0_393, %c0_394] : memref<1x32xf32, #tpu.memory_space<vmem>>, vector<1x32xf32>
    %c0_395 = arith.constant 0 : index
    %c0_396 = arith.constant 0 : index
    %882 = vector.load %arg18[%c0_395, %c0_396] : memref<32x1xbf16, #tpu.memory_space<vmem>>, vector<32x1xbf16>
    %c0_397 = arith.constant 0 : index
    %c0_398 = arith.constant 0 : index
    %c0_399 = arith.constant 0 : index
    %883 = vector.load %arg28[%c0_397, %c0_398, %c0_399] : memref<2x8x32xf32, #tpu.memory_space<vmem>>, vector<1x8x32xf32>
    %884 = vector.shape_cast %883 : vector<1x8x32xf32> to vector<8x32xf32>
    %885 = vector.extract_strided_slice %879 {offsets = [0, 0], sizes = [8, 1], strides = [1, 1]} : vector<8x2xf32> to vector<8x1xf32>
    %886 = vector.broadcast %885 : vector<8x1xf32> to vector<8x32xf32>
    %887 = arith.mulf %886, %884 : vector<8x32xf32>
    %888 = arith.truncf %887 : vector<8x32xf32> to vector<8x32xbf16>
    %cst_400 = arith.constant dense<0.000000e+00> : vector<8x32xf32>
    %889 = tpu.matmul %888, %880, %cst_400 {dimension_numbers = #tpu.dot_dimension_numbers<[1], [0], [0], [1], [0, 0, 1, 1], [], []>} : vector<8x32xbf16>, vector<32x32xbf16>, vector<8x32xf32> -> vector<8x32xf32>
    %890 = vector.broadcast %881 : vector<1x32xf32> to vector<8x32xf32>
    %891 = arith.addf %889, %890 : vector<8x32xf32>
    %cst_401 = arith.constant 5.000000e-01 : f32
    %892 = vector.broadcast %cst_401 : f32 to vector<8x32xf32>
    %893 = arith.mulf %892, %891 : vector<8x32xf32>
    %894 = arith.mulf %891, %891 : vector<8x32xf32>
    %895 = arith.mulf %894, %891 : vector<8x32xf32>
    %cst_402 = arith.constant 4.471500e-02 : f32
    %896 = vector.broadcast %cst_402 : f32 to vector<8x32xf32>
    %897 = arith.mulf %896, %895 : vector<8x32xf32>
    %898 = arith.addf %891, %897 : vector<8x32xf32>
    %cst_403 = arith.constant 0.797884583 : f32
    %899 = vector.broadcast %cst_403 : f32 to vector<8x32xf32>
    %900 = arith.mulf %899, %898 : vector<8x32xf32>
    %901 = math.tanh %900 : vector<8x32xf32>
    %cst_404 = arith.constant 1.000000e+00 : f32
    %902 = vector.broadcast %cst_404 : f32 to vector<8x32xf32>
    %903 = arith.addf %902, %901 : vector<8x32xf32>
    %904 = arith.mulf %893, %903 : vector<8x32xf32>
    %905 = arith.truncf %904 : vector<8x32xf32> to vector<8x32xbf16>
    %cst_405 = arith.constant dense<0.000000e+00> : vector<8x1xf32>
    %906 = tpu.matmul %905, %882, %cst_405 {dimension_numbers = #tpu.dot_dimension_numbers<[1], [0], [0], [1], [0, 0, 1, 1], [], []>} : vector<8x32xbf16>, vector<32x1xbf16>, vector<8x1xf32> -> vector<8x1xf32>
    %907 = arith.addf %824, %906 : vector<8x1xf32>
    %c1_406 = arith.constant 1 : index
    %c0_407 = arith.constant 0 : index
    %c0_408 = arith.constant 0 : index
    %908 = vector.load %arg28[%c1_406, %c0_407, %c0_408] : memref<2x8x32xf32, #tpu.memory_space<vmem>>, vector<1x8x32xf32>
    %909 = vector.shape_cast %908 : vector<1x8x32xf32> to vector<8x32xf32>
    %910 = vector.extract_strided_slice %879 {offsets = [0, 1], sizes = [8, 1], strides = [1, 1]} : vector<8x2xf32> to vector<8x1xf32>
    %911 = vector.broadcast %910 : vector<8x1xf32> to vector<8x32xf32>
    %912 = arith.mulf %911, %909 : vector<8x32xf32>
    %913 = arith.truncf %912 : vector<8x32xf32> to vector<8x32xbf16>
    %cst_409 = arith.constant dense<0.000000e+00> : vector<8x32xf32>
    %914 = tpu.matmul %913, %880, %cst_409 {dimension_numbers = #tpu.dot_dimension_numbers<[1], [0], [0], [1], [0, 0, 1, 1], [], []>} : vector<8x32xbf16>, vector<32x32xbf16>, vector<8x32xf32> -> vector<8x32xf32>
    %915 = vector.broadcast %881 : vector<1x32xf32> to vector<8x32xf32>
    %916 = arith.addf %914, %915 : vector<8x32xf32>
    %cst_410 = arith.constant 5.000000e-01 : f32
    %917 = vector.broadcast %cst_410 : f32 to vector<8x32xf32>
    %918 = arith.mulf %917, %916 : vector<8x32xf32>
    %919 = arith.mulf %916, %916 : vector<8x32xf32>
    %920 = arith.mulf %919, %916 : vector<8x32xf32>
    %cst_411 = arith.constant 4.471500e-02 : f32
    %921 = vector.broadcast %cst_411 : f32 to vector<8x32xf32>
    %922 = arith.mulf %921, %920 : vector<8x32xf32>
    %923 = arith.addf %916, %922 : vector<8x32xf32>
    %cst_412 = arith.constant 0.797884583 : f32
    %924 = vector.broadcast %cst_412 : f32 to vector<8x32xf32>
    %925 = arith.mulf %924, %923 : vector<8x32xf32>
    %926 = math.tanh %925 : vector<8x32xf32>
    %cst_413 = arith.constant 1.000000e+00 : f32
    %927 = vector.broadcast %cst_413 : f32 to vector<8x32xf32>
    %928 = arith.addf %927, %926 : vector<8x32xf32>
    %929 = arith.mulf %918, %928 : vector<8x32xf32>
    %930 = arith.truncf %929 : vector<8x32xf32> to vector<8x32xbf16>
    %cst_414 = arith.constant dense<0.000000e+00> : vector<8x1xf32>
    %931 = tpu.matmul %930, %882, %cst_414 {dimension_numbers = #tpu.dot_dimension_numbers<[1], [0], [0], [1], [0, 0, 1, 1], [], []>} : vector<8x32xbf16>, vector<32x1xbf16>, vector<8x1xf32> -> vector<8x1xf32>
    %932 = arith.addf %852, %931 : vector<8x1xf32>
    %933 = tpu.concatenate %907, %932 in 1 : vector<8x1xf32>, vector<8x1xf32> -> vector<8x2xf32>
    %c0_415 = arith.constant 0 : index
    %c0_416 = arith.constant 0 : index
    %c0_417 = arith.constant 0 : index
    %934 = vector.load %arg21[%c0_415, %c0_416, %c0_417] : memref<1x8x2xf32, #tpu.memory_space<vmem>>, vector<1x8x2xf32>
    %935 = vector.shape_cast %934 : vector<1x8x2xf32> to vector<8x2xf32>
    %936 = vector.shape_cast %933 : vector<8x2xf32> to vector<1x8x2xf32>
    tpu.vector_store %arg21[%c0_415, %c0_416, %c0_417], %936 {strides = array<i32>} : memref<1x8x2xf32, #tpu.memory_space<vmem>>, vector<1x8x2xf32>,
    return
  }
  func.func @transform_0(%arg0: i32) -> (i32, i32, i32) {
    %c0_i32 = arith.constant 0 : i32
    %c0_i32_0 = arith.constant 0 : i32
    %c0_i32_1 = arith.constant 0 : i32
    return %arg0, %c0_i32, %c0_i32_0 : i32, i32, i32
  }
  func.func @transform_1(%arg0: i32) -> (i32, i32) {
    %c0_i32 = arith.constant 0 : i32
    %c0_i32_0 = arith.constant 0 : i32
    %c0_i32_1 = arith.constant 0 : i32
    return %c0_i32, %c0_i32_0 : i32, i32
  }
  func.func @transform_2(%arg0: i32) -> (i32, i32) {
    %c0_i32 = arith.constant 0 : i32
    %c0_i32_0 = arith.constant 0 : i32
    %c0_i32_1 = arith.constant 0 : i32
    return %c0_i32, %c0_i32_0 : i32, i32
  }
  func.func @transform_3(%arg0: i32) -> (i32, i32) {
    %c0_i32 = arith.constant 0 : i32
    %c0_i32_0 = arith.constant 0 : i32
    %c0_i32_1 = arith.constant 0 : i32
    return %c0_i32, %c0_i32_0 : i32, i32
  }
  func.func @transform_4(%arg0: i32) -> (i32, i32, i32) {
    %c0_i32 = arith.constant 0 : i32
    %c0_i32_0 = arith.constant 0 : i32
    %c0_i32_1 = arith.constant 0 : i32
    %c0_i32_2 = arith.constant 0 : i32
    return %c0_i32, %c0_i32_0, %c0_i32_1 : i32, i32, i32
  }
  func.func @transform_5(%arg0: i32) -> (i32, i32, i32) {
    %c0_i32 = arith.constant 0 : i32
    %c0_i32_0 = arith.constant 0 : i32
    %c0_i32_1 = arith.constant 0 : i32
    %c0_i32_2 = arith.constant 0 : i32
    return %c0_i32, %c0_i32_0, %c0_i32_1 : i32, i32, i32
  }
  func.func @transform_6(%arg0: i32) -> (i32, i32, i32) {
    %c0_i32 = arith.constant 0 : i32
    %c0_i32_0 = arith.constant 0 : i32
    %c0_i32_1 = arith.constant 0 : i32
    %c0_i32_2 = arith.constant 0 : i32
    return %c0_i32, %c0_i32_0, %c0_i32_1 : i32, i32, i32
  }
  func.func @transform_7(%arg0: i32) -> (i32, i32, i32) {
    %c0_i32 = arith.constant 0 : i32
    %c0_i32_0 = arith.constant 0 : i32
    %c0_i32_1 = arith.constant 0 : i32
    %c0_i32_2 = arith.constant 0 : i32
    return %c0_i32, %c0_i32_0, %c0_i32_1 : i32, i32, i32
  }
  func.func @transform_8(%arg0: i32) -> (i32, i32, i32) {
    %c0_i32 = arith.constant 0 : i32
    %c0_i32_0 = arith.constant 0 : i32
    %c0_i32_1 = arith.constant 0 : i32
    %c0_i32_2 = arith.constant 0 : i32
    return %c0_i32, %c0_i32_0, %c0_i32_1 : i32, i32, i32
  }
  func.func @transform_9(%arg0: i32) -> (i32, i32, i32) {
    %c0_i32 = arith.constant 0 : i32
    %c0_i32_0 = arith.constant 0 : i32
    %c0_i32_1 = arith.constant 0 : i32
    %c0_i32_2 = arith.constant 0 : i32
    return %c0_i32, %c0_i32_0, %c0_i32_1 : i32, i32, i32
  }
  func.func @transform_10(%arg0: i32) -> (i32, i32, i32) {
    %c0_i32 = arith.constant 0 : i32
    %c0_i32_0 = arith.constant 0 : i32
    %c0_i32_1 = arith.constant 0 : i32
    %c0_i32_2 = arith.constant 0 : i32
    return %c0_i32, %c0_i32_0, %c0_i32_1 : i32, i32, i32
  }
  func.func @transform_11(%arg0: i32) -> (i32, i32) {
    %c0_i32 = arith.constant 0 : i32
    %c0_i32_0 = arith.constant 0 : i32
    %c0_i32_1 = arith.constant 0 : i32
    return %c0_i32, %c0_i32_0 : i32, i32
  }
  func.func @transform_12(%arg0: i32) -> (i32, i32) {
    %c0_i32 = arith.constant 0 : i32
    %c0_i32_0 = arith.constant 0 : i32
    %c0_i32_1 = arith.constant 0 : i32
    return %c0_i32, %c0_i32_0 : i32, i32
  }
  func.func @transform_13(%arg0: i32) -> (i32, i32) {
    %c0_i32 = arith.constant 0 : i32
    %c0_i32_0 = arith.constant 0 : i32
    %c0_i32_1 = arith.constant 0 : i32
    return %c0_i32, %c0_i32_0 : i32, i32
  }
  func.func @transform_14(%arg0: i32) -> (i32, i32) {
    %c0_i32 = arith.constant 0 : i32
    %c0_i32_0 = arith.constant 0 : i32
    %c0_i32_1 = arith.constant 0 : i32
    return %c0_i32, %c0_i32_0 : i32, i32
  }
  func.func @transform_15(%arg0: i32) -> (i32, i32) {
    %c0_i32 = arith.constant 0 : i32
    %c0_i32_0 = arith.constant 0 : i32
    %c0_i32_1 = arith.constant 0 : i32
    return %c0_i32, %c0_i32_0 : i32, i32
  }
  func.func @transform_16(%arg0: i32) -> (i32, i32) {
    %c0_i32 = arith.constant 0 : i32
    %c0_i32_0 = arith.constant 0 : i32
    %c0_i32_1 = arith.constant 0 : i32
    return %c0_i32, %c0_i32_0 : i32, i32
  }
  func.func @transform_17(%arg0: i32) -> (i32, i32) {
    %c0_i32 = arith.constant 0 : i32
    %c0_i32_0 = arith.constant 0 : i32
    %c0_i32_1 = arith.constant 0 : i32
    return %c0_i32, %c0_i32_0 : i32, i32
  }
  func.func @transform_18(%arg0: i32) -> (i32, i32) {
    %c0_i32 = arith.constant 0 : i32
    %c0_i32_0 = arith.constant 0 : i32
    %c0_i32_1 = arith.constant 0 : i32
    return %c0_i32, %c0_i32_0 : i32, i32
  }
  func.func @transform_19(%arg0: i32) -> (i32, i32) {
    %c0_i32 = arith.constant 0 : i32
    %c0_i32_0 = arith.constant 0 : i32
    %c0_i32_1 = arith.constant 0 : i32
    return %c0_i32, %c0_i32_0 : i32, i32
  }
  func.func @transform_20(%arg0: i32) -> (i32, i32, i32) {
    %c0_i32 = arith.constant 0 : i32
    %c0_i32_0 = arith.constant 0 : i32
    %c0_i32_1 = arith.constant 0 : i32
    return %arg0, %c0_i32, %c0_i32_0 : i32, i32, i32
  }
}

</mosaic_0001>

<bundles_post_ra>
// kernel: radflow_forward.1
= control target key start
LH: loop header
LB: loop body
LE: loop exit
PB: predicated region body
PF: predicated region fallthrough
CT: control target
= control target key end

     0   :  { %s5786_s0 = inlined_call_operand.vmem [shape: f32[4,16,1], index: 0, kind: input, shape index: {}]   ;;  %s5787_s1 = inlined_call_operand.vmem [shape: bf16[8,8], index: 1, kind: input, shape index: {}]   ;;  %s5788_s2 = inlined_call_operand.vmem [shape: bf16[1,32], index: 2, kind: input, shape index: {}]   ;;  %s5789_s3 = inlined_call_operand.hbm [shape: f32[1,32], index: 3, kind: input, shape index: {}]   ;;  %s5790_s4 = inlined_call_operand.vmem [shape: bf16[2,32,128], index: 4, kind: input, shape index: {}]   ;;  %s5791_s5 = inlined_call_operand.vmem [shape: bf16[2,32,128], index: 5, kind: input, shape index: {}]   ;;  %s5792_s6 = inlined_call_operand.hbm [shape: f32[2,1,128], index: 6, kind: input, shape index: {}]   ;;  %s5793_s7 = inlined_call_operand.hbm [shape: bf16[2,32,96], index: 7, kind: input, shape index: {}]   ;;  %s5794_s8 = inlined_call_operand.hbm [shape: f32[2,1,96], index: 8, kind: input, shape index: {}]   ;;  %s5795_s9 = inlined_call_operand.vmem [shape: bf16[2,96,96], index: 9, kind: input, shape index: {}]   ;;  %s5796_s10 = inlined_call_operand.hbm [shape: f32[2,1,96], index: 10, kind: input, shape index: {}]   ;;  %s5797_s11 = inlined_call_operand.vmem [shape: bf16[32,64], index: 11, kind: input, shape index: {}]   ;;  %s5798_s12 = inlined_call_operand.hbm [shape: f32[1,64], index: 12, kind: input, shape index: {}]   ;;  %s5799_s13 = inlined_call_operand.vmem [shape: bf16[32,64], index: 13, kind: input, shape index: {}]   ;;  %s5800_s14 = inlined_call_operand.hbm [shape: f32[1,64], index: 14, kind: input, shape index: {}]   ;;  %s5801_s15 = inlined_call_operand.hbm [shape: bf16[32,32], index: 15, kind: input, shape index: {}]   ;;  %s5802_s16 = inlined_call_operand.hbm [shape: f32[1,32], index: 16, kind: input, shape index: {}]   ;;  %s5803_s17 = inlined_call_operand.vmem [shape: bf16[32,1], index: 17, kind: input, shape index: {}]   ;;  %s5804_s18 = inlined_call_operand.vmem [shape: bf16[64,1], index: 18, kind: input, shape index: {}]   ;;  %s5805_s19 = inlined_call_operand.<no memory space> [shape: f32[1,1], index: 19, kind: input, shape index: {}]   ;;  %s5806_s20 = inlined_call_operand.vmem [shape: f32[4,8,2], index: 20, kind: output, shape index: {}]  }
   0x1   :  { %5814 = sst [smem:[#allocation29_spill]] %s5786_s0  ;;  %v25_v0 = vstv %s5805_s19 }
   0x2   :  { %5815 = sst [smem:[#allocation30_spill]] %s5787_s1  ;;  %26 = vst [vmem:[#allocation9] sm:$0x1] %v25_v0 }
   0x3   :  { %5816 = sst [smem:[#allocation31_spill]] %s5788_s2 }
   0x4   :  { %5817 = sst [smem:[#allocation32_spill]] %s5789_s3 }
   0x5   :  { %5818 = sst [smem:[#allocation33_spill]] %s5790_s4 }
   0x6   :  { %27 = vsyncpa [#allocation11], 0 }
   0x7   :  { %28 = vsyncpa [#allocation13], 0 }
   0x8   :  { %29 = vsyncpa [#allocation16], 0 }
   0x9   :  { %30 = vsyncpa [#allocation19], 0 }
   0xa   :  { %31 = vsyncpa [#allocation22], 0  ;;  %s5031_s23 = smov 0  }
   0xb LB: > { %s4901_s24 = smov [#allocation12]   ;;  %s5037_s25 = sadd.s32 4294967295, %s4899_s23   ;;  %s4899_s23 = sphi %s5031_s23, %s37_s23  }
   0xc   : > { %s528_s2 = sshll.u32 %s4901_s24, 4  ;;  %p3844_p0 = scmp.ge.s32.totalorder %s4899_s23, 1  ;;  %s529_s2 = int_to_ptr.vmem [resolvable:$true] %s528_s2 }
   0xd   : > { %p493_p1 = scmp.lt.s32.totalorder %s4899_s23, 5  ;;  %p5812_p2 = scmp.eq.s32.totalorder %s5037_s25, 0 }
   0xe   : > { %s4902_s3 = smov [#allocation15]   ;;  %s4903_s28 = smov [#allocation18]  }
   0xf   : > { %p5042_p3 = pnand %p3844_p0, %p493_p1  ;;  %s554_s26 = sshll.u32 %s4902_s3, 4  ;;  %s5048_s26 = int_to_ptr.vmem [resolvable:$true] %s554_s26 }
  0x10   : > { %s587_s4 = sshll.u32 %s4903_s28, 4  ;;  %s4650_s30 = scalar_lea.vmem %s529_s2, 32  ;;  %s5056_s4 = int_to_ptr.vmem [resolvable:$true] %s587_s4 }
  0x11   : > { %s5819_s19 = scalar_select %p5042_p3, 1, 0 }
  0x12   : > { %p4412_p4 = pneg %p5042_p3  ;;  %p4651_p7 = scmp.ne.s32.totalorder %s529_s2, %s4650_s30 }
  0x13   : > { %p4658_p10 = scmp.lt.s32.totalorder %s529_s2, %s529_s2  ;;  %p4659_p11 = scmp.lt.s32.totalorder %s4650_s30, %s4650_s30 }
  0x14   : > { %p5052_p5 = pnand %p5812_p2, %p4412_p4 }
  0x15   : > { %p4660_p12 = por %p4659_p11, %p4658_p10 }
  0x16   : > { %p5060_p6 = pneg %p5052_p5 }
  0x18   : > { %p4653_p8 = pnand %p4651_p7, %p5060_p6 }
  0x1a   : > { %p4654_p9 = pneg %p4653_p8 }
  0x1c   : > { %p4661_p13 = pnand %p4660_p12, %p4654_p9 }
  0x1e   : > { %4664 = shalt.err (!%p4661_p13)
}
  0x1f   : > { %s5808_s0 = smov 16   ;;  %s5809_s21 = smov 1  }
  0x20   : > { %4418 = dma.hbm_to_vmem [thread:$0]  (!%p5052_p5), %s5792_s6, 32, %s529_s2, [#allocation13], %s5808_s0, %s5808_s0, %s5809_s21  }
  0x21   : > { %s4676_s24 = scalar_lea.vmem %s5048_s26, 32  ;;  %p4684_p7 = scmp.lt.s32.totalorder %s5048_s26, %s5048_s26 }
  0x22   : > { %p4677_p0 = scmp.ne.s32.totalorder %s5048_s26, %s4676_s24  ;;  %p4685_p8 = scmp.lt.s32.totalorder %s4676_s24, %s4676_s24 }
  0x24   : > { %p4679_p1 = pnand %p4677_p0, %p5060_p6  ;;  %p4686_p9 = por %p4685_p8, %p4684_p7 }
  0x26   : > { %p4680_p4 = pneg %p4679_p1 }
  0x28   : > { %p4687_p10 = pnand %p4686_p9, %p4680_p4 }
  0x2a   : > { %4690 = shalt.err (!%p4687_p10)
}
  0x2b   : > { %4424 = dma.hbm_to_vmem [thread:$0]  (!%p5052_p5), %s5794_s8, 32, %s5048_s26, [#allocation16], %s5808_s0, %s5808_s0, %s5809_s21  }
  0x2c   : > { %s4702_s2 = scalar_lea.vmem %s5056_s4, 16  ;;  %s4709_s30 = scalar_lea.vmem %s5056_s4, 32 }
  0x2d   : > { %p4703_p11 = scmp.ne.s32.totalorder %s5056_s4, %s4702_s2  ;;  %p4710_p0 = scmp.lt.s32.totalorder %s5056_s4, %s5056_s4 }
  0x2e   : > { %p4711_p1 = scmp.lt.s32.totalorder %s4709_s30, %s4702_s2 }
  0x2f   : > { %p4705_p12 = pnand %p4703_p11, %p5060_p6 }
  0x30   : > { %p4712_p4 = por %p4711_p1, %p4710_p0 }
  0x31   : > { %p4706_p13 = pneg %p4705_p12 }
  0x33   : > { %p4713_p7 = pnand %p4712_p4, %p4706_p13 }
  0x35   : > { %4716 = shalt.err (!%p4713_p7)
}
  0x36   : > { %4430 = dma.hbm_to_vmem [thread:$0]  (!%p5052_p5), %s5798_s12, 16, %s5056_s4, [#allocation19]  }
  0x37   : > { %s4906_s26 = smov [#allocation21]   ;;  %s4907_s3 = smov [#allocation10]  }
  0x38   : > { %s611_s24 = sshll.u32 %s4906_s26, 4  ;;  %s512_s28 = sshll.u32 %s4907_s3, 4  ;;  %s612_s24 = int_to_ptr.vmem [resolvable:$true] %s611_s24  ;;  %s513_s28 = int_to_ptr.vmem [resolvable:$true] %s512_s28 }
  0x39   : > { %s4728_s0 = scalar_lea.vmem %s612_s24, 256  ;;  %p4736_p11 = scmp.lt.s32.totalorder %s612_s24, %s612_s24 }
  0x3a   : > { %p4729_p8 = scmp.ne.s32.totalorder %s612_s24, %s4728_s0  ;;  %p4737_p12 = scmp.lt.s32.totalorder %s4728_s0, %s4728_s0 }
  0x3c   : > { %p4731_p9 = pnand %p4729_p8, %p5060_p6  ;;  %p4738_p13 = por %p4737_p12, %p4736_p11 }
  0x3e   : > { %p4732_p10 = pneg %p4731_p9 }
  0x40   : > { %p4739_p0 = pnand %p4738_p13, %p4732_p10 }
  0x42   : > { %4742 = shalt.err (!%p4739_p0)
}
  0x43   : > { %s5810_s2 = smov 64   ;;  %s5811_s4 = smov 4  }
  0x44   : > { %4436 = dma.hbm_to_vmem [thread:$0]  (!%p5052_p5), %s5801_s15, 256, %s612_s24, [#allocation22], %s5810_s2, %s5810_s2, %s5811_s4  }
  0x45   : > { %s4754_s22 = scalar_lea.vmem %s513_s28, 16  ;;  %s4761_s0 = scalar_lea.vmem %s513_s28, 32 }
  0x46   : > { %p4755_p1 = scmp.ne.s32.totalorder %s513_s28, %s4754_s22  ;;  %p4762_p8 = scmp.lt.s32.totalorder %s513_s28, %s513_s28 }
  0x47   : > { %p4763_p9 = scmp.lt.s32.totalorder %s4761_s0, %s4754_s22 }
  0x48   : > { %p4757_p4 = pnand %p4755_p1, %p5060_p6 }
  0x49   : > { %p4764_p10 = por %p4763_p9, %p4762_p8 }
  0x4a   : > { %p4758_p7 = pneg %p4757_p4 }
  0x4c   : > { %p4765_p11 = pnand %p4764_p10, %p4758_p7 }
  0x4e   : > { %4768 = shalt.err (!%p4765_p11)
}
  0x4f   : > { %s5822_s21 = sld [smem:[#allocation32_spill]]  ;;  %s4910_s30 = smov [#allocation14]  }
  0x50   : > { %s541_s24 = sshll.u32 %s4910_s30, 4  ;;  %s4911_s1 = smov [#allocation17]   ;;  %s542_s24 = int_to_ptr.vmem [resolvable:$true] %s541_s24 }
  0x51   : > { %s570_s2 = sshll.u32 %s4911_s1, 4  ;;  %s4780_s4 = scalar_lea.vmem %s542_s24, 512  ;;  %s571_s2 = int_to_ptr.vmem [resolvable:$true] %s570_s2 }
  0x52   : > { %p4781_p12 = scmp.ne.s32.totalorder %s542_s24, %s4780_s4  ;;  %p4788_p1 = scmp.lt.s32.totalorder %s542_s24, %s542_s24 }
  0x53   : > { %p4789_p4 = scmp.lt.s32.totalorder %s4780_s4, %s4780_s4 }
  0x54   : > { %p4783_p13 = pnand %p4781_p12, %p5060_p6 }
  0x55   : > { %4415 = dma.hbm_to_vmem [thread:$0]  (!%p5052_p5), %s5822_s21, 16, %s513_s28, [#allocation11]  }
  0x56   : > { %p4784_p0 = pneg %p4783_p13  ;;  %p4790_p7 = por %p4789_p4, %p4788_p1 }
  0x58   : > { %p4791_p8 = pnand %p4790_p7, %p4784_p0 }
  0x5a   : > { %4794 = shalt.err (!%p4791_p8)
}
  0x5b   : > { %s5823_s22 = smov 4   ;;  %s5824_s21 = smov 64  }
  0x5c   : > { %4421 = dma.hbm_to_vmem [thread:$0]  (!%p5052_p5), %s5793_s7, 512, %s542_s24, [#allocation13], %s5824_s21, %s5824_s21, %s5823_s22  }
  0x5d   : > { %s4806_s26 = scalar_lea.vmem %s571_s2, 32  ;;  %p4814_p12 = scmp.lt.s32.totalorder %s571_s2, %s571_s2 }
  0x5e   : > { %p4807_p9 = scmp.ne.s32.totalorder %s571_s2, %s4806_s26  ;;  %p4815_p13 = scmp.lt.s32.totalorder %s4806_s26, %s4806_s26 }
  0x60   : > { %p4809_p10 = pnand %p4807_p9, %p5060_p6  ;;  %p4816_p1 = por %p4815_p13, %p4814_p12 }
  0x62   : > { %p4810_p11 = pneg %p4809_p10 }
  0x64   : > { %p4817_p0 = pnand %p4816_p1, %p4810_p11 }
  0x66   : > { %4820 = shalt.err (!%p4817_p0)
}
  0x67   : > { %s5825_s4 = smov 1   ;;  %s5826_s3 = smov 16  }
  0x68   : > { %4427 = dma.hbm_to_vmem [thread:$0]  (!%p5052_p5), %s5796_s10, 32, %s571_s2, [#allocation16], %s5826_s3, %s5826_s3, %s5825_s4  }
  0x69   : > { %s4912_s24 = smov [#allocation20]   ;;  %s4913_s21 = smov [#allocation23]  }
  0x6a   : > { %s601_s22 = sshll.u32 %s4912_s24, 4  ;;  %s625_s28 = sshll.u32 %s4913_s21, 4  ;;  %s602_s22 = int_to_ptr.vmem [resolvable:$true] %s601_s22  ;;  %s626_s28 = int_to_ptr.vmem [resolvable:$true] %s625_s28 }
  0x6b   : > { %s4832_s0 = scalar_lea.vmem %s602_s22, 16  ;;  %s4839_s26 = scalar_lea.vmem %s602_s22, 32 }
  0x6c   : > { %p4833_p4 = scmp.ne.s32.totalorder %s602_s22, %s4832_s0  ;;  %p4840_p9 = scmp.lt.s32.totalorder %s602_s22, %s602_s22 }
  0x6d   : > { %p4841_p10 = scmp.lt.s32.totalorder %s4839_s26, %s4832_s0 }
  0x6e   : > { %p4835_p7 = pnand %p4833_p4, %p5060_p6 }
  0x6f   : > { %p4842_p11 = por %p4841_p10, %p4840_p9 }
  0x70   : > { %p4836_p8 = pneg %p4835_p7 }
  0x72   : > { %p4843_p12 = pnand %p4842_p11, %p4836_p8 }
  0x74   : > { %4846 = shalt.err (!%p4843_p12)
}
  0x75   : > { %4433 = dma.hbm_to_vmem [thread:$0]  (!%p5052_p5), %s5800_s14, 16, %s602_s22, [#allocation19]  }
  0x76   : > { %s4858_s3 = scalar_lea.vmem %s626_s28, 16  ;;  %s4865_s30 = scalar_lea.vmem %s626_s28, 32 }
  0x77   : > { %p4859_p13 = scmp.ne.s32.totalorder %s626_s28, %s4858_s3  ;;  %p4866_p4 = scmp.lt.s32.totalorder %s626_s28, %s626_s28 }
  0x78   : > { %p4867_p7 = scmp.lt.s32.totalorder %s4865_s30, %s4858_s3 }
  0x79   : > { %p4861_p1 = pnand %p4859_p13, %p5060_p6 }
  0x7a   : > { %p4868_p2 = por %p4867_p7, %p4866_p4 }
  0x7b   : > { %p4862_p0 = pneg %p4861_p1 }
  0x7d   : > { %p4869_p3 = pnand %p4868_p2, %p4862_p0 }
  0x7f   : > { %4872 = shalt.err (!%p4869_p3)
}
  0x80   : > { %4439 = dma.hbm_to_vmem [thread:$0]  (!%p5052_p5), %s5802_s16, 16, %s626_s28, [#allocation22]  }
  0x81   : > { %p5827_p8 = scmp.ne.s32.totalorder %s5819_s19, 0 }
  0x82   : > { %p5828_p9 = scmp.eq.s32.totalorder (!%p5827_p8), %s5037_s25, 0 }
  0x83   : > { %655 = sbr.rel (%p5827_p8) target bundleno = 15209 (0x3b69), region = 100 }
  0x88   : > { %4878 = dma.done.wait (%p5828_p9), [#allocation11], 16   ;;  %p5829_p6 = pmov %p5828_p9 }
  0x8a   : > { %4880 = vsyncadd (%p5829_p6), [#allocation11], 4294967280  ;;  %p5830_p10 = pmov %p5829_p6 }
  0x8b   : > { %p5831_p2 = pmov %p5829_p6 }
  0x8c   : > { %4882 = dma.done.wait (%p5830_p10), [#allocation13], 544  }
  0x8d   : > { %4884 = vsyncadd (%p5831_p2), [#allocation13], 4294966752  ;;  %p5832_p3 = pmov %p5831_p2 }
  0x8e   : > { %p5833_p5 = pmov %p5831_p2 }
  0x8f   : > { %4886 = dma.done.wait (%p5832_p3), [#allocation16], 64  }
  0x90   : > { %4888 = vsyncadd (%p5833_p5), [#allocation16], 4294967232  ;;  %p5834_p11 = pmov %p5831_p2 }
  0x91   : > { %p5835_p12 = pmov %p5831_p2 }
  0x92   : > { %4890 = dma.done.wait (%p5834_p11), [#allocation19], 32  }
  0x93   : > { %4892 = vsyncadd (%p5835_p12), [#allocation19], 4294967264  ;;  %p5836_p13 = pmov %p5831_p2 }
  0x94   : > { %p5837_p1 = pmov %p5831_p2 }
  0x95   : > { %4894 = dma.done.wait (%p5836_p13), [#allocation22], 272  }
  0x96   : > { %4896 = vsyncadd (%p5837_p1), [#allocation22], 4294967024  ;;  %p744_p0 = scmp.lt.s32.totalorder %s5037_s25, 3  ;;  %v4914_v1 = vmov 0   ;;  %s5838_s22 = sld [smem:[#allocation29_spill]]  ;;  %vm783_vm0 = vcmask 261120   ;;  %v768_v9 = vlaneseq }
  0x97   : > { %4488 = vset.pattern.permute.xlu0 %v4914_v1  ;;  %s5839_s26 = sld [smem:[#allocation33_spill]]  ;;  %v5193_v6 = vld [vmem:[%s5791_s5 + $0x8] sm:$0xff]   ;;  %v4915_v7 = vmov 0.0   ;;  %vm4916_vm1 = vmmov 0   ;;  %v5216_v8 = vld [vmem:[%s5791_s5] sm:$0xff]   ;;  %vm999_vm2 = vcmask 254976  }
  0x98   : > { %s5843_s25 = smov (!%p744_p0, %s5037_s25), 3  ;;  %4090 = vmatprep.subr.bf16.mxu0 %v4915_v7  ;;  %786 = vst.msk [vmem:[#allocation3] sm:$0xff] %vm783_vm0, %v4915_v7  ;;  %787 = vst.msk [vmem:[#allocation3 + $0x8] sm:$0xff] %vm783_vm0, %v4915_v7  ;;  %4098 = vmatprep.subr.bf16.mxu1 %v4915_v7  ;;  %v5228_v10 = vshrl.u32 %v768_v9, 7  ;;  %s5840_s29 = sld [smem:[#allocation31_spill]]  ;;  %vm1741_vm3 = vcmask 785408  }
  0x99   : > { %s3979_s19 = sshll.u32 %s5843_s25, 4  ;;  %788 = vst.msk [vmem:[#allocation4] sm:$0xff] %vm783_vm0, %v4915_v7  ;;  %789 = vst.msk [vmem:[#allocation4 + $0x8] sm:$0xff] %vm783_vm0, %v4915_v7  ;;  %4099 = vmatpush3.bf16.msra.mxu1 %v5193_v6  ;;  %4094 = vmatprep.mubr.msk.bf16.mxu0 %vm4916_vm1, %v4915_v7  ;;  %v3868_v15 = vld [vmem:[#allocation10] ss:$0 sm:$0xff]  ;;  %vm2950_vm4 = vcmask 523264  }
  0x9a   : > { %4100 = vmatprep.subr.bf16.mxu1 %v4915_v7  ;;  %4102 = vmatprep.mubr.msk.bf16.mxu1 %vm4916_vm1, %v4915_v7  ;;  %v770_v13 = vsub.s32 0, %v5228_v10  ;;  %v4917_v29 = vmov 1983009808   ;;  %v3869_v32 = vld [vmem:[#allocation12] ss:$0 sm:$0xff]  ;;  %vm3015_vm5 = vcmask 531456  }
  0x9b   : > { %v868_v30 = vunpack.c.l.s4 %v4917_v29  ;;  %vm3034_vm7 = vcmask 130048   ;;  %vm3113_vm8 = vcmask 1043456   ;;  %s5841_s1 = sld [smem:[#allocation30_spill]]  ;;  %vm3109_vm9 = vcmask 64512   ;;  %s4922_s0 = smov 65  }
  0x9c   : > { %s748_s21 = scalar_lea.vmem %s5838_s22, %s3979_s19  ;;  %s4918_s22 = smov 64   ;;  %vm3421_vm11 = vcmask 7168   ;;  %vm3423_vm12 = vcmask 15360  }
  0x9d   : > { %v754_v2 = vld [vmem:[%s748_s21] sm:$0xff]  ;;  %v755_v3 = vld [vmem:[%s748_s21 + $0x8] sm:$0xff]  ;;  %4101 = vmatpush3.bf16.msra.mxu1 %v5216_v8  ;;  %v869_v31 = vunpack.c.0.s8 %v868_v30  ;;  %s4919_s21 = smov 32   ;;  %s3867_s2 = sshll.u32 %s5843_s25, 3 }
  0x9e   : > { %760 = vperm.xlu0 %4488, %v754_v2   ;;  %v4491_v4 = vld [vmem:[%s5839_s26 + $0x8] sm:$0xff]   ;;  %v4492_v5 = vld [vmem:[%s5839_s26] sm:$0xff]   ;;  %4114 = vmatprep.subr.bf16.mxu1 %v4915_v7  ;;  %s752_s30 = scalar_lea.vmem %s5806_s20, %s3867_s2 }
  0x9f   : > { %4091 = vmatpush3.bf16.msra.mxu0 %v4491_v4  ;;  %v756_v11 = vld [vmem:[%s5840_s29] sm:$0x1]  ;;  %v5250_v33 = vsub.s32 %v869_v31, %v5228_v10  ;;  %s4920_s29 = smov 96  }
  0xa0   : > { %4092 = vmatprep.subr.bf16.mxu0 %v4915_v7  ;;  %4103 = vmatmul.mubr.bf16.vlgmr.msra.gmra.mxu1 %v4914_v1  ;;  %v757_v12 = vunpack.c.l.bf16 %v756_v11 }
  0xa1   : > { %4115 = vmatpush3.bf16.msra.mxu1 %v5193_v6  ;;  %4118 = vmatprep.mubr.msk.bf16.mxu1 %vm4916_vm1, %v4915_v7 }
  0xa2   : > { %765 = vperm.xlu0 %4488, %v755_v3   ;;  %4116 = vmatprep.subr.bf16.mxu1 %v4915_v7  ;;  %v771_v14 = vrot.slane %v757_v12, %v770_v13 }
  0xa3   : > { %4093 = vmatpush3.bf16.msra.mxu0 %v4492_v5 }
  0xa4   : > { %4106 = vmatprep.subr.bf16.mxu0 %v4915_v7 }
  0xa5   : > { %4117 = vmatpush3.bf16.msra.mxu1 %v5216_v8 }
  0xa6   : > { %4130 = vmatprep.subr.bf16.mxu1 %v4915_v7 }
 0x119   : > { %v761_v16 = vpop.permute.xlu0 %760 }
 0x11a   : > { %v772_v17 = vmul.f32 %v771_v14, %v761_v16 }
 0x11c   : > { %v781_v18 = vadd.f32 %v3868_v15, %v772_v17 }
 0x11d   : > { %v766_v19 = vpop.permute.xlu0 %765 }
 0x11e   : > { %784 = vst.msk [vmem:[#allocation2] sm:$0xff] %vm783_vm0, %v781_v18  ;;  %v773_v20 = vmul.f32 %v771_v14, %v766_v19 }
 0x120   : > { %v782_v21 = vadd.f32 %v3868_v15, %v773_v20 }
 0x122   : > { %785 = vst.msk [vmem:[#allocation2 + $0x8] sm:$0xff] %vm783_vm0, %v782_v21 }
 0x125   : > { %v5236_v22 = vld [vmem:[#allocation2] sm:$0xff] }
 0x129   : > { %v5238_v23 = vld [vmem:[#allocation2 + $0x8] sm:$0xff] }
 0x12a   : > { %v796_v24 = vpack.c.bf16 %v5238_v23, %v5236_v22 }
 0x12c   : > { %4095 = vmatmul.mubr.msk.bf16.vlgmr.msra.gmra.mxu0 %vm783_vm0, %v796_v24 }
 0x12d   : > { %4107 = vmatpush3.bf16.msra.mxu0 %v5193_v6  ;;  %4110 = vmatprep.mubr.msk.bf16.mxu0 %vm4916_vm1, %v4915_v7 }
 0x12e   : > { %4108 = vmatprep.subr.bf16.mxu0 %v4915_v7 }
 0x131   : > { %4109 = vmatpush3.bf16.msra.mxu0 %v5216_v8 }
 0x132   : > { %4122 = vmatprep.subr.bf16.mxu0 %v4915_v7 }
 0x160   : > { %v966_v25 = vpop.f32.mrf.mxu1 }
 0x162   : > { %v4104_v26 = vpop.f32.mrf.mxu1 }
 0x164   : > { %v969_v27 = vpop.f32.mrf.mxu1 }
 0x166   : > { %v4105_v28 = vpop.f32.mrf.mxu1 }
 0x1ec   : > { %v857_v34 = vpop.f32.mrf.mxu0 }
 0x1ed   : > { %v858_v35 = vadd.f32 %v3869_v32, %v857_v34 }
 0x1ee   : > { %v4096_v36 = vpop.f32.mrf.mxu0 }
 0x1ef   : > { %v866_v37 = vcombine.high %v858_v35, %v858_v35  ;;  %v873_v38 = vrot.slane %v858_v35, %v5250_v33  ;;  %3873 = vst.sshfl [vmem:[#allocation5] sm:$0x3 pattern:$0x76325410] %v858_v35 }
 0x1f0   : > { %v860_v39 = vpop.f32.mrf.mxu0 }
 0x1f1   : > { %v880_v40 = vrot.slane %v866_v37, %v5250_v33  ;;  %v881_v41 = vcombine.high %v873_v38, %v873_v38  ;;  %3874 = vst.sshfl [vmem:[#allocation5 + $0x4] sm:$0x3 pattern:$0x76325410] %v866_v37  ;;  %v861_v42 = vadd.f32 %v3869_v32, %v860_v39 }
 0x1f2   : > { %v4097_v43 = vpop.f32.mrf.mxu0 }
 0x1f3   : > { %v882_v44 = vcombine.high %v880_v40, %v880_v40  ;;  %909 = vst [vmem:[#allocation5 + $0x2] sm:$0x3] %v881_v41  ;;  %v883_v45 = vcombine.high %v861_v42, %v861_v42  ;;  %v890_v46 = vrot.slane %v861_v42, %v5250_v33  ;;  %3875 = vst.sshfl [vmem:[#allocation5 + $0x8] sm:$0x3 pattern:$0x76325410] %v861_v42 }
 0x1f5   : > { %911 = vst [vmem:[#allocation5 + $0x6] sm:$0x3] %v882_v44  ;;  %v897_v47 = vrot.slane %v883_v45, %v5250_v33  ;;  %v898_v48 = vcombine.high %v890_v46, %v890_v46  ;;  %3876 = vst.sshfl [vmem:[#allocation5 + $0xc] sm:$0x3 pattern:$0x76325410] %v883_v45 }
 0x1f6   : > { %v916_v49 = vld [vmem:[#allocation5] sm:$0x3] }
 0x1f7   : > { %v899_v50 = vcombine.high %v897_v47, %v897_v47  ;;  %913 = vst [vmem:[#allocation5 + $0xa] sm:$0x3] %v898_v48  ;;  %v972_v51 = vadd.f32 %v966_v25, %v916_v49 }
 0x1f8   : > { %v1080_v32 = vld [vmem:[#allocation5 + $0x4] sm:$0x3] }
 0x1f9   : > { %915 = vst [vmem:[#allocation5 + $0xe] sm:$0x3] %v899_v50  ;;  %4527 = vtanh.f32 %v972_v51  ;;  %v973_v53 = vmul.f32 0.5, %v972_v51 }
 0x1fa   : > { %v1002_v4 = vld [vmem:[#allocation5 + $0x2] sm:$0x3] }
 0x1fb   : > { %4529 = vtanh.f32 %v973_v53 }
 0x206   : > { %v4528_v52 = vpop.eup %4527 }
 0x207   : > { %980 = vrot.lane.b32.xlu1 %v4528_v52, %s4918_s22 }
 0x208   : > { %v4530_v54 = vpop.eup %4529 }
 0x209   : > { %v975_v55 = vadd.f32 1.0, %v4530_v54  ;;  %v1158_v54 = vld [vmem:[#allocation5 + $0x6] sm:$0x3] }
 0x20b   : > { %v976_v56 = vmul.f32 0.5, %v975_v55 }
 0x20d   : > { %v978_v59 = vmul.f32 0.0, %v976_v56 }
 0x279   : > { %v981_v57 = vpop.permute.xlu1 %980 }
 0x27a   : > { %v983_v58 = vmul.f32 %v981_v57, %v976_v56 }
 0x27c   : > { %985 = vrot.lane.b32.xlu1 %v983_v58, %s4919_s21 }
 0x2ee   : > { %v986_v60 = vpop.permute.xlu1 %985 }
 0x2ef   : > { %v988_v61 = vadd.f32 %v986_v60, %v978_v59 }
 0x2f1   : > { %4531 = vtanh.f32 %v988_v61 }
 0x2fe   : > { %v4532_v62 = vpop.eup %4531 }
 0x2ff   : > { %991 = vrot.lane.b32.xlu0 %v4532_v62, %s4918_s22 }
 0x371   : > { %v992_v63 = vpop.permute.xlu0 %991 }
 0x372   : > { %v5259_v0 = vmul.f32 %v992_v63, %v976_v56 }
 0x374   : > { %v1003_v2 = vpack.c.bf16 %v5259_v0, %v5259_v0 }
 0x376   : > { %1005 = vrot.lane.b32.xlu1 %v1003_v2, %s4919_s21 }
 0x3e8   : > { %v1006_v3 = vpop.permute.xlu1 %1005 }
 0x3e9   : > { %4111 = vmatmul.mubr.msk.bf16.vlgmr.msra.gmra.mxu0 %vm783_vm0, %v1006_v3 }
 0x3ea   : > { %4123 = vmatpush3.bf16.msra.mxu0 %v5193_v6  ;;  %4126 = vmatprep.mubr.msk.bf16.mxu0 %vm4916_vm1, %v4915_v7 }
 0x3eb   : > { %4124 = vmatprep.subr.bf16.mxu0 %v4915_v7 }
 0x3ee   : > { %4125 = vmatpush3.bf16.msra.mxu0 %v5216_v8 }
 0x3ef   : > { %4138 = vmatprep.subr.bf16.mxu0 %v4915_v7 }
 0x4a9   : > { %v1044_v5 = vpop.f32.mrf.mxu0 }
 0x4aa   : > { %v1050_v11 = vadd.f32 %v1044_v5, %v1002_v4 }
 0x4ab   : > { %v4112_v12 = vpop.f32.mrf.mxu0 }
 0x4ac   : > { %4533 = vtanh.f32 %v1050_v11  ;;  %v1051_v16 = vmul.f32 0.5, %v1050_v11 }
 0x4ad   : > { %v1047_v13 = vpop.f32.mrf.mxu0 }
 0x4ae   : > { %4535 = vtanh.f32 %v1051_v16 }
 0x4af   : > { %v4113_v14 = vpop.f32.mrf.mxu0 }
 0x4b9   : > { %v4534_v15 = vpop.eup %4533 }
 0x4ba   : > { %1058 = vrot.lane.b32.xlu0 %v4534_v15, %s4918_s22 }
 0x4bb   : > { %v4536_v17 = vpop.eup %4535 }
 0x4bc   : > { %v1053_v18 = vadd.f32 1.0, %v4536_v17 }
 0x4be   : > { %v1054_v19 = vmul.f32 0.5, %v1053_v18  ;;  %v1236_v18 = vld [vmem:[#allocation5 + $0x8] sm:$0x3] }
 0x4c0   : > { %v1056_v24 = vmul.f32 %v1054_v19, %v988_v61 }
 0x52c   : > { %v1059_v20 = vpop.permute.xlu0 %1058 }
 0x52d   : > { %v1061_v21 = vmul.f32 %v1059_v20, %v1054_v19 }
 0x52f   : > { %1063 = vrot.lane.b32.xlu1 %v1061_v21, %s4919_s21 }
 0x5a1   : > { %v1064_v25 = vpop.permute.xlu1 %1063 }
 0x5a2   : > { %v1066_v26 = vadd.f32 %v1064_v25, %v1056_v24 }
 0x5a4   : > { %4537 = vtanh.f32 %v1066_v26 }
 0x5b1   : > { %v4538_v27 = vpop.eup %4537 }
 0x5b2   : > { %1069 = vrot.lane.b32.xlu0 %v4538_v27, %s4918_s22 }
 0x624   : > { %v1070_v28 = vpop.permute.xlu0 %1069 }
 0x625   : > { %v5274_v29 = vmul.f32 %v1070_v28, %v1054_v19 }
 0x627   : > { %v1081_v30 = vpack.c.bf16 %v5274_v29, %v5274_v29 }
 0x629   : > { %1083 = vrot.lane.b32.xlu1 %v1081_v30, %s4919_s21 }
 0x69b   : > { %v1084_v31 = vpop.permute.xlu1 %1083 }
 0x69c   : > { %4119 = vmatmul.mubr.msk.bf16.vlgmr.msra.gmra.mxu1 %vm783_vm0, %v1084_v31 }
 0x69d   : > { %4131 = vmatpush3.bf16.msra.mxu1 %v5193_v6  ;;  %4134 = vmatprep.mubr.msk.bf16.mxu1 %vm4916_vm1, %v4915_v7 }
 0x69e   : > { %4132 = vmatprep.subr.bf16.mxu1 %v4915_v7 }
 0x6a1   : > { %4133 = vmatpush3.bf16.msra.mxu1 %v5216_v8 }
 0x6a2   : > { %4146 = vmatprep.subr.bf16.mxu1 %v4915_v7 }
 0x75c   : > { %v1122_v34 = vpop.f32.mrf.mxu1 }
 0x75d   : > { %v1128_v35 = vadd.f32 %v1122_v34, %v1080_v32 }
 0x75e   : > { %v4120_v36 = vpop.f32.mrf.mxu1 }
 0x75f   : > { %4539 = vtanh.f32 %v1128_v35  ;;  %v1129_v40 = vmul.f32 0.5, %v1128_v35 }
 0x760   : > { %v1125_v37 = vpop.f32.mrf.mxu1 }
 0x761   : > { %4541 = vtanh.f32 %v1129_v40 }
 0x762   : > { %v4121_v38 = vpop.f32.mrf.mxu1 }
 0x76c   : > { %v4540_v39 = vpop.eup %4539 }
 0x76d   : > { %1136 = vrot.lane.b32.xlu0 %v4540_v39, %s4918_s22 }
 0x76e   : > { %v4542_v41 = vpop.eup %4541 }
 0x76f   : > { %v1131_v42 = vadd.f32 1.0, %v4542_v41 }
 0x771   : > { %v1132_v43 = vmul.f32 0.5, %v1131_v42 }
 0x773   : > { %v1134_v46 = vmul.f32 %v1132_v43, %v1066_v26 }
 0x7df   : > { %v1137_v44 = vpop.permute.xlu0 %1136 }
 0x7e0   : > { %v1139_v45 = vmul.f32 %v1137_v44, %v1132_v43 }
 0x7e2   : > { %1141 = vrot.lane.b32.xlu1 %v1139_v45, %s4919_s21 }
 0x854   : > { %v1142_v47 = vpop.permute.xlu1 %1141 }
 0x855   : > { %v1144_v48 = vadd.f32 %v1142_v47, %v1134_v46 }
 0x857   : > { %4543 = vtanh.f32 %v1144_v48 }
 0x864   : > { %v4544_v49 = vpop.eup %4543 }
 0x865   : > { %1147 = vrot.lane.b32.xlu0 %v4544_v49, %s4918_s22 }
 0x8d7   : > { %v1148_v50 = vpop.permute.xlu0 %1147 }
 0x8d8   : > { %v5289_v51 = vmul.f32 %v1148_v50, %v1132_v43  ;;  %v1314_v43 = vld [vmem:[#allocation5 + $0xa] sm:$0x3] }
 0x8da   : > { %v1159_v52 = vpack.c.bf16 %v5289_v51, %v5289_v51 }
 0x8dc   : > { %1161 = vrot.lane.b32.xlu1 %v1159_v52, %s4919_s21 }
 0x94e   : > { %v1162_v53 = vpop.permute.xlu1 %1161 }
 0x94f   : > { %4127 = vmatmul.mubr.msk.bf16.vlgmr.msra.gmra.mxu0 %vm783_vm0, %v1162_v53 }
 0x950   : > { %4139 = vmatpush3.bf16.msra.mxu0 %v5193_v6  ;;  %4142 = vmatprep.mubr.msk.bf16.mxu0 %vm4916_vm1, %v4915_v7 }
 0x951   : > { %4140 = vmatprep.subr.bf16.mxu0 %v4915_v7 }
 0x954   : > { %4141 = vmatpush3.bf16.msra.mxu0 %v5216_v8 }
 0x955   : > { %4154 = vmatprep.subr.bf16.mxu0 %v4915_v7 }
 0xa0f   : > { %v1200_v55 = vpop.f32.mrf.mxu0 }
 0xa10   : > { %v1206_v56 = vadd.f32 %v1200_v55, %v1158_v54 }
 0xa11   : > { %v4128_v57 = vpop.f32.mrf.mxu0 }
 0xa12   : > { %4545 = vtanh.f32 %v1206_v56  ;;  %v1207_v61 = vmul.f32 0.5, %v1206_v56 }
 0xa13   : > { %v1203_v58 = vpop.f32.mrf.mxu0 }
 0xa14   : > { %4547 = vtanh.f32 %v1207_v61 }
 0xa15   : > { %v4129_v59 = vpop.f32.mrf.mxu0 }
 0xa1f   : > { %v4546_v60 = vpop.eup %4545 }
 0xa20   : > { %1214 = vrot.lane.b32.xlu0 %v4546_v60, %s4918_s22 }
 0xa21   : > { %v4548_v62 = vpop.eup %4547 }
 0xa22   : > { %v1209_v63 = vadd.f32 1.0, %v4548_v62 }
 0xa24   : > { %v1210_v2 = vmul.f32 0.5, %v1209_v63  ;;  %v1392_v63 = vld [vmem:[#allocation5 + $0xc] sm:$0x3] }
 0xa26   : > { %v1212_v5 = vmul.f32 %v1210_v2, %v1144_v48 }
 0xa92   : > { %v1215_v3 = vpop.permute.xlu0 %1214 }
 0xa93   : > { %v1217_v4 = vmul.f32 %v1215_v3, %v1210_v2 }
 0xa95   : > { %1219 = vrot.lane.b32.xlu1 %v1217_v4, %s4919_s21 }
 0xb07   : > { %v1220_v11 = vpop.permute.xlu1 %1219 }
 0xb08   : > { %v1222_v12 = vadd.f32 %v1220_v11, %v1212_v5 }
 0xb0a   : > { %4549 = vtanh.f32 %v1222_v12 }
 0xb17   : > { %v4550_v13 = vpop.eup %4549 }
 0xb18   : > { %1225 = vrot.lane.b32.xlu0 %v4550_v13, %s4918_s22 }
 0xb8a   : > { %v1226_v14 = vpop.permute.xlu0 %1225 }
 0xb8b   : > { %v5304_v15 = vmul.f32 %v1226_v14, %v1210_v2 }
 0xb8d   : > { %v1237_v16 = vpack.c.bf16 %v5304_v15, %v5304_v15 }
 0xb8f   : > { %1239 = vrot.lane.b32.xlu1 %v1237_v16, %s4919_s21 }
 0xc01   : > { %v1240_v17 = vpop.permute.xlu1 %1239 }
 0xc02   : > { %4135 = vmatmul.mubr.msk.bf16.vlgmr.msra.gmra.mxu1 %vm783_vm0, %v1240_v17 }
 0xc03   : > { %4147 = vmatpush3.bf16.msra.mxu1 %v5193_v6  ;;  %4150 = vmatprep.mubr.msk.bf16.mxu1 %vm4916_vm1, %v4915_v7 }
 0xc04   : > { %4148 = vmatprep.subr.bf16.mxu1 %v4915_v7 }
 0xc07   : > { %4149 = vmatpush3.bf16.msra.mxu1 %v5216_v8 }
 0xc08   : > { %4162 = vmatprep.subr.bf16.mxu1 %v4915_v7 }
 0xcc2   : > { %v1278_v19 = vpop.f32.mrf.mxu1 }
 0xcc3   : > { %v1284_v20 = vadd.f32 %v1278_v19, %v1236_v18 }
 0xcc4   : > { %v4136_v21 = vpop.f32.mrf.mxu1 }
 0xcc5   : > { %4551 = vtanh.f32 %v1284_v20  ;;  %v1285_v27 = vmul.f32 0.5, %v1284_v20 }
 0xcc6   : > { %v1281_v24 = vpop.f32.mrf.mxu1 }
 0xcc7   : > { %4553 = vtanh.f32 %v1285_v27 }
 0xcc8   : > { %v4137_v25 = vpop.f32.mrf.mxu1 }
 0xcd2   : > { %v4552_v26 = vpop.eup %4551 }
 0xcd3   : > { %1292 = vrot.lane.b32.xlu0 %v4552_v26, %s4918_s22 }
 0xcd4   : > { %v4554_v28 = vpop.eup %4553 }
 0xcd5   : > { %v1287_v30 = vadd.f32 1.0, %v4554_v28 }
 0xcd7   : > { %v1288_v31 = vmul.f32 0.5, %v1287_v30 }
 0xcd9   : > { %v1290_v35 = vmul.f32 %v1288_v31, %v1222_v12 }
 0xd45   : > { %v1293_v32 = vpop.permute.xlu0 %1292 }
 0xd46   : > { %v1295_v34 = vmul.f32 %v1293_v32, %v1288_v31 }
 0xd48   : > { %1297 = vrot.lane.b32.xlu1 %v1295_v34, %s4919_s21 }
 0xdba   : > { %v1298_v36 = vpop.permute.xlu1 %1297 }
 0xdbb   : > { %v1300_v37 = vadd.f32 %v1298_v36, %v1290_v35 }
 0xdbd   : > { %4555 = vtanh.f32 %v1300_v37 }
 0xdca   : > { %v4556_v38 = vpop.eup %4555 }
 0xdcb   : > { %1303 = vrot.lane.b32.xlu0 %v4556_v38, %s4918_s22 }
 0xe3d   : > { %v1304_v39 = vpop.permute.xlu0 %1303 }
 0xe3e   : > { %v5319_v40 = vmul.f32 %v1304_v39, %v1288_v31  ;;  %v1470_v31 = vld [vmem:[#allocation5 + $0xe] sm:$0x3] }
 0xe40   : > { %v1315_v41 = vpack.c.bf16 %v5319_v40, %v5319_v40 }
 0xe42   : > { %1317 = vrot.lane.b32.xlu1 %v1315_v41, %s4919_s21 }
 0xeb4   : > { %v1318_v42 = vpop.permute.xlu1 %1317 }
 0xeb5   : > { %4143 = vmatmul.mubr.msk.bf16.vlgmr.msra.gmra.mxu0 %vm783_vm0, %v1318_v42 }
 0xeb6   : > { %4155 = vmatpush3.bf16.msra.mxu0 %v5193_v6  ;;  %4158 = vmatprep.mubr.msk.bf16.mxu0 %vm4916_vm1, %v4915_v7 }
 0xeb7   : > { %4156 = vmatprep.subr.bf16.mxu0 %v4915_v7 }
 0xeba   : > { %4157 = vmatpush3.bf16.msra.mxu0 %v5216_v8 }
 0xebb   : > { %4170 = vmatprep.subr.bf16.mxu0 %v4915_v7 }
 0xf75   : > { %v1356_v44 = vpop.f32.mrf.mxu0 }
 0xf76   : > { %v1362_v45 = vadd.f32 %v1356_v44, %v1314_v43 }
 0xf77   : > { %v4144_v46 = vpop.f32.mrf.mxu0 }
 0xf78   : > { %4557 = vtanh.f32 %v1362_v45  ;;  %v1363_v6 = vmul.f32 0.5, %v1362_v45 }
 0xf79   : > { %v1359_v47 = vpop.f32.mrf.mxu0 }
 0xf7a   : > { %4559 = vtanh.f32 %v1363_v6 }
 0xf7b   : > { %v4145_v48 = vpop.f32.mrf.mxu0 }
 0xf85   : > { %v4558_v49 = vpop.eup %4557 }
 0xf86   : > { %1370 = vrot.lane.b32.xlu0 %v4558_v49, %s4918_s22 }
 0xf87   : > { %v4560_v50 = vpop.eup %4559 }
 0xf88   : > { %v1365_v52 = vadd.f32 1.0, %v4560_v50 }
 0xf8a   : > { %v1366_v53 = vmul.f32 0.5, %v1365_v52  ;;  %v4496_v52 = vld [vmem:[#allocation14] sm:$0xff]  }
 0xf8c   : > { %v1368_v8 = vmul.f32 %v1366_v53, %v1300_v37 }
 0xff8   : > { %v1371_v54 = vpop.permute.xlu0 %1370 }
 0xff9   : > { %v1373_v55 = vmul.f32 %v1371_v54, %v1366_v53 }
 0xffb   : > { %1375 = vrot.lane.b32.xlu1 %v1373_v55, %s4919_s21 }
0x106d   : > { %v1376_v56 = vpop.permute.xlu1 %1375 }
0x106e   : > { %v1378_v57 = vadd.f32 %v1376_v56, %v1368_v8 }
0x1070   : > { %4561 = vtanh.f32 %v1378_v57 }
0x107d   : > { %v4562_v58 = vpop.eup %4561 }
0x107e   : > { %1381 = vrot.lane.b32.xlu0 %v4562_v58, %s4918_s22 }
0x10f0   : > { %v1382_v59 = vpop.permute.xlu0 %1381 }
0x10f1   : > { %v5334_v60 = vmul.f32 %v1382_v59, %v1366_v53 }
0x10f3   : > { %v1393_v61 = vpack.c.bf16 %v5334_v60, %v5334_v60 }
0x10f5   : > { %1395 = vrot.lane.b32.xlu1 %v1393_v61, %s4919_s21 }
0x1167   : > { %v1396_v62 = vpop.permute.xlu1 %1395 }
0x1168   : > { %4151 = vmatmul.mubr.msk.bf16.vlgmr.msra.gmra.mxu1 %vm783_vm0, %v1396_v62 }
0x1169   : > { %4166 = vmatprep.mubr.msk.bf16.mxu1 %vm4916_vm1, %v4915_v7 }
0x1228   : > { %v1434_v2 = vpop.f32.mrf.mxu1 }
0x1229   : > { %v1440_v3 = vadd.f32 %v1434_v2, %v1392_v63 }
0x122a   : > { %v4152_v4 = vpop.f32.mrf.mxu1 }
0x122b   : > { %4563 = vtanh.f32 %v1440_v3  ;;  %v1441_v13 = vmul.f32 0.5, %v1440_v3 }
0x122c   : > { %v1437_v5 = vpop.f32.mrf.mxu1 }
0x122d   : > { %4565 = vtanh.f32 %v1441_v13 }
0x122e   : > { %v4153_v11 = vpop.f32.mrf.mxu1 }
0x1238   : > { %v4564_v12 = vpop.eup %4563 }
0x1239   : > { %1448 = vrot.lane.b32.xlu0 %v4564_v12, %s4918_s22 }
0x123a   : > { %v4566_v14 = vpop.eup %4565 }
0x123b   : > { %v1443_v16 = vadd.f32 1.0, %v4566_v14 }
0x123d   : > { %v1444_v17 = vmul.f32 0.5, %v1443_v16 }
0x123f   : > { %v1446_v20 = vmul.f32 %v1444_v17, %v1378_v57 }
0x12ab   : > { %v1449_v18 = vpop.permute.xlu0 %1448 }
0x12ac   : > { %v1451_v19 = vmul.f32 %v1449_v18, %v1444_v17 }
0x12ae   : > { %1453 = vrot.lane.b32.xlu1 %v1451_v19, %s4919_s21  ;;  %v4497_v19 = vld [vmem:[%s5795_s9 + $0x28] sm:$0xff]  }
0x1320   : > { %v1454_v21 = vpop.permute.xlu1 %1453 }
0x1321   : > { %v1456_v24 = vadd.f32 %v1454_v21, %v1446_v20  ;;  %v4498_v20 = vld [vmem:[%s5795_s9 + $0x20] sm:$0xff]   ;;  %v4499_v21 = vld [vmem:[%s5795_s9 + $0x18] sm:$0xff]  }
0x1323   : > { %4567 = vtanh.f32 %v1456_v24 }
0x1330   : > { %v4568_v25 = vpop.eup %4567 }
0x1331   : > { %1459 = vrot.lane.b32.xlu0 %v4568_v25, %s4918_s22  ;;  %v4501_v25 = vld [vmem:[%s5795_s9 + $0x8] sm:$0xff]  }
0x13a3   : > { %v1460_v26 = vpop.permute.xlu0 %1459 }
0x13a4   : > { %v1462_v27 = vmul.f32 %v1460_v26, %v1444_v17  ;;  %v4502_v26 = vld [vmem:[%s5795_s9] sm:$0xff]  }
0x13a6   : > { %v1471_v28 = vpack.c.bf16 %v1462_v27, %v1462_v27 }
0x13a8   : > { %1473 = vrot.lane.b32.xlu1 %v1471_v28, %s4919_s21 }
0x141a   : > { %v1474_v30 = vpop.permute.xlu1 %1473 }
0x141b   : > { %4159 = vmatmul.mubr.msk.bf16.vlgmr.msra.gmra.mxu0 %vm783_vm0, %v1474_v30 }
0x141c   : > { %4182 = vmatprep.mubr.msk.bf16.mxu0 %vm4916_vm1, %v4915_v7  ;;  %4171 = vmatpush3.bf16.msra.mxu0 %v4497_v19 }
0x141d   : > { %4172 = vmatprep.subr.bf16.mxu0 %v4915_v7 }
0x1420   : > { %4173 = vmatpush3.bf16.msra.mxu0 %v4498_v20 }
0x1421   : > { %4174 = vmatprep.subr.bf16.mxu0 %v4915_v7 }
0x1424   : > { %4175 = vmatpush3.bf16.msra.mxu0 %v4499_v21 }
0x1425   : > { %4176 = vmatprep.subr.bf16.mxu0 %v4915_v7 }
0x14db   : > { %v1512_v32 = vpop.f32.mrf.mxu0 }
0x14dc   : > { %v1518_v34 = vadd.f32 %v1512_v32, %v1470_v31 }
0x14dd   : > { %v4160_v35 = vpop.f32.mrf.mxu0 }
0x14de   : > { %4569 = vtanh.f32 %v1518_v34  ;;  %v1519_v39 = vmul.f32 0.5, %v1518_v34 }
0x14df   : > { %v1515_v36 = vpop.f32.mrf.mxu0 }
0x14e0   : > { %4571 = vtanh.f32 %v1519_v39 }
0x14e1   : > { %v4161_v37 = vpop.f32.mrf.mxu0 }
0x14eb   : > { %v4570_v38 = vpop.eup %4569 }
0x14ec   : > { %1526 = vrot.lane.b32.xlu0 %v4570_v38, %s4918_s22 }
0x14ed   : > { %v4572_v41 = vpop.eup %4571 }
0x14ee   : > { %v1521_v42 = vadd.f32 1.0, %v4572_v41 }
0x14f0   : > { %v1522_v43 = vmul.f32 0.5, %v1521_v42 }
0x14f2   : > { %v1524_v46 = vmul.f32 %v1522_v43, %v1456_v24  ;;  %v4500_v24 = vld [vmem:[%s5795_s9 + $0x10] sm:$0xff]  }
0x14f3   : > { %4177 = vmatpush3.bf16.msra.mxu0 %v4500_v24 }
0x14f4   : > { %4178 = vmatprep.subr.bf16.mxu0 %v4915_v7 }
0x14f7   : > { %4179 = vmatpush3.bf16.msra.mxu0 %v4501_v25 }
0x14f8   : > { %4180 = vmatprep.subr.bf16.mxu0 %v4915_v7 }
0x14fb   : > { %4181 = vmatpush3.bf16.msra.mxu0 %v4502_v26 }
0x14fc   : > { %4210 = vmatprep.subr.bf16.mxu0 %v4915_v7 }
0x155e   : > { %v1527_v44 = vpop.permute.xlu0 %1526 }
0x155f   : > { %v1529_v45 = vmul.f32 %v1527_v44, %v1522_v43 }
0x1561   : > { %1531 = vrot.lane.b32.xlu1 %v1529_v45, %s4919_s21 }
0x1565   : > { %996 = vrot.lane.b32.xlu1 %v5259_v0, %s4919_s21 }
0x1569   : > { %1152 = vrot.lane.b32.xlu1 %v5289_v51, %s4919_s21 }
0x156d   : > { %1308 = vrot.lane.b32.xlu1 %v5319_v40, %s4919_s21  ;;  %v4495_v40 = vld [vmem:[#allocation14 + $0x8] sm:$0xff]  }
0x156e   : > { %4163 = vmatpush3.bf16.msra.mxu1 %v4495_v40 }
0x156f   : > { %4164 = vmatprep.subr.bf16.mxu1 %v4915_v7 }
0x1571   : > { %1464 = vrot.lane.b32.xlu1 %v1462_v27, %s4919_s21  ;;  %v3886_v27 = vld [vmem:[#allocation15] ss:$0 sm:$0xff] }
0x1572   : > { %4165 = vmatpush3.bf16.msra.mxu1 %v4496_v52 }
0x1573   : > { %4186 = vmatprep.subr.bf16.mxu1 %v4915_v7 }
0x15d3   : > { %v1532_v47 = vpop.permute.xlu1 %1531 }
0x15d4   : > { %v1534_v48 = vadd.f32 %v1532_v47, %v1524_v46 }
0x15d6   : > { %4573 = vtanh.f32 %v1534_v48 }
0x15d7   : > { %v997_v49 = vpop.permute.xlu1 %996 }
0x15d8   : > { %1000 = vst.msk [vmem:[#allocation6] sm:$0x3] %vm999_vm2, %v997_v49 }
0x15db   : > { %v1153_v6 = vpop.permute.xlu1 %1152 }
0x15dc   : > { %1156 = vst.msk [vmem:[#allocation6 + $0x4] sm:$0x3] %vm999_vm2, %v1153_v6 }
0x15df   : > { %v1309_v0 = vpop.permute.xlu1 %1308  ;;  %v1547_v61 = vld [vmem:[#allocation6] sm:$0x3] }
0x15e0   : > { %1312 = vst.msk [vmem:[#allocation6 + $0x8] sm:$0x3] %vm999_vm2, %v1309_v0 }
0x15e3   : > { %v4574_v51 = vpop.eup %4573  ;;  %v1465_v50 = vpop.permute.xlu1 %1464  ;;  %v1549_v58 = vld [vmem:[#allocation6 + $0x4] sm:$0x3] }
0x15e4   : > { %1468 = vst.msk [vmem:[#allocation6 + $0xc] sm:$0x3] %vm999_vm2, %v1465_v50  ;;  %1537 = vrot.lane.b32.xlu0 %v4574_v51, %s4918_s22 }
0x15e7   : > { %v1551_v62 = vld [vmem:[#allocation6 + $0x8] sm:$0x3] }
0x15e8   : > { %1074 = vrot.lane.b32.xlu0 %v5274_v29, %s4919_s21 }
0x15eb   : > { %v1553_v3 = vld [vmem:[#allocation6 + $0xc] sm:$0x3] }
0x15ec   : > { %1230 = vrot.lane.b32.xlu0 %v5304_v15, %s4919_s21 }
0x15f0   : > { %1386 = vrot.lane.b32.xlu0 %v5334_v60, %s4919_s21 }
0x1656   : > { %v1538_v53 = vpop.permute.xlu0 %1537 }
0x1657   : > { %v1540_v54 = vmul.f32 %v1538_v53, %v1522_v43  ;;  %v4503_v53 = vld [vmem:[%s5839_s26 + $0x18] sm:$0xff]  }
0x1659   : > { %1542 = vrot.lane.b32.xlu0 %v1540_v54, %s4919_s21  ;;  %v4504_v54 = vld [vmem:[%s5839_s26 + $0x10] sm:$0xff]  }
0x165a   : > { %v1075_v55 = vpop.permute.xlu0 %1074 }
0x165b   : > { %1078 = vst.msk [vmem:[#allocation6 + $0x2] sm:$0x3] %vm999_vm2, %v1075_v55  ;;  %v5421_v55 = vld [vmem:[%s5791_s5 + $0x18] sm:$0xff]  }
0x165e   : > { %v1231_v29 = vpop.permute.xlu0 %1230 }
0x165f   : > { %1234 = vst.msk [vmem:[#allocation6 + $0x6] sm:$0x3] %vm999_vm2, %v1231_v29  ;;  %v5428_v29 = vld [vmem:[%s5791_s5 + $0x10] sm:$0xff]  }
0x1662   : > { %v1387_v15 = vpop.permute.xlu0 %1386  ;;  %v1548_v57 = vld [vmem:[#allocation6 + $0x2] sm:$0x3] }
0x1663   : > { %1390 = vst.msk [vmem:[#allocation6 + $0xa] sm:$0x3] %vm999_vm2, %v1387_v15  ;;  %v1563_v63 = vcombine.low %v1547_v61, %v1548_v57  ;;  %v3890_v15 = vld [vmem:[#allocation17] ss:$0 sm:$0xff] }
0x1665   : > { %v1571_v12 = vrot.slane %v1563_v63, %v5250_v33 }
0x1666   : > { %v1550_v56 = vld [vmem:[#allocation6 + $0x6] sm:$0x3] }
0x1667   : > { %v1564_v60 = vcombine.low %v1549_v58, %v1550_v56 }
0x1669   : > { %v1578_v5 = vrot.slane %v1564_v60, %v5250_v33 }
0x166a   : > { %v1552_v59 = vld [vmem:[#allocation6 + $0xa] sm:$0x3] }
0x166b   : > { %v1580_v2 = vcombine.low %v1551_v62, %v1552_v59  ;;  %v1579_v16 = vcombine.low %v1571_v12, %v1578_v5 }
0x166d   : > { %v1588_v13 = vrot.slane %v1580_v2, %v5250_v33 }
0x16cb   : > { %v1543_v8 = vpop.permute.xlu0 %1542 }
0x16cc   : > { %1546 = vst.msk [vmem:[#allocation6 + $0xe] sm:$0x3] %vm999_vm2, %v1543_v8 }
0x16d3   : > { %v1554_v4 = vld [vmem:[#allocation6 + $0xe] sm:$0x3] }
0x16d4   : > { %v1581_v11 = vcombine.low %v1553_v3, %v1554_v4 }
0x16d6   : > { %v1595_v14 = vrot.slane %v1581_v11, %v5250_v33 }
0x16d8   : > { %v1596_v17 = vcombine.low %v1588_v13, %v1595_v14 }
0x16da   : > { %v1599_v18 = vpack.c.bf16 %v1596_v17, %v1579_v16 }
0x16dc   : > { %4167 = vmatmul.mubr.msk.bf16.vlgmr.msra.gmra.mxu1 %vm783_vm0, %v1599_v18 }
0x16dd   : > { %4190 = vmatprep.mubr.msk.bf16.mxu1 %vm4916_vm1, %v4915_v7  ;;  %4187 = vmatpush3.bf16.msra.mxu1 %v4503_v53 }
0x16de   : > { %4188 = vmatprep.subr.bf16.mxu1 %v4915_v7 }
0x16e1   : > { %4189 = vmatpush3.bf16.msra.mxu1 %v4504_v54 }
0x16e2   : > { %4194 = vmatprep.subr.bf16.mxu1 %v4915_v7 }
0x179c   : > { %v1660_v28 = vpop.f32.mrf.mxu1 }
0x179d   : > { %v1661_v30 = vadd.f32 %v3886_v27, %v1660_v28 }
0x179e   : > { %v4168_v31 = vpop.f32.mrf.mxu1 }
0x179f   : > { %v1669_v32 = vmul.f32 %v1661_v30, %v1661_v30  ;;  %v1667_v6 = vmul.f32 0.5, %v1661_v30 }
0x17a0   : > { %v1663_v34 = vpop.f32.mrf.mxu1 }
0x17a1   : > { %v1671_v35 = vmul.f32 %v1669_v32, %v1661_v30  ;;  %v1664_v36 = vadd.f32 %v3886_v27, %v1663_v34 }
0x17a2   : > { %v4169_v37 = vpop.f32.mrf.mxu1 }
0x17a3   : > { %v1673_v38 = vmul.f32 0.044715, %v1671_v35  ;;  %v1670_v39 = vmul.f32 %v1664_v36, %v1664_v36  ;;  %v1668_v0 = vmul.f32 0.5, %v1664_v36 }
0x17a5   : > { %v1675_v41 = vadd.f32 %v1673_v38, %v1661_v30  ;;  %v1672_v42 = vmul.f32 %v1670_v39, %v1664_v36 }
0x17a7   : > { %v1677_v43 = vmul.f32 0.7978846, %v1675_v41  ;;  %v1674_v44 = vmul.f32 0.044715, %v1672_v42 }
0x17a9   : > { %4575 = vtanh.f32 %v1677_v43  ;;  %v1676_v45 = vadd.f32 %v1674_v44, %v1664_v36 }
0x17ab   : > { %v1678_v46 = vmul.f32 0.7978846, %v1676_v45 }
0x17ad   : > { %4577 = vtanh.f32 %v1678_v46 }
0x17b6   : > { %v4576_v47 = vpop.eup %4575 }
0x17b7   : > { %v1681_v48 = vadd.f32 1.0, %v4576_v47 }
0x17b9   : > { %v1683_v50 = vmul.f32 %v1681_v48, %v1667_v6 }
0x17ba   : > { %v4578_v49 = vpop.eup %4577 }
0x17bb   : > { %v1682_v51 = vadd.f32 1.0, %v4578_v49 }
0x17bd   : > { %v1684_v40 = vmul.f32 %v1682_v51, %v1668_v0 }
0x17bf   : > { %v1685_v52 = vpack.c.bf16 %v1684_v40, %v1683_v50 }
0x17c1   : > { %4183 = vmatmul.mubr.msk.bf16.vlgmr.msra.gmra.mxu0 %vm1741_vm3, %v1685_v52 }
0x17c2   : > { %4214 = vmatprep.mubr.msk.bf16.mxu0 %vm4916_vm1, %v4915_v7  ;;  %4211 = vmatpush3.bf16.msra.mxu0 %v5421_v55 }
0x17c3   : > { %4212 = vmatprep.subr.bf16.mxu0 %v4915_v7 }
0x17c6   : > { %4213 = vmatpush3.bf16.msra.mxu0 %v5428_v29 }
0x17c7   : > { %4226 = vmatprep.subr.bf16.mxu0 %v4915_v7 }
0x1881   : > { %v1779_v8 = vpop.f32.mrf.mxu0 }
0x1882   : > { %v5432_v56 = vadd.f32 %v3890_v15, %v1779_v8 }
0x1883   : > { %v4184_v57 = vpop.f32.mrf.mxu0 }
0x1884   : > { %v1786_v58 = vsub.f32 %v5236_v22, %v5432_v56  ;;  %v3906_v22 = vld [vmem:[#allocation12 + $0x1] ss:$0 sm:$0xff] }
0x1885   : > { %v1782_v59 = vpop.f32.mrf.mxu0 }
0x1886   : > { %1788 = vst.msk [vmem:[#allocation2] sm:$0xff] %vm783_vm0, %v1786_v58  ;;  %v5437_v60 = vadd.f32 %v3890_v15, %v1782_v59 }
0x1887   : > { %v4185_v61 = vpop.f32.mrf.mxu0 }
0x1888   : > { %v1787_v62 = vsub.f32 %v5238_v23, %v5437_v60 }
0x188a   : > { %1789 = vst.msk [vmem:[#allocation2 + $0x8] sm:$0xff] %vm783_vm0, %v1787_v62 }
0x188d   : > { %v5442_v63 = vld [vmem:[#allocation2] sm:$0xff] }
0x1891   : > { %v5444_v2 = vld [vmem:[#allocation2 + $0x8] sm:$0xff] }
0x1892   : > { %v1823_v3 = vpack.c.bf16 %v5444_v2, %v5442_v63 }
0x1894   : > { %4191 = vmatmul.mubr.msk.bf16.vlgmr.msra.gmra.mxu1 %vm783_vm0, %v1823_v3 }
0x1895   : > { %4195 = vmatpush3.bf16.msra.mxu1 %v5421_v55  ;;  %4198 = vmatprep.mubr.msk.bf16.mxu1 %vm4916_vm1, %v4915_v7 }
0x1896   : > { %4196 = vmatprep.subr.bf16.mxu1 %v4915_v7 }
0x1899   : > { %4197 = vmatpush3.bf16.msra.mxu1 %v5428_v29 }
0x189a   : > { %4202 = vmatprep.subr.bf16.mxu1 %v4915_v7 }
0x189c   : > { %4199 = vmatmul.mubr.bf16.vlgmr.msra.gmra.mxu1 %v4914_v1 }
0x189d   : > { %4203 = vmatpush3.bf16.msra.mxu1 %v5421_v55  ;;  %4206 = vmatprep.mubr.msk.bf16.mxu1 %vm4916_vm1, %v4915_v7 }
0x189e   : > { %4204 = vmatprep.subr.bf16.mxu1 %v4915_v7 }
0x18a1   : > { %4205 = vmatpush3.bf16.msra.mxu1 %v5428_v29 }
0x18a2   : > { %4218 = vmatprep.subr.bf16.mxu1 %v4915_v7 }
0x1954   : > { %v1886_v23 = vpop.f32.mrf.mxu1 }
0x1955   : > { %v1887_v4 = vadd.f32 %v3906_v22, %v1886_v23 }
0x1956   : > { %v4192_v5 = vpop.f32.mrf.mxu1 }
0x1957   : > { %v1895_v11 = vcombine.high %v1887_v4, %v1887_v4  ;;  %v1902_v12 = vrot.slane %v1887_v4, %v5250_v33  ;;  %3910 = vst.sshfl [vmem:[#allocation5] sm:$0x3 pattern:$0x76325410] %v1887_v4 }
0x1958   : > { %v1889_v1 = vpop.f32.mrf.mxu1 }
0x1959   : > { %v1909_v13 = vrot.slane %v1895_v11, %v5250_v33  ;;  %v1910_v14 = vcombine.high %v1902_v12, %v1902_v12  ;;  %3911 = vst.sshfl [vmem:[#allocation5 + $0x4] sm:$0x3 pattern:$0x76325410] %v1895_v11  ;;  %v1890_v16 = vadd.f32 %v3906_v22, %v1889_v1 }
0x195a   : > { %v4193_v17 = vpop.f32.mrf.mxu1 }
0x195b   : > { %v1911_v18 = vcombine.high %v1909_v13, %v1909_v13  ;;  %1938 = vst [vmem:[#allocation5 + $0x2] sm:$0x3] %v1910_v14  ;;  %v1912_v19 = vcombine.high %v1890_v16, %v1890_v16  ;;  %v1919_v20 = vrot.slane %v1890_v16, %v5250_v33  ;;  %3912 = vst.sshfl [vmem:[#allocation5 + $0x8] sm:$0x3 pattern:$0x76325410] %v1890_v16 }
0x195c   : > { %v1992_v21 = vpop.f32.mrf.mxu1 }
0x195d   : > { %1940 = vst [vmem:[#allocation5 + $0x6] sm:$0x3] %v1911_v18  ;;  %v1926_v24 = vrot.slane %v1912_v19, %v5250_v33  ;;  %v1927_v25 = vcombine.high %v1919_v20, %v1919_v20  ;;  %3913 = vst.sshfl [vmem:[#allocation5 + $0xc] sm:$0x3 pattern:$0x76325410] %v1912_v19 }
0x195e   : > { %v1945_v26 = vld [vmem:[#allocation5] sm:$0x3]  ;;  %v4200_v27 = vpop.f32.mrf.mxu1 }
0x195f   : > { %v1928_v28 = vcombine.high %v1926_v24, %v1926_v24  ;;  %1942 = vst [vmem:[#allocation5 + $0xa] sm:$0x3] %v1927_v25  ;;  %v1998_v30 = vadd.f32 %v1992_v21, %v1945_v26 }
0x1960   : > { %v1995_v31 = vpop.f32.mrf.mxu1  ;;  %v2102_v12 = vld [vmem:[#allocation5 + $0x4] sm:$0x3] }
0x1961   : > { %1944 = vst [vmem:[#allocation5 + $0xe] sm:$0x3] %v1928_v28  ;;  %4579 = vtanh.f32 %v1998_v30  ;;  %v1999_v35 = vmul.f32 0.5, %v1998_v30 }
0x1962   : > { %v4201_v32 = vpop.f32.mrf.mxu1  ;;  %v2026_v6 = vld [vmem:[#allocation5 + $0x2] sm:$0x3] }
0x1963   : > { %4581 = vtanh.f32 %v1999_v35 }
0x196e   : > { %v4580_v34 = vpop.eup %4579 }
0x196f   : > { %2006 = vrot.lane.b32.xlu1 %v4580_v34, %s4918_s22 }
0x1970   : > { %v4582_v36 = vpop.eup %4581 }
0x1971   : > { %v2001_v37 = vadd.f32 1.0, %v4582_v36 }
0x1973   : > { %v2002_v38 = vmul.f32 0.5, %v2001_v37  ;;  %v2178_v37 = vld [vmem:[#allocation5 + $0x6] sm:$0x3] }
0x1975   : > { %v2004_v42 = vmul.f32 0.0, %v2002_v38 }
0x19e1   : > { %v2007_v39 = vpop.permute.xlu1 %2006 }
0x19e2   : > { %v2009_v41 = vmul.f32 %v2007_v39, %v2002_v38 }
0x19e4   : > { %2011 = vrot.lane.b32.xlu0 %v2009_v41, %s4919_s21 }
0x1a56   : > { %v2012_v43 = vpop.permute.xlu0 %2011 }
0x1a57   : > { %v2014_v44 = vadd.f32 %v2012_v43, %v2004_v42 }
0x1a59   : > { %4583 = vtanh.f32 %v2014_v44 }
0x1a66   : > { %v4584_v45 = vpop.eup %4583 }
0x1a67   : > { %2017 = vrot.lane.b32.xlu1 %v4584_v45, %s4918_s22 }
0x1ad9   : > { %v2018_v46 = vpop.permute.xlu1 %2017 }
0x1ada   : > { %v5469_v47 = vmul.f32 %v2018_v46, %v2002_v38 }
0x1adc   : > { %v2027_v48 = vpack.c.bf16 %v5469_v47, %v5469_v47 }
0x1ade   : > { %2029 = vrot.lane.b32.xlu0 %v2027_v48, %s4919_s21 }
0x1b50   : > { %v2030_v49 = vpop.permute.xlu0 %2029 }
0x1b51   : > { %4207 = vmatmul.mubr.msk.bf16.vlgmr.msra.gmra.mxu1 %vm783_vm0, %v2030_v49 }
0x1b52   : > { %4219 = vmatpush3.bf16.msra.mxu1 %v5421_v55  ;;  %4222 = vmatprep.mubr.msk.bf16.mxu1 %vm4916_vm1, %v4915_v7 }
0x1b53   : > { %4220 = vmatprep.subr.bf16.mxu1 %v4915_v7 }
0x1b56   : > { %4221 = vmatpush3.bf16.msra.mxu1 %v5428_v29 }
0x1b57   : > { %4234 = vmatprep.subr.bf16.mxu1 %v4915_v7 }
0x1c11   : > { %v2068_v0 = vpop.f32.mrf.mxu1 }
0x1c12   : > { %v2074_v51 = vadd.f32 %v2068_v0, %v2026_v6 }
0x1c13   : > { %v4208_v50 = vpop.f32.mrf.mxu1 }
0x1c14   : > { %4585 = vtanh.f32 %v2074_v51  ;;  %v2075_v54 = vmul.f32 0.5, %v2074_v51 }
0x1c15   : > { %v2071_v40 = vpop.f32.mrf.mxu1 }
0x1c16   : > { %4587 = vtanh.f32 %v2075_v54 }
0x1c17   : > { %v4209_v52 = vpop.f32.mrf.mxu1 }
0x1c21   : > { %v4586_v53 = vpop.eup %4585 }
0x1c22   : > { %2082 = vrot.lane.b32.xlu1 %v4586_v53, %s4918_s22 }
0x1c23   : > { %v4588_v15 = vpop.eup %4587 }
0x1c24   : > { %v2077_v8 = vadd.f32 1.0, %v4588_v15 }
0x1c26   : > { %v2078_v57 = vmul.f32 0.5, %v2077_v8 }
0x1c28   : > { %v2080_v61 = vmul.f32 %v2078_v57, %v2014_v44 }
0x1c94   : > { %v2083_v58 = vpop.permute.xlu1 %2082 }
0x1c95   : > { %v2085_v59 = vmul.f32 %v2083_v58, %v2078_v57 }
0x1c97   : > { %2087 = vrot.lane.b32.xlu0 %v2085_v59, %s4919_s21 }
0x1d09   : > { %v2088_v62 = vpop.permute.xlu0 %2087 }
0x1d0a   : > { %v2090_v3 = vadd.f32 %v2088_v62, %v2080_v61 }
0x1d0c   : > { %4589 = vtanh.f32 %v2090_v3 }
0x1d19   : > { %v4590_v22 = vpop.eup %4589 }
0x1d1a   : > { %2093 = vrot.lane.b32.xlu1 %v4590_v22, %s4918_s22 }
0x1d8c   : > { %v2094_v23 = vpop.permute.xlu1 %2093 }
0x1d8d   : > { %v5484_v4 = vmul.f32 %v2094_v23, %v2078_v57  ;;  %v2254_v57 = vld [vmem:[#allocation5 + $0x8] sm:$0x3] }
0x1d8f   : > { %v2103_v5 = vpack.c.bf16 %v5484_v4, %v5484_v4 }
0x1d91   : > { %2105 = vrot.lane.b32.xlu0 %v2103_v5, %s4919_s21 }
0x1e03   : > { %v2106_v11 = vpop.permute.xlu0 %2105 }
0x1e04   : > { %4215 = vmatmul.mubr.msk.bf16.vlgmr.msra.gmra.mxu0 %vm783_vm0, %v2106_v11 }
0x1e05   : > { %4227 = vmatpush3.bf16.msra.mxu0 %v5421_v55  ;;  %4230 = vmatprep.mubr.msk.bf16.mxu0 %vm4916_vm1, %v4915_v7 }
0x1e06   : > { %4228 = vmatprep.subr.bf16.mxu0 %v4915_v7 }
0x1e09   : > { %4229 = vmatpush3.bf16.msra.mxu0 %v5428_v29 }
0x1e0a   : > { %4242 = vmatprep.subr.bf16.mxu0 %v4915_v7 }
0x1ec4   : > { %v2144_v1 = vpop.f32.mrf.mxu0 }
0x1ec5   : > { %v2150_v13 = vadd.f32 %v2144_v1, %v2102_v12 }
0x1ec6   : > { %v4216_v14 = vpop.f32.mrf.mxu0 }
0x1ec7   : > { %4591 = vtanh.f32 %v2150_v13  ;;  %v2151_v19 = vmul.f32 0.5, %v2150_v13 }
0x1ec8   : > { %v2147_v16 = vpop.f32.mrf.mxu0 }
0x1ec9   : > { %4593 = vtanh.f32 %v2151_v19 }
0x1eca   : > { %v4217_v17 = vpop.f32.mrf.mxu0 }
0x1ed4   : > { %v4592_v18 = vpop.eup %4591 }
0x1ed5   : > { %2158 = vrot.lane.b32.xlu1 %v4592_v18, %s4918_s22 }
0x1ed6   : > { %v4594_v20 = vpop.eup %4593 }
0x1ed7   : > { %v2153_v21 = vadd.f32 1.0, %v4594_v20 }
0x1ed9   : > { %v2154_v24 = vmul.f32 0.5, %v2153_v21 }
0x1edb   : > { %v2156_v27 = vmul.f32 %v2154_v24, %v2090_v3 }
0x1f47   : > { %v2159_v25 = vpop.permute.xlu1 %2158 }
0x1f48   : > { %v2161_v26 = vmul.f32 %v2159_v25, %v2154_v24  ;;  %v2330_v25 = vld [vmem:[#allocation5 + $0xa] sm:$0x3] }
0x1f4a   : > { %2163 = vrot.lane.b32.xlu0 %v2161_v26, %s4919_s21 }
0x1fbc   : > { %v2164_v28 = vpop.permute.xlu0 %2163 }
0x1fbd   : > { %v2166_v30 = vadd.f32 %v2164_v28, %v2156_v27 }
0x1fbf   : > { %4595 = vtanh.f32 %v2166_v30 }
0x1fcc   : > { %v4596_v31 = vpop.eup %4595 }
0x1fcd   : > { %2169 = vrot.lane.b32.xlu1 %v4596_v31, %s4918_s22 }
0x203f   : > { %v2170_v32 = vpop.permute.xlu1 %2169 }
0x2040   : > { %v5499_v34 = vmul.f32 %v2170_v32, %v2154_v24 }
0x2042   : > { %v2179_v35 = vpack.c.bf16 %v5499_v34, %v5499_v34 }
0x2044   : > { %2181 = vrot.lane.b32.xlu0 %v2179_v35, %s4919_s21 }
0x20b6   : > { %v2182_v36 = vpop.permute.xlu0 %2181 }
0x20b7   : > { %4223 = vmatmul.mubr.msk.bf16.vlgmr.msra.gmra.mxu1 %vm783_vm0, %v2182_v36 }
0x20b8   : > { %4235 = vmatpush3.bf16.msra.mxu1 %v5421_v55  ;;  %4238 = vmatprep.mubr.msk.bf16.mxu1 %vm4916_vm1, %v4915_v7 }
0x20b9   : > { %4236 = vmatprep.subr.bf16.mxu1 %v4915_v7 }
0x20bc   : > { %4237 = vmatpush3.bf16.msra.mxu1 %v5428_v29 }
0x20bd   : > { %4250 = vmatprep.subr.bf16.mxu1 %v4915_v7 }
0x2177   : > { %v2220_v38 = vpop.f32.mrf.mxu1 }
0x2178   : > { %v2226_v39 = vadd.f32 %v2220_v38, %v2178_v37 }
0x2179   : > { %v4224_v41 = vpop.f32.mrf.mxu1 }
0x217a   : > { %4597 = vtanh.f32 %v2226_v39  ;;  %v2227_v45 = vmul.f32 0.5, %v2226_v39 }
0x217b   : > { %v2223_v42 = vpop.f32.mrf.mxu1 }
0x217c   : > { %4599 = vtanh.f32 %v2227_v45 }
0x217d   : > { %v4225_v43 = vpop.f32.mrf.mxu1 }
0x2187   : > { %v4598_v44 = vpop.eup %4597 }
0x2188   : > { %2234 = vrot.lane.b32.xlu1 %v4598_v44, %s4918_s22 }
0x2189   : > { %v4600_v46 = vpop.eup %4599 }
0x218a   : > { %v2229_v48 = vadd.f32 1.0, %v4600_v46 }
0x218c   : > { %v2230_v49 = vmul.f32 0.5, %v2229_v48 }
0x218e   : > { %v2232_v51 = vmul.f32 %v2230_v49, %v2166_v30 }
0x21fa   : > { %v2235_v6 = vpop.permute.xlu1 %2234 }
0x21fb   : > { %v2237_v0 = vmul.f32 %v2235_v6, %v2230_v49 }
0x21fd   : > { %2239 = vrot.lane.b32.xlu0 %v2237_v0, %s4919_s21 }
0x226f   : > { %v2240_v50 = vpop.permute.xlu0 %2239 }
0x2270   : > { %v2242_v40 = vadd.f32 %v2240_v50, %v2232_v51 }
0x2272   : > { %4601 = vtanh.f32 %v2242_v40 }
0x227f   : > { %v4602_v52 = vpop.eup %4601 }
0x2280   : > { %2245 = vrot.lane.b32.xlu1 %v4602_v52, %s4918_s22 }
0x22f2   : > { %v2246_v53 = vpop.permute.xlu1 %2245 }
0x22f3   : > { %v5514_v54 = vmul.f32 %v2246_v53, %v2230_v49  ;;  %v2406_v49 = vld [vmem:[#allocation5 + $0xc] sm:$0x3] }
0x22f5   : > { %v2255_v15 = vpack.c.bf16 %v5514_v54, %v5514_v54 }
0x22f7   : > { %2257 = vrot.lane.b32.xlu0 %v2255_v15, %s4919_s21 }
0x2369   : > { %v2258_v8 = vpop.permute.xlu0 %2257 }
0x236a   : > { %4231 = vmatmul.mubr.msk.bf16.vlgmr.msra.gmra.mxu0 %vm783_vm0, %v2258_v8 }
0x236b   : > { %4243 = vmatpush3.bf16.msra.mxu0 %v5421_v55  ;;  %4246 = vmatprep.mubr.msk.bf16.mxu0 %vm4916_vm1, %v4915_v7 }
0x236c   : > { %4244 = vmatprep.subr.bf16.mxu0 %v4915_v7 }
0x236f   : > { %4245 = vmatpush3.bf16.msra.mxu0 %v5428_v29 }
0x2370   : > { %4258 = vmatprep.subr.bf16.mxu0 %v4915_v7 }
0x242a   : > { %v2296_v58 = vpop.f32.mrf.mxu0 }
0x242b   : > { %v2302_v59 = vadd.f32 %v2296_v58, %v2254_v57 }
0x242c   : > { %v4232_v61 = vpop.f32.mrf.mxu0 }
0x242d   : > { %4603 = vtanh.f32 %v2302_v59  ;;  %v2303_v23 = vmul.f32 0.5, %v2302_v59 }
0x242e   : > { %v2299_v62 = vpop.f32.mrf.mxu0 }
0x242f   : > { %4605 = vtanh.f32 %v2303_v23 }
0x2430   : > { %v4233_v3 = vpop.f32.mrf.mxu0 }
0x243a   : > { %v4604_v22 = vpop.eup %4603 }
0x243b   : > { %2310 = vrot.lane.b32.xlu1 %v4604_v22, %s4918_s22 }
0x243c   : > { %v4606_v5 = vpop.eup %4605 }
0x243d   : > { %v2305_v11 = vadd.f32 1.0, %v4606_v5 }
0x243f   : > { %v2306_v12 = vmul.f32 0.5, %v2305_v11 }
0x2441   : > { %v2308_v14 = vmul.f32 %v2306_v12, %v2242_v40 }
0x24ad   : > { %v2311_v1 = vpop.permute.xlu1 %2310 }
0x24ae   : > { %v2313_v13 = vmul.f32 %v2311_v1, %v2306_v12  ;;  %v2482_v1 = vld [vmem:[#allocation5 + $0xe] sm:$0x3] }
0x24b0   : > { %2315 = vrot.lane.b32.xlu0 %v2313_v13, %s4919_s21 }
0x2522   : > { %v2316_v16 = vpop.permute.xlu0 %2315 }
0x2523   : > { %v2318_v17 = vadd.f32 %v2316_v16, %v2308_v14 }
0x2525   : > { %4607 = vtanh.f32 %v2318_v17 }
0x2532   : > { %v4608_v18 = vpop.eup %4607 }
0x2533   : > { %2321 = vrot.lane.b32.xlu1 %v4608_v18, %s4918_s22 }
0x25a5   : > { %v2322_v19 = vpop.permute.xlu1 %2321 }
0x25a6   : > { %v5529_v20 = vmul.f32 %v2322_v19, %v2306_v12 }
0x25a8   : > { %v2331_v21 = vpack.c.bf16 %v5529_v20, %v5529_v20 }
0x25aa   : > { %2333 = vrot.lane.b32.xlu0 %v2331_v21, %s4919_s21 }
0x261c   : > { %v2334_v24 = vpop.permute.xlu0 %2333 }
0x261d   : > { %4239 = vmatmul.mubr.msk.bf16.vlgmr.msra.gmra.mxu1 %vm783_vm0, %v2334_v24 }
0x261e   : > { %4251 = vmatpush3.bf16.msra.mxu1 %v5421_v55  ;;  %4254 = vmatprep.mubr.msk.bf16.mxu1 %vm4916_vm1, %v4915_v7 }
0x261f   : > { %4252 = vmatprep.subr.bf16.mxu1 %v4915_v7 }
0x2622   : > { %4253 = vmatpush3.bf16.msra.mxu1 %v5428_v29 }
0x2623   : > { %4266 = vmatprep.subr.bf16.mxu1 %v4915_v7 }
0x26dd   : > { %v2372_v26 = vpop.f32.mrf.mxu1 }
0x26de   : > { %v2378_v27 = vadd.f32 %v2372_v26, %v2330_v25 }
0x26df   : > { %v4240_v28 = vpop.f32.mrf.mxu1 }
0x26e0   : > { %4609 = vtanh.f32 %v2378_v27  ;;  %v2379_v55 = vmul.f32 0.5, %v2378_v27 }
0x26e1   : > { %v2375_v30 = vpop.f32.mrf.mxu1 }
0x26e2   : > { %4611 = vtanh.f32 %v2379_v55 }
0x26e3   : > { %v4241_v31 = vpop.f32.mrf.mxu1 }
0x26ed   : > { %v4610_v32 = vpop.eup %4609 }
0x26ee   : > { %2386 = vrot.lane.b32.xlu1 %v4610_v32, %s4918_s22 }
0x26ef   : > { %v4612_v35 = vpop.eup %4611 }
0x26f0   : > { %v2381_v36 = vadd.f32 1.0, %v4612_v35 }
0x26f2   : > { %v2382_v37 = vmul.f32 0.5, %v2381_v36  ;;  %v1804_v36 = vld [vmem:[#allocation4] sm:$0xff] }
0x26f4   : > { %v2384_v29 = vmul.f32 %v2382_v37, %v2318_v17 }
0x2760   : > { %v2387_v38 = vpop.permute.xlu1 %2386 }
0x2761   : > { %v2389_v39 = vmul.f32 %v2387_v38, %v2382_v37 }
0x2763   : > { %2391 = vrot.lane.b32.xlu0 %v2389_v39, %s4919_s21  ;;  %v4507_v39 = vld [vmem:[#allocation14 + $0x18] sm:$0xff]  }
0x27d5   : > { %v2392_v41 = vpop.permute.xlu0 %2391 }
0x27d6   : > { %v2394_v42 = vadd.f32 %v2392_v41, %v2384_v29  ;;  %v4508_v29 = vld [vmem:[#allocation14 + $0x10] sm:$0xff]  }
0x27d8   : > { %4613 = vtanh.f32 %v2394_v42 }
0x27e5   : > { %v4614_v43 = vpop.eup %4613 }
0x27e6   : > { %2397 = vrot.lane.b32.xlu1 %v4614_v43, %s4918_s22 }
0x2858   : > { %v2398_v44 = vpop.permute.xlu1 %2397 }
0x2859   : > { %v5544_v45 = vmul.f32 %v2398_v44, %v2382_v37 }
0x285b   : > { %v2407_v46 = vpack.c.bf16 %v5544_v45, %v5544_v45 }
0x285d   : > { %2409 = vrot.lane.b32.xlu0 %v2407_v46, %s4919_s21 }
0x28cf   : > { %v2410_v48 = vpop.permute.xlu0 %2409 }
0x28d0   : > { %4247 = vmatmul.mubr.msk.bf16.vlgmr.msra.gmra.mxu0 %vm783_vm0, %v2410_v48 }
0x28d1   : > { %4262 = vmatprep.mubr.msk.bf16.mxu0 %vm4916_vm1, %v4915_v7  ;;  %4259 = vmatpush3.bf16.msra.mxu0 %v4507_v39 }
0x28d2   : > { %4260 = vmatprep.subr.bf16.mxu0 %v4915_v7 }
0x28d5   : > { %4261 = vmatpush3.bf16.msra.mxu0 %v4508_v29 }
0x28d6   : > { %4282 = vmatprep.subr.bf16.mxu0 %v4915_v7 }
0x2990   : > { %v2448_v6 = vpop.f32.mrf.mxu0 }
0x2991   : > { %v2454_v0 = vadd.f32 %v2448_v6, %v2406_v49 }
0x2992   : > { %v4248_v51 = vpop.f32.mrf.mxu0 }
0x2993   : > { %4615 = vtanh.f32 %v2454_v0  ;;  %v2455_v53 = vmul.f32 0.5, %v2454_v0 }
0x2994   : > { %v2451_v50 = vpop.f32.mrf.mxu0 }
0x2995   : > { %4617 = vtanh.f32 %v2455_v53 }
0x2996   : > { %v4249_v40 = vpop.f32.mrf.mxu0 }
0x29a0   : > { %v4616_v52 = vpop.eup %4615 }
0x29a1   : > { %2462 = vrot.lane.b32.xlu1 %v4616_v52, %s4918_s22 }
0x29a2   : > { %v4618_v15 = vpop.eup %4617 }
0x29a3   : > { %v2457_v8 = vadd.f32 1.0, %v4618_v15 }
0x29a5   : > { %v2458_v57 = vmul.f32 0.5, %v2457_v8 }
0x29a7   : > { %v2460_v61 = vmul.f32 %v2458_v57, %v2394_v42 }
0x2a13   : > { %v2463_v58 = vpop.permute.xlu1 %2462 }
0x2a14   : > { %v2465_v59 = vmul.f32 %v2463_v58, %v2458_v57 }
0x2a16   : > { %2467 = vrot.lane.b32.xlu0 %v2465_v59, %s4919_s21 }
0x2a88   : > { %v2468_v62 = vpop.permute.xlu0 %2467 }
0x2a89   : > { %v2470_v3 = vadd.f32 %v2468_v62, %v2460_v61 }
0x2a8b   : > { %4619 = vtanh.f32 %v2470_v3 }
0x2a98   : > { %v4620_v22 = vpop.eup %4619 }
0x2a99   : > { %2473 = vrot.lane.b32.xlu1 %v4620_v22, %s4918_s22 }
0x2b0b   : > { %v2474_v23 = vpop.permute.xlu1 %2473 }
0x2b0c   : > { %v2476_v5 = vmul.f32 %v2474_v23, %v2458_v57 }
0x2b0e   : > { %v2483_v11 = vpack.c.bf16 %v2476_v5, %v2476_v5 }
0x2b10   : > { %2485 = vrot.lane.b32.xlu0 %v2483_v11, %s4919_s21  ;;  %v4509_v11 = vld [vmem:[%s5795_s9 + $0x58] sm:$0xff]  }
0x2b82   : > { %v2486_v12 = vpop.permute.xlu0 %2485 }
0x2b83   : > { %4255 = vmatmul.mubr.msk.bf16.vlgmr.msra.gmra.mxu1 %vm783_vm0, %v2486_v12  ;;  %v4510_v12 = vld [vmem:[%s5795_s9 + $0x50] sm:$0xff]  }
0x2b84   : > { %4278 = vmatprep.mubr.msk.bf16.mxu1 %vm4916_vm1, %v4915_v7  ;;  %4267 = vmatpush3.bf16.msra.mxu1 %v4509_v11 }
0x2b85   : > { %4268 = vmatprep.subr.bf16.mxu1 %v4915_v7 }
0x2b88   : > { %4269 = vmatpush3.bf16.msra.mxu1 %v4510_v12 }
0x2b89   : > { %4270 = vmatprep.subr.bf16.mxu1 %v4915_v7 }
0x2c43   : > { %v2524_v13 = vpop.f32.mrf.mxu1 }
0x2c44   : > { %v2530_v14 = vadd.f32 %v2524_v13, %v2482_v1  ;;  %v4512_v1 = vld [vmem:[%s5795_s9 + $0x40] sm:$0xff]   ;;  %v4513_v13 = vld [vmem:[%s5795_s9 + $0x38] sm:$0xff]  }
0x2c45   : > { %v4256_v16 = vpop.f32.mrf.mxu1 }
0x2c46   : > { %4621 = vtanh.f32 %v2530_v14  ;;  %v2531_v21 = vmul.f32 0.5, %v2530_v14  ;;  %v4514_v14 = vld [vmem:[%s5795_s9 + $0x30] sm:$0xff]  }
0x2c47   : > { %v2527_v17 = vpop.f32.mrf.mxu1  ;;  %v3923_v16 = vld [vmem:[#allocation15 + $0x1] ss:$0 sm:$0xff] }
0x2c48   : > { %4623 = vtanh.f32 %v2531_v21 }
0x2c49   : > { %v4257_v18 = vpop.f32.mrf.mxu1 }
0x2c53   : > { %v4622_v19 = vpop.eup %4621 }
0x2c54   : > { %2538 = vrot.lane.b32.xlu1 %v4622_v19, %s4918_s22 }
0x2c55   : > { %v4624_v24 = vpop.eup %4623 }
0x2c56   : > { %v2533_v25 = vadd.f32 1.0, %v4624_v24 }
0x2c58   : > { %v2534_v26 = vmul.f32 0.5, %v2533_v25 }
0x2c5a   : > { %v2536_v30 = vmul.f32 %v2534_v26, %v2470_v3 }
0x2cc6   : > { %v2539_v27 = vpop.permute.xlu1 %2538 }
0x2cc7   : > { %v2541_v28 = vmul.f32 %v2539_v27, %v2534_v26 }
0x2cc9   : > { %2543 = vrot.lane.b32.xlu0 %v2541_v28, %s4919_s21 }
0x2ccd   : > { %2022 = vrot.lane.b32.xlu0 %v5469_v47, %s4919_s21 }
0x2cd1   : > { %2174 = vrot.lane.b32.xlu0 %v5499_v34, %s4919_s21 }
0x2cd5   : > { %2326 = vrot.lane.b32.xlu0 %v5529_v20, %s4919_s21 }
0x2cd9   : > { %2478 = vrot.lane.b32.xlu0 %v2476_v5, %s4919_s21 }
0x2cdd   : > { %1806 = vrot.lane.b32.xlu0 %v5432_v56, %s4918_s22 }
0x2d3b   : > { %v2544_v31 = vpop.permute.xlu0 %2543 }
0x2d3c   : > { %v2546_v32 = vadd.f32 %v2544_v31, %v2536_v30 }
0x2d3e   : > { %4625 = vtanh.f32 %v2546_v32 }
0x2d3f   : > { %v2023_v55 = vpop.permute.xlu0 %2022 }
0x2d40   : > { %2025 = vst.msk [vmem:[#allocation6] sm:$0x3] %vm999_vm2, %v2023_v55 }
0x2d43   : > { %v2175_v35 = vpop.permute.xlu0 %2174 }
0x2d44   : > { %2177 = vst.msk [vmem:[#allocation6 + $0x4] sm:$0x3] %vm999_vm2, %v2175_v35 }
0x2d47   : > { %v2327_v47 = vpop.permute.xlu0 %2326  ;;  %v2558_v40 = vld [vmem:[#allocation6] sm:$0x3] }
0x2d48   : > { %2329 = vst.msk [vmem:[#allocation6 + $0x8] sm:$0x3] %vm999_vm2, %v2327_v47 }
0x2d4b   : > { %v4626_v34 = vpop.eup %4625  ;;  %v2479_v20 = vpop.permute.xlu0 %2478  ;;  %v2560_v6 = vld [vmem:[#allocation6 + $0x4] sm:$0x3] }
0x2d4c   : > { %2481 = vst.msk [vmem:[#allocation6 + $0xc] sm:$0x3] %vm999_vm2, %v2479_v20  ;;  %2549 = vrot.lane.b32.xlu1 %v4626_v34, %s4918_s22 }
0x2d4f   : > { %v1807_v37 = vpop.permute.xlu0 %1806  ;;  %v2562_v52 = vld [vmem:[#allocation6 + $0x8] sm:$0x3] }
0x2d50   : > { %v1812_v38 = vadd.f32 %v1807_v37, %v1804_v36  ;;  %2098 = vrot.lane.b32.xlu1 %v5484_v4, %s4919_s21 }
0x2d52   : > { %1814 = vst.msk [vmem:[#allocation4] sm:$0xff] %vm783_vm0, %v1812_v38 }
0x2d53   : > { %v2564_v8 = vld [vmem:[#allocation6 + $0xc] sm:$0x3] }
0x2d54   : > { %2250 = vrot.lane.b32.xlu1 %v5514_v54, %s4919_s21 }
0x2d58   : > { %2402 = vrot.lane.b32.xlu1 %v5544_v45, %s4919_s21  ;;  %v1805_v45 = vld [vmem:[#allocation4 + $0x8] sm:$0xff] }
0x2dbe   : > { %v2550_v41 = vpop.permute.xlu1 %2549 }
0x2dbf   : > { %v2552_v42 = vmul.f32 %v2550_v41, %v2534_v26 }
0x2dc1   : > { %2554 = vrot.lane.b32.xlu1 %v2552_v42, %s4919_s21 }
0x2dc2   : > { %v2099_v4 = vpop.permute.xlu1 %2098 }
0x2dc3   : > { %2101 = vst.msk [vmem:[#allocation6 + $0x2] sm:$0x3] %vm999_vm2, %v2099_v4 }
0x2dc5   : > { %1808 = vrot.lane.b32.xlu1 %v5437_v60, %s4918_s22 }
0x2dc6   : > { %v2251_v54 = vpop.permute.xlu1 %2250 }
0x2dc7   : > { %2253 = vst.msk [vmem:[#allocation6 + $0x6] sm:$0x3] %vm999_vm2, %v2251_v54  ;;  %v3939_v54 = vld [vmem:[#allocation17 + $0x1] ss:$0 sm:$0xff] }
0x2dca   : > { %v2403_v43 = vpop.permute.xlu1 %2402  ;;  %v2559_v49 = vld [vmem:[#allocation6 + $0x2] sm:$0x3] }
0x2dcb   : > { %2405 = vst.msk [vmem:[#allocation6 + $0xa] sm:$0x3] %vm999_vm2, %v2403_v43  ;;  %v2574_v53 = vcombine.low %v2558_v40, %v2559_v49  ;;  %v1790_v40 = vld [vmem:[#allocation3] sm:$0xff] }
0x2dcd   : > { %v2582_v61 = vrot.slane %v2574_v53, %v5250_v33 }
0x2dce   : > { %v2561_v46 = vld [vmem:[#allocation6 + $0x6] sm:$0x3] }
0x2dcf   : > { %v2575_v50 = vcombine.low %v2560_v6, %v2561_v46 }
0x2dd1   : > { %v2589_v58 = vrot.slane %v2575_v50, %v5250_v33 }
0x2dd2   : > { %v2563_v0 = vld [vmem:[#allocation6 + $0xa] sm:$0x3] }
0x2dd3   : > { %v2591_v15 = vcombine.low %v2562_v52, %v2563_v0  ;;  %v2590_v22 = vcombine.low %v2582_v61, %v2589_v58  ;;  %v1791_v58 = vld [vmem:[#allocation3 + $0x8] sm:$0xff] }
0x2dd5   : > { %v2599_v62 = vrot.slane %v2591_v15, %v5250_v33 }
0x2e33   : > { %v2555_v44 = vpop.permute.xlu1 %2554 }
0x2e34   : > { %2557 = vst.msk [vmem:[#allocation6 + $0xe] sm:$0x3] %vm999_vm2, %v2555_v44 }
0x2e37   : > { %v1809_v48 = vpop.permute.xlu1 %1808 }
0x2e38   : > { %v1813_v51 = vadd.f32 %v1809_v48, %v1805_v45 }
0x2e3a   : > { %1815 = vst.msk [vmem:[#allocation4 + $0x8] sm:$0xff] %vm783_vm0, %v1813_v51  ;;  %v4515_v51 = vld [vmem:[%s5797_s11 + $0x8] sm:$0xff]  }
0x2e3b   : > { %v2565_v57 = vld [vmem:[#allocation6 + $0xe] sm:$0x3] }
0x2e3c   : > { %v2592_v59 = vcombine.low %v2564_v8, %v2565_v57 }
0x2e3e   : > { %v2606_v3 = vrot.slane %v2592_v59, %v5250_v33  ;;  %v4511_v33 = vld [vmem:[%s5795_s9 + $0x48] sm:$0xff]  }
0x2e3f   : > { %4271 = vmatpush3.bf16.msra.mxu1 %v4511_v33 }
0x2e40   : > { %v2607_v23 = vcombine.low %v2599_v62, %v2606_v3  ;;  %4272 = vmatprep.subr.bf16.mxu1 %v4915_v7 }
0x2e41   : > { %v2819_v53 = vld [vmem:[#allocation4 + $0x8] sm:$0xff] }
0x2e42   : > { %v2610_v5 = vpack.c.bf16 %v2607_v23, %v2590_v22 }
0x2e43   : > { %4273 = vmatpush3.bf16.msra.mxu1 %v4512_v1 }
0x2e44   : > { %4263 = vmatmul.mubr.msk.bf16.vlgmr.msra.gmra.mxu0 %vm783_vm0, %v2610_v5  ;;  %4274 = vmatprep.subr.bf16.mxu1 %v4915_v7 }
0x2e45   : > { %4286 = vmatprep.mubr.msk.bf16.mxu0 %vm4916_vm1, %v4915_v7  ;;  %4283 = vmatpush3.bf16.msra.mxu0 %v4515_v51 }
0x2e46   : > { %4284 = vmatprep.subr.bf16.mxu0 %v4915_v7 }
0x2e47   : > { %4275 = vmatpush3.bf16.msra.mxu1 %v4513_v13 }
0x2e48   : > { %4276 = vmatprep.subr.bf16.mxu1 %v4915_v7 }
0x2e4b   : > { %4277 = vmatpush3.bf16.msra.mxu1 %v4514_v14 }
0x2e4c   : > { %4302 = vmatprep.subr.mxu1 %v4915_v7 }
0x2f04   : > { %v2673_v17 = vpop.f32.mrf.mxu0 }
0x2f05   : > { %v2674_v18 = vadd.f32 %v3923_v16, %v2673_v17 }
0x2f06   : > { %v4264_v19 = vpop.f32.mrf.mxu0 }
0x2f07   : > { %v2682_v21 = vmul.f32 %v2674_v18, %v2674_v18  ;;  %v2680_v38 = vmul.f32 0.5, %v2674_v18  ;;  %v4519_v19 = vld [vmem:[%s5804_s18 + $0x8] sm:$0xff]  }
0x2f08   : > { %v2676_v24 = vpop.f32.mrf.mxu0 }
0x2f09   : > { %v2684_v25 = vmul.f32 %v2682_v21, %v2674_v18  ;;  %v2677_v26 = vadd.f32 %v3923_v16, %v2676_v24  ;;  %v4517_v16 = vld [vmem:[%s5804_s18 + $0x18] sm:$0xff]   ;;  %v4520_v21 = vld [vmem:[%s5804_s18] sm:$0xff]  }
0x2f0a   : > { %v4265_v27 = vpop.f32.mrf.mxu0  ;;  %v3947_v24 = vld [vmem:[#allocation18] ss:$0 sm:$0xff] }
0x2f0b   : > { %v2686_v28 = vmul.f32 0.044715, %v2684_v25  ;;  %v2683_v30 = vmul.f32 %v2677_v26, %v2677_v26  ;;  %v2681_v39 = vmul.f32 0.5, %v2677_v26 }
0x2f0d   : > { %v2688_v31 = vadd.f32 %v2686_v28, %v2674_v18  ;;  %v2685_v32 = vmul.f32 %v2683_v30, %v2677_v26  ;;  %v4518_v18 = vld [vmem:[%s5804_s18 + $0x10] sm:$0xff]  }
0x2f0f   : > { %v2690_v55 = vmul.f32 0.7978846, %v2688_v31  ;;  %v2687_v35 = vmul.f32 0.044715, %v2685_v32 }
0x2f11   : > { %4627 = vtanh.f32 %v2690_v55  ;;  %v2689_v47 = vadd.f32 %v2687_v35, %v2677_v26 }
0x2f13   : > { %v2691_v34 = vmul.f32 0.7978846, %v2689_v47 }
0x2f15   : > { %4629 = vtanh.f32 %v2691_v34 }
0x2f1e   : > { %v4628_v20 = vpop.eup %4627 }
0x2f1f   : > { %v2694_v36 = vadd.f32 1.0, %v4628_v20 }
0x2f21   : > { %v2696_v41 = vmul.f32 %v2694_v36, %v2680_v38 }
0x2f22   : > { %v4630_v37 = vpop.eup %4629 }
0x2f23   : > { %v2695_v29 = vadd.f32 1.0, %v4630_v37  ;;  %v3951_v37 = vld [vmem:[#allocation9] ss:$0 sm:$0xff] }
0x2f25   : > { %v2697_v42 = vmul.f32 %v2695_v29, %v2681_v39 }
0x2f27   : > { %v2698_v4 = vpack.c.bf16 %v2697_v42, %v2696_v41 }
0x2f29   : > { %4279 = vmatmul.mubr.msk.bf16.vlgmr.msra.gmra.mxu1 %vm1741_vm3, %v2698_v4 }
0x2f2a   : > { %4306 = vmatprep.mubr.msk.f32.mxu1 %vm4916_vm1, %v4915_v7 }
0x2fe9   : > { %v2793_v43 = vpop.f32.mrf.mxu1 }
0x2fea   : > { %v2794_v44 = vadd.f32 %v3939_v54, %v2793_v43 }
0x2feb   : > { %v4280_v45 = vpop.f32.mrf.mxu1 }
0x2fec   : > { %v2800_v46 = vsub.f32 %v5442_v63, %v2794_v44  ;;  %2820 = vrot.lane.b32.xlu0 %v2794_v44, %s4918_s22  ;;  %v4516_v63 = vld [vmem:[%s5797_s11] sm:$0xff]  }
0x2fed   : > { %v2796_v48 = vpop.f32.mrf.mxu1  ;;  %4285 = vmatpush3.bf16.msra.mxu0 %v4516_v63 }
0x2fee   : > { %2802 = vst.msk [vmem:[#allocation2] sm:$0xff] %vm783_vm0, %v2800_v46  ;;  %v2797_v49 = vadd.f32 %v3939_v54, %v2796_v48  ;;  %4290 = vmatprep.subr.bf16.mxu0 %v4915_v7 }
0x2fef   : > { %v4281_v6 = vpop.f32.mrf.mxu1 }
0x2ff0   : > { %v2801_v0 = vsub.f32 %v5444_v2, %v2797_v49  ;;  %1794 = vrot.lane.b32.xlu0 %v5432_v56, %s4920_s29  ;;  %2822 = vrot.lane.b32.xlu1 %v2797_v49, %s4918_s22  ;;  %v2818_v56 = vld [vmem:[#allocation4] sm:$0xff]  ;;  %v3028_v6 = vmul.u32 2, %v5228_v10 }
0x2ff2   : > { %2803 = vst.msk [vmem:[#allocation2 + $0x8] sm:$0xff] %vm783_vm0, %v2801_v0 }
0x2ff4   : > { %2808 = vrot.lane.b32.xlu0 %v2794_v44, %s4920_s29  ;;  %1796 = vrot.lane.b32.xlu1 %v5437_v60, %s4920_s29 }
0x2ff8   : > { %2810 = vrot.lane.b32.xlu1 %v2797_v49, %s4920_s29  ;;  %v3025_v49 = vand.u32 127, %v768_v9  ;;  %v4521_v9 = vld [vmem:[%s5799_s13 + $0x8] sm:$0xff]  }
0x2ffa   : > { %vm3029_vm6 = vcmp.eq.s32.totalorder %v3025_v49, %v3028_v6 }
0x2ffb   : > { %v3957_v51 = vsel %vm3029_vm6, 1.0, %v4915_v7 }
0x305e   : > { %v2821_v2 = vpop.permute.xlu0 %2820 }
0x305f   : > { %v2826_v50 = vadd.f32 %v2821_v2, %v2818_v56 }
0x3061   : > { %2828 = vst.msk [vmem:[#allocation4] sm:$0xff] %vm783_vm0, %v2826_v50 }
0x3062   : > { %v1795_v52 = vpop.permute.xlu0 %1794  ;;  %v2823_v15 = vpop.permute.xlu1 %2822 }
0x3063   : > { %v1800_v8 = vadd.f32 %v1795_v52, %v1790_v40  ;;  %v2827_v57 = vadd.f32 %v2823_v15, %v2819_v53  ;;  %v3018_v40 = vld [vmem:[%s5841_s1] sm:$0xf]  ;;  %v3236_v52 = vadd.s32 1, %v3028_v6 }
0x3064   : > { %v4522_v15 = vld [vmem:[%s5799_s13] sm:$0xff]  }
0x3065   : > { %1802 = vst.msk [vmem:[#allocation3] sm:$0xff] %vm783_vm0, %v1800_v8  ;;  %2829 = vst.msk [vmem:[#allocation4 + $0x8] sm:$0xff] %vm783_vm0, %v2827_v57  ;;  %vm3237_vm10 = vcmp.eq.s32.totalorder %v3025_v49, %v3236_v52  ;;  %v4524_v49 = vld [vmem:[#allocation21] sm:$0xff]  }
0x3066   : > { %v1797_v60 = vpop.permute.xlu1 %1796  ;;  %v2809_v23 = vpop.permute.xlu0 %2808  ;;  %v3964_v53 = vsel %vm3237_vm10, 1.0, %v4915_v7 }
0x3067   : > { %v1801_v59 = vadd.f32 %v1797_v60, %v1791_v58 }
0x3068   : > { %v2830_v61 = vld [vmem:[#allocation4] sm:$0xff] }
0x3069   : > { %v2832_v62 = vmul.f32 0.5, %v2830_v61  ;;  %1803 = vst.msk [vmem:[#allocation3 + $0x8] sm:$0xff] %vm783_vm0, %v1801_v59 }
0x306a   : > { %v2811_v33 = vpop.permute.xlu1 %2810 }
0x306b   : > { %2834 = vst.msk [vmem:[#allocation4] sm:$0xff] %vm783_vm0, %v2832_v62 }
0x306c   : > { %v2831_v3 = vld [vmem:[#allocation4 + $0x8] sm:$0xff]  ;;  %v2804_v22 = vld [vmem:[#allocation3] sm:$0xff] }
0x306d   : > { %v2833_v5 = vmul.f32 0.5, %v2831_v3  ;;  %v2814_v11 = vadd.f32 %v2809_v23, %v2804_v22  ;;  %v3960_v23 = vld [vmem:[#allocation20] ss:$0 sm:$0xff] }
0x306f   : > { %2835 = vst.msk [vmem:[#allocation4 + $0x8] sm:$0xff] %vm783_vm0, %v2833_v5  ;;  %2816 = vst.msk [vmem:[#allocation3] sm:$0xff] %vm783_vm0, %v2814_v11 }
0x3070   : > { %v2805_v12 = vld [vmem:[#allocation3 + $0x8] sm:$0xff] }
0x3071   : > { %v2815_v1 = vadd.f32 %v2811_v33, %v2805_v12 }
0x3072   : > { %v2836_v13 = vld [vmem:[#allocation4] sm:$0xff] }
0x3073   : > { %2817 = vst.msk [vmem:[#allocation3 + $0x8] sm:$0xff] %vm783_vm0, %v2815_v1 }
0x3076   : > { %v2837_v14 = vld [vmem:[#allocation4 + $0x8] sm:$0xff]  ;;  %v2906_v31 = vld [vmem:[#allocation3] sm:$0xff] }
0x3077   : > { %v2838_v17 = vpack.c.bf16 %v2837_v14, %v2836_v13 }
0x3079   : > { %4287 = vmatmul.mubr.msk.bf16.vlgmr.msra.gmra.mxu0 %vm783_vm0, %v2838_v17 }
0x307a   : > { %4291 = vmatpush3.bf16.msra.mxu0 %v4517_v16  ;;  %4298 = vmatprep.mubr.msk.bf16.mxu0 %vm4916_vm1, %v4915_v7  ;;  %v2907_v32 = vld [vmem:[#allocation3 + $0x8] sm:$0xff] }
0x307b   : > { %4292 = vmatprep.subr.bf16.mxu0 %v4915_v7 }
0x307e   : > { %4293 = vmatpush3.bf16.msra.mxu0 %v4518_v18 }
0x307f   : > { %4294 = vmatprep.subr.bf16.mxu0 %v4915_v7 }
0x3082   : > { %4295 = vmatpush3.bf16.msra.mxu0 %v4519_v19 }
0x3083   : > { %4296 = vmatprep.subr.bf16.mxu0 %v4915_v7 }
0x3086   : > { %4297 = vmatpush3.bf16.msra.mxu0 %v4520_v21 }
0x3087   : > { %4315 = vmatprep.subr.bf16.mxu0 %v4915_v7 }
0x3139   : > { %v2899_v25 = vpop.f32.mrf.mxu0 }
0x313a   : > { %v2900_v27 = vadd.f32 %v3947_v24, %v2899_v25 }
0x313b   : > { %v4288_v26 = vpop.f32.mrf.mxu0 }
0x313c   : > { %v2908_v35 = vsel %vm783_vm0, %v2906_v31, %v2900_v27 }
0x313d   : > { %v2902_v28 = vpop.f32.mrf.mxu0 }
0x313e   : > { %v2903_v30 = vadd.f32 %v3947_v24, %v2902_v28 }
0x313f   : > { %v4289_v55 = vpop.f32.mrf.mxu0 }
0x3140   : > { %v2909_v47 = vsel %vm783_vm0, %v2907_v32, %v2903_v30  ;;  %2999 = vrot.lane.b32.xlu0 %v2903_v30, %s4919_s21 }
0x3141   : > { %v2910_v34 = vpack.c.bf16 %v2909_v47, %v2908_v35 }
0x3143   : > { %4299 = vmatmul.mubr.msk.bf16.vlgmr.msra.gmra.mxu0 %vm2950_vm4, %v2910_v34 }
0x3144   : > { %2997 = vrot.lane.b32.xlu0 %v2900_v27, %s4919_s21  ;;  %4319 = vmatprep.mubr.msk.bf16.mxu0 %vm4916_vm1, %v4915_v7 }
0x3145   : > { %4316 = vmatpush3.bf16.msra.mxu0 %v4521_v9 }
0x3146   : > { %4317 = vmatprep.subr.bf16.mxu0 %v4915_v7 }
0x3149   : > { %4318 = vmatpush3.bf16.msra.mxu0 %v4522_v15 }
0x314a   : > { %4330 = vmatprep.subr.bf16.mxu0 %v4915_v7 }
0x31b2   : > { %v3000_v42 = vpop.permute.xlu0 %2999 }
0x31b3   : > { %v3012_v4 = vsel %vm783_vm0, %v2837_v14, %v3000_v42 }
0x31b6   : > { %v2998_v43 = vpop.permute.xlu0 %2997 }
0x31b7   : > { %v3011_v45 = vsel %vm783_vm0, %v2836_v13, %v2998_v43 }
0x3203   : > { %v2988_v20 = vpop.f32.mrf.mxu0 }
0x3204   : > { %v2989_v41 = vadd.f32 %v3951_v37, %v2988_v20 }
0x3205   : > { %v4300_v36 = vpop.f32.mrf.mxu0 }
0x3207   : > { %v2991_v38 = vpop.f32.mrf.mxu0 }
0x3208   : > { %v2992_v39 = vadd.f32 %v3951_v37, %v2991_v38 }
0x3209   : > { %v4301_v29 = vpop.f32.mrf.mxu0 }
0x320a   : > { %3007 = vrot.lane.b32.xlu1 %v2992_v39, %s4918_s22 }
0x320e   : > { %3005 = vrot.lane.b32.xlu1 %v2989_v41, %s4918_s22 }
0x327c   : > { %v3008_v54 = vpop.permute.xlu1 %3007 }
0x327d   : > { %v3014_v44 = vsel %vm2950_vm4, %v3012_v4, %v3008_v54 }
0x327e   : > { %3017 = vst.msk [vmem:[#allocation7 + $0x8] sm:$0xff] %vm3015_vm5, %v3014_v44 }
0x3280   : > { %v3006_v46 = vpop.permute.xlu1 %3005 }
0x3281   : > { %v3013_v48 = vsel %vm2950_vm4, %v3011_v45, %v3006_v46  ;;  %v4921_v45 = vmov 1   ;;  %v4523_v46 = vld [vmem:[#allocation21 + $0x8] sm:$0xff]  }
0x3282   : > { %3016 = vst.msk [vmem:[#allocation7] sm:$0xff] %vm3015_vm5, %v3013_v48  ;;  %4489 = vset.pattern.permute.xlu1 %v4921_v45 }
0x3285   : > { %v3033_v0 = vld [vmem:[#allocation7 + $0x8] sm:$0xff] }
0x3286   : > { %4303 = vmatpush3.msra.mxu1 %v3033_v0 }
0x3287   : > { %4304 = vmatprep.subr.mxu1 %v4915_v7 }
0x3289   : > { %v3032_v63 = vld [vmem:[#allocation7] sm:$0xff] }
0x328a   : > { %4305 = vmatpush3.msra.mxu1 %v3032_v63 }
0x328b   : > { %4307 = vmatmul.mubr.msk.f32.vlgmr.msra.gmra.mxu1 %vm3034_vm7, %v3957_v51  ;;  %4309 = vmatprep.subr.bf16.mxu1 %v4915_v7 }
0x328c   : > { %4311 = vmatprep.mubr.msk.bf16.mxu1 %vm4916_vm1, %v4915_v7 }
0x334b   : > { %v5698_v10 = vpop.f32.mrf.mxu1 }
0x334c   : > { %v3108_v56 = vpack.c.bf16 %v5698_v10, %v5698_v10 }
0x334d   : > { %v4308_v2 = vpop.f32.mrf.mxu1 }
0x334e   : > { %v3115_v50 = vsel %vm3113_vm8, %v3108_v56, 0 }
0x334f   : > { %4310 = vmatpush3.bf16.msra.mxu1 %v3115_v50 }
0x3350   : > { %4323 = vmatprep.subr.mxu1 %v4915_v7 }
0x3352   : > { %4312 = vmatmul.mubr.msk.bf16.vlgmr.msra.gmra.mxu1 %vm3109_vm9, %v3018_v40 }
0x3353   : > { %4324 = vmatpush3.msra.mxu1 %v3033_v0  ;;  %4327 = vmatprep.mubr.msk.f32.mxu1 %vm4916_vm1, %v4915_v7 }
0x3354   : > { %4325 = vmatprep.subr.mxu1 %v4915_v7 }
0x3355   : > { %4326 = vmatpush3.msra.mxu1 %v3032_v63 }
0x3356   : > { %4336 = vmatprep.subr.bf16.mxu1 %v4915_v7 }
0x335a   : > { %4328 = vmatmul.mubr.msk.f32.vlgmr.msra.gmra.mxu1 %vm3034_vm7, %v3964_v53  ;;  %v4525_v53 = vld [vmem:[%s5803_s17 + $0x8] sm:$0xff]  }
0x335b   : > { %4337 = vmatpush3.bf16.msra.mxu1 %v4521_v9  ;;  %4340 = vmatprep.mubr.msk.bf16.mxu1 %vm4916_vm1, %v4915_v7 }
0x335c   : > { %4338 = vmatprep.subr.bf16.mxu1 %v4915_v7 }
0x335f   : > { %4339 = vmatpush3.bf16.msra.mxu1 %v4522_v15  ;;  %v4526_v15 = vld [vmem:[%s5803_s17] sm:$0xff]  }
0x3360   : > { %4352 = vmatprep.subr.bf16.mxu1 %v4915_v7 }
0x3412   : > { %v3151_v8 = vpop.f32.mrf.mxu1 }
0x3413   : > { %v3157_v57 = vpack.c.bf16 %v3151_v8, %v3151_v8  ;;  %v3968_v8 = vld [vmem:[#allocation23] ss:$0 sm:$0xff] }
0x3414   : > { %v4313_v58 = vpop.f32.mrf.mxu1 }
0x3415   : > { %4320 = vmatmul.mubr.msk.bf16.vlgmr.msra.gmra.mxu0 %vm783_vm0, %v3157_v57 }
0x3416   : > { %v3154_v60 = vpop.f32.mrf.mxu1  ;;  %4332 = vmatprep.mubr.msk.bf16.mxu0 %vm4916_vm1, %v4915_v7 }
0x3418   : > { %v4314_v59 = vpop.f32.mrf.mxu1 }
0x341a   : > { %v5725_v61 = vpop.f32.mrf.mxu1 }
0x341b   : > { %v3315_v62 = vpack.c.bf16 %v5725_v61, %v5725_v61 }
0x341c   : > { %v4329_v3 = vpop.f32.mrf.mxu1 }
0x341d   : > { %v3317_v22 = vsel %vm3113_vm8, %v3315_v62, 0 }
0x341e   : > { %4331 = vmatpush3.bf16.msra.mxu0 %v3317_v22 }
0x341f   : > { %4344 = vmatprep.subr.bf16.mxu0 %v4915_v7 }
0x3421   : > { %4333 = vmatmul.mubr.msk.bf16.vlgmr.msra.gmra.mxu0 %vm3109_vm9, %v3018_v40 }
0x3422   : > { %4348 = vmatprep.mubr.msk.bf16.mxu0 %vm4916_vm1, %v4915_v7  ;;  %4345 = vmatpush3.bf16.msra.mxu0 %v4523_v46 }
0x3423   : > { %4346 = vmatprep.subr.bf16.mxu0 %v4915_v7 }
0x3426   : > { %4347 = vmatpush3.bf16.msra.mxu0 %v4524_v49 }
0x3427   : > { %4360 = vmatprep.subr.bf16.mxu0 %v4915_v7 }
0x34d5   : > { %v3213_v5 = vpop.f32.mrf.mxu0 }
0x34d6   : > { %v3214_v11 = vadd.f32 %v3960_v23, %v3213_v5 }
0x34d7   : > { %v4321_v12 = vpop.f32.mrf.mxu0 }
0x34d8   : > { %3224 = vrot.lane.b32.xlu0 %v3214_v11, %s4919_s21 }
0x34d9   : > { %v3216_v33 = vpop.f32.mrf.mxu0 }
0x34db   : > { %v4322_v1 = vpop.f32.mrf.mxu0 }
0x34e1   : > { %v3353_v13 = vpop.f32.mrf.mxu0 }
0x34e2   : > { %v3359_v14 = vpack.c.bf16 %v3353_v13, %v3353_v13 }
0x34e3   : > { %v4334_v16 = vpop.f32.mrf.mxu0 }
0x34e4   : > { %4341 = vmatmul.mubr.msk.bf16.vlgmr.msra.gmra.mxu1 %vm783_vm0, %v3359_v14 }
0x34e5   : > { %v3356_v17 = vpop.f32.mrf.mxu0  ;;  %4356 = vmatprep.mubr.msk.bf16.mxu1 %vm4916_vm1, %v4915_v7  ;;  %4353 = vmatpush3.bf16.msra.mxu1 %v4525_v53 }
0x34e6   : > { %4354 = vmatprep.subr.bf16.mxu1 %v4915_v7 }
0x34e7   : > { %v4335_v18 = vpop.f32.mrf.mxu0 }
0x34e9   : > { %4355 = vmatpush3.bf16.msra.mxu1 %v4526_v15 }
0x34ea   : > { %4368 = vmatprep.subr.bf16.mxu1 %v4915_v7 }
0x354a   : > { %v3225_v19 = vpop.permute.xlu0 %3224 }
0x354b   : > { %v3227_v21 = vmul.f32 %v3225_v19, %v5698_v10 }
0x354d   : > { %3229 = vrot.lane.b32.xlu0 %v3227_v21, %s4920_s29 }
0x35a4   : > { %v3397_v24 = vpop.f32.mrf.mxu1 }
0x35a5   : > { %v3398_v25 = vadd.f32 %v3960_v23, %v3397_v24 }
0x35a6   : > { %v4342_v26 = vpop.f32.mrf.mxu1 }
0x35a7   : > { %3409 = vrot.lane.b32.xlu1 %v3398_v25, %s4919_s21 }
0x35a8   : > { %v3400_v27 = vpop.f32.mrf.mxu1 }
0x35aa   : > { %v4343_v28 = vpop.f32.mrf.mxu1 }
0x35bf   : > { %v3230_v30 = vpop.permute.xlu0 %3229 }
0x35c0   : > { %v3232_v31 = vsel %vm783_vm0, %v3230_v30, 0.0 }
0x35c1   : > { %3233 = vadd.xlane.f32.xlu0 %v3232_v31 }
0x3619   : > { %v3410_v32 = vpop.permute.xlu1 %3409 }
0x361a   : > { %v3412_v55 = vmul.f32 %v3410_v32, %v5725_v61 }
0x361c   : > { %3414 = vrot.lane.b32.xlu1 %v3412_v55, %s4920_s29 }
0x364a   : > { %v3234_v34 = vpop.xlane.xlu0 %3233 }
0x364b   : > { %v3235_v36 = vmul.f32 0.125, %v3234_v34 }
0x368e   : > { %v3415_v35 = vpop.permute.xlu1 %3414 }
0x368f   : > { %v3417_v47 = vsel %vm783_vm0, %v3415_v35, 0.0 }
0x3690   : > { %3418 = vadd.xlane.f32.xlu1 %v3417_v47 }
0x36a1   : > { %3220 = vrot.lane.b32.xlu1 %v3214_v11, %s4920_s29 }
0x36a5   : > { %3404 = vrot.lane.b32.xlu1 %v3398_v25, %s4920_s29 }
0x3719   : > { %v3419_v20 = vpop.xlane.xlu1 %3418 }
0x371a   : > { %v3420_v37 = vmul.f32 0.125, %v3419_v20 }
0x371c   : > { %v3422_v38 = vsel %vm3421_vm11, %v3235_v36, %v3420_v37 }
0x371d   : > { %v3221_v39 = vpop.permute.xlu1 %3220  ;;  %v3424_v29 = vsel %vm3423_vm12, %v3422_v38, -inf }
0x371e   : > { %3223 = vst.msk [vmem:[#allocation8] sm:$0xff] %vm783_vm0, %v3221_v39  ;;  %3425 = vmax.xlane.f32.xlu0 %v3424_v29 }
0x3721   : > { %v3405_v41 = vpop.permute.xlu1 %3404 }
0x3722   : > { %3408 = vst.msk [vmem:[#allocation8 + $0x8] sm:$0xff] %vm783_vm0, %v3405_v41 }
0x3725   : > { %v3444_v63 = vld [vmem:[#allocation8] sm:$0xff] }
0x3729   : > { %v3583_v50 = vld [vmem:[#allocation8 + $0x8] sm:$0xff] }
0x37a7   : > { %v3426_v42 = vpop.xlane.xlu0 %3425 }
0x37a8   : > { %v3427_v4 = vsub.f32 %v3422_v38, %v3426_v42 }
0x37aa   : > { %v3428_v54 = vmul.f32 1.442695, %v3427_v4 }
0x37ac   : > { %4631 = vpow2.f32 %v3428_v54 }
0x37b9   : > { %v4632_v43 = vpop.eup %4631 }
0x37ba   : > { %v3430_v44 = vsel %vm3423_vm12, %v4632_v43, 0.0 }
0x37bb   : > { %3431 = vadd.xlane.f32.xlu0 %v3430_v44 }
0x3844   : > { %v3432_v48 = vpop.xlane.xlu0 %3431 }
0x3845   : > { %4633 = vrcp.f32 %v3432_v48 }
0x3852   : > { %v4634_v6 = vpop.eup %4633 }
0x3853   : > { %v3434_v0 = vmul.f32 %v4634_v6, %v4632_v43 }
0x3855   : > { %3585 = vperm.xlu1 %4489, %v3434_v0   ;;  %3447 = vperm.xlu0 %4488, %v3434_v0  }
0x3859   : > { %4490 = vset.pattern.permute.xlu0 %v4921_v45 }
0x38d0   : > { %v3448_v51 = vpop.permute.xlu0 %3447  ;;  %v3586_v2 = vpop.permute.xlu1 %3585 }
0x38d1   : > { %v3450_v9 = vmul.f32 %v3448_v51, %v3444_v63  ;;  %v3588_v40 = vmul.f32 %v3586_v2, %v3583_v50 }
0x38d3   : > { %v3451_v56 = vpack.c.bf16 %v3450_v9, %v3450_v9  ;;  %v3589_v52 = vpack.c.bf16 %v3588_v40, %v3588_v40 }
0x38d5   : > { %4349 = vmatmul.mubr.msk.bf16.vlgmr.msra.gmra.mxu0 %vm783_vm0, %v3451_v56 }
0x38d6   : > { %4361 = vmatpush3.bf16.msra.mxu0 %v4523_v46  ;;  %4364 = vmatprep.mubr.msk.bf16.mxu0 %vm4916_vm1, %v4915_v7 }
0x38d7   : > { %4362 = vmatprep.subr.bf16.mxu0 %v4915_v7 }
0x38da   : > { %4363 = vmatpush3.bf16.msra.mxu0 %v4524_v49 }
0x38dd   : > { %4365 = vmatmul.mubr.msk.bf16.vlgmr.msra.gmra.mxu0 %vm783_vm0, %v3589_v52 }
0x3995   : > { %v3507_v57 = vpop.f32.mrf.mxu0 }
0x3996   : > { %v3508_v58 = vadd.f32 %v3968_v8, %v3507_v57 }
0x3997   : > { %v4350_v60 = vpop.f32.mrf.mxu0 }
0x3998   : > { %v3514_v59 = vmul.f32 %v3508_v58, %v3508_v58  ;;  %v3513_v25 = vmul.f32 0.5, %v3508_v58 }
0x3999   : > { %v3510_v62 = vpop.f32.mrf.mxu0 }
0x399a   : > { %v3515_v3 = vmul.f32 %v3514_v59, %v3508_v58 }
0x399b   : > { %v4351_v22 = vpop.f32.mrf.mxu0 }
0x399c   : > { %v3516_v23 = vmul.f32 0.044715, %v3515_v3 }
0x399d   : > { %v3627_v5 = vpop.f32.mrf.mxu0 }
0x399e   : > { %v3517_v11 = vadd.f32 %v3516_v23, %v3508_v58  ;;  %v3628_v12 = vadd.f32 %v3968_v8, %v3627_v5 }
0x399f   : > { %v4366_v33 = vpop.f32.mrf.mxu0 }
0x39a0   : > { %v3518_v1 = vmul.f32 0.7978846, %v3517_v11  ;;  %v3634_v13 = vmul.f32 %v3628_v12, %v3628_v12  ;;  %v3633_v31 = vmul.f32 0.5, %v3628_v12 }
0x39a1   : > { %v3630_v14 = vpop.f32.mrf.mxu0 }
0x39a2   : > { %4635 = vtanh.f32 %v3518_v1  ;;  %v3635_v16 = vmul.f32 %v3634_v13, %v3628_v12 }
0x39a3   : > { %v4367_v17 = vpop.f32.mrf.mxu0 }
0x39a4   : > { %v3636_v18 = vmul.f32 0.044715, %v3635_v16 }
0x39a6   : > { %v3637_v19 = vadd.f32 %v3636_v18, %v3628_v12 }
0x39a8   : > { %v3638_v21 = vmul.f32 0.7978846, %v3637_v19 }
0x39aa   : > { %4637 = vtanh.f32 %v3638_v21 }
0x39af   : > { %v4636_v24 = vpop.eup %4635 }
0x39b0   : > { %v3520_v26 = vadd.f32 1.0, %v4636_v24 }
0x39b2   : > { %v3521_v27 = vmul.f32 %v3520_v26, %v3513_v25 }
0x39b4   : > { %v3522_v28 = vpack.c.bf16 %v3521_v27, %v3521_v27 }
0x39b6   : > { %4357 = vmatmul.mubr.msk.bf16.vlgmr.msra.gmra.mxu1 %vm783_vm0, %v3522_v28 }
0x39b7   : > { %v4638_v30 = vpop.eup %4637  ;;  %4369 = vmatpush3.bf16.msra.mxu1 %v4525_v53  ;;  %4372 = vmatprep.mubr.msk.bf16.mxu1 %vm4916_vm1, %v4915_v7 }
0x39b8   : > { %v3640_v32 = vadd.f32 1.0, %v4638_v30  ;;  %4370 = vmatprep.subr.bf16.mxu1 %v4915_v7 }
0x39ba   : > { %v3641_v55 = vmul.f32 %v3640_v32, %v3633_v31 }
0x39bb   : > { %4371 = vmatpush3.bf16.msra.mxu1 %v4526_v15 }
0x39bc   : > { %v3642_v35 = vpack.c.bf16 %v3641_v55, %v3641_v55 }
0x39be   : > { %4373 = vmatmul.mubr.msk.bf16.vlgmr.msra.gmra.mxu1 %vm783_vm0, %v3642_v35 }
0x3a76   : > { %v3572_v47 = vpop.f32.mrf.mxu1 }
0x3a77   : > { %3579 = vrot.lane.b32.xlu0 %v3572_v47, %s4918_s22 }
0x3a78   : > { %v4358_v34 = vpop.f32.mrf.mxu1 }
0x3a7a   : > { %v3575_v20 = vpop.f32.mrf.mxu1 }
0x3a7c   : > { %v4359_v36 = vpop.f32.mrf.mxu1 }
0x3a7e   : > { %v3680_v37 = vpop.f32.mrf.mxu1 }
0x3a7f   : > { %3687 = vrot.lane.b32.xlu1 %v3680_v37, %s4918_s22 }
0x3a80   : > { %v4374_v38 = vpop.f32.mrf.mxu1 }
0x3a82   : > { %v3683_v39 = vpop.f32.mrf.mxu1 }
0x3a84   : > { %v4375_v29 = vpop.f32.mrf.mxu1 }
0x3ae9   : > { %v3580_v41 = vpop.permute.xlu0 %3579 }
0x3aea   : > { %v3582_v7 = vadd.f32 %v3580_v41, %v5698_v10 }
0x3aec   : > { %3692 = vrot.lane.b32.xlu0 %v3582_v7, %s4918_s22 }
0x3af1   : > { %v3688_v42 = vpop.permute.xlu1 %3687 }
0x3af2   : > { %v3690_v4 = vadd.f32 %v3688_v42, %v5725_v61 }
0x3af4   : > { %3696 = vrot.lane.b32.xlu1 %v3690_v4, %s4922_s0 }
0x3b5e   : > { %v3693_v54 = vpop.permute.xlu0 %3692 }
0x3b66   : > { %v3697_v43 = vpop.permute.xlu1 %3696 }
0x3b67   : > { %v3699_v44 = vsel %vm3421_vm11, %v3693_v54, %v3697_v43 }
0x3b68   : > { %3700 = vst.msk [vmem:[%s752_s30] sm:$0xff] %vm3423_vm12, %v3699_v44 }
0x3b69 PF: > { %s37_s23 = sadd.s32 1, %s4899_s23  }
0x3b6a   : > { %p34_p4 = scmp.ge.s32.totalorder %s37_s23, 6  }
0x3b6c   :  { %36 = sbr.rel (!%p34_p4) target bundleno = 11 (0xb), region = 189 }
0x3b71   :  { %3720 = vsyncpa [#allocation11], 1 }
0x3b72   :  { %3722 = vsyncpa [#allocation11 + $0x1], 1 }
0x3b73   :  { %3723 = vsyncpa [#allocation13], 1 }
0x3b74   :  { %3724 = vsyncpa [#allocation16], 1 }
0x3b75   :  { %3725 = vsyncpa [#allocation19], 1 }
0x3b76   :  { %3726 = vsyncpa [#allocation22], 1 }

</bundles_post_ra>
